<compile_context>
chip_gen: v7x
topology: tpu7x:2x2x1
jax: 0.10.0
libtpu: 0.0.40
codegen_flags: <defaults>
</compile_context>

<pallas_src>
import functools

import jax
import jax.numpy as jnp
import numpy as np
from jax import lax
from jax.experimental import pallas as pl
from jax.experimental.pallas import tpu as pltpu


# ----------------------------- small helpers -----------------------------------
def _apply_act(x, act):
    if act == "relu":
        return jnp.maximum(x, 0.0)
    if act == "tanh":
        return jnp.tanh(x)
    if act == "sigmoid":
        return jax.nn.sigmoid(x)
    return x  # identity


def _full_spec(shape):
    """BlockSpec covering the whole array, re-used (not re-DMA'd) across the grid."""
    nd = len(shape)
    return pl.BlockSpec(tuple(shape), lambda s, nd=nd: (0,) * nd)


def _sample_spec(shape):
    """Per-grid-step slab along the leading (sample) axis of a 3-D array."""
    return pl.BlockSpec((1,) + tuple(shape[1:]), lambda s: (s, 0, 0))


# ----------------------------- in-kernel GAT block ------------------------------
def _gat_block(x, mask_bias, w_all, a_l, a_r, num_heads, act):
    """Dense multi-head GAT on one sample.

    x: (N, Fin), mask_bias: (N, N) (0 on edges, -1e9 off-edges),
    w_all: (Fin, H*Fout) (heads stacked on lanes), a_l/a_r: (H, Fout).
    """
    n = x.shape[0]
    fout = w_all.shape[1] // num_heads
    # single lane-dense matmul for all heads
    hh_all = jnp.dot(x, w_all, preferred_element_type=jnp.float32)      # (N, H*Fout)
    acc = jnp.zeros((n, fout), jnp.float32)
    for h in range(num_heads):                                          # small static unroll
        hh = hh_all[:, h * fout:(h + 1) * fout]                         # (N, Fout)
        # el via VPU multiply + lane reduce; er via transposed-contraction matmul
        el = jnp.sum(hh * a_l[h:h + 1, :], axis=-1, keepdims=True)      # (N, 1)
        er = lax.dot_general(a_r[h:h + 1, :], hh,
                             (((1,), (1,)), ((), ())),
                             preferred_element_type=jnp.float32)        # (1, N), no .T
        e = el + er                                                     # (N, N)
        e = jnp.where(e > 0, e, 0.2 * e)                                # LeakyReLU(0.2)
        e = e + mask_bias                                               # mask non-edges
        e = e - jnp.max(e, axis=-1, keepdims=True)
        p = jnp.exp(e)
        alpha = p / jnp.sum(p, axis=-1, keepdims=True)
        acc = acc + jnp.dot(alpha, hh, preferred_element_type=jnp.float32)
    return _apply_act(acc * (1.0 / num_heads), act)


# ----------------------------- fused node encoder -------------------------------
def _node_encode_kernel(x0_ref, noise_ref, adj_ref, eps_ref,
                        w1_ref, al1_ref, ar1_ref,
                        we_ref, ale_ref, are_ref,
                        w2_ref, al2_ref, ar2_ref,
                        w3_ref, al3_ref, ar3_ref,
                        mu_ref, logvar_ref, z_ref,
                        hx_scr,
                        *, num_heads, enc_sto):
    s = pl.program_id(0)
    mask_bias = jnp.where(adj_ref[...] > 0, 0.0, -1e9)

    # hiddenx is sample-independent: compute once, keep in VMEM scratch
    @pl.when(s == 0)
    def _():
        hx_scr[...] = _gat_block(x0_ref[0], mask_bias,
                                 w1_ref[...], al1_ref[...], ar1_ref[...],
                                 num_heads, act="relu")

    hiddenx = hx_scr[...]
    hiddene = _gat_block(noise_ref[0], mask_bias,
                         we_ref[...], ale_ref[...], are_ref[...],
                         num_heads, act="relu")
    hidden1 = hiddenx + hiddene
    mu = _gat_block(hidden1, mask_bias,
                    w2_ref[...], al2_ref[...], ar2_ref[...],
                    num_heads, act="none")
    hidden_std1 = enc_sto * hidden1 + (1.0 - enc_sto) * hiddenx
    logvar = _gat_block(hidden_std1, mask_bias,
                        w3_ref[...], al3_ref[...], ar3_ref[...],
                        num_heads, act="none")
    z = eps_ref[0] * jnp.exp(0.5 * logvar) + mu                         # fused reparam
    mu_ref[0] = mu
    logvar_ref[0] = logvar
    z_ref[0] = z


def node_encode_fused(params, cfg, adj, x0, noise, eps):
    S, N, _ = noise.shape
    h1, h2 = cfg["hidden_dim1"], cfg["hidden_dim2"]
    H = cfg["num_heads"]
    enc_sto = 1.0 if cfg["encsto"] == "full" else 0.0
    weights = (*params["gat_1"], *params["gat_e"], *params["gat_2"], *params["gat_3"])

    out_sds = jax.ShapeDtypeStruct((S, N, h2), jnp.float32)
    out_spec = _sample_spec((S, N, h2))
    grid_spec = pltpu.PrefetchScalarGridSpec(
        num_scalar_prefetch=0,
        grid=(S,),
        in_specs=[_full_spec(x0.shape), _sample_spec(noise.shape),
                  _full_spec(adj.shape), _sample_spec(eps.shape)]
                 + [_full_spec(w.shape) for w in weights],
        out_specs=[out_spec, out_spec, out_spec],
        scratch_shapes=[pltpu.VMEM((N, h1), jnp.float32)],
    )
    kernel = functools.partial(_node_encode_kernel, num_heads=H, enc_sto=enc_sto)
    return pl.pallas_call(
        kernel,
        out_shape=(out_sds, out_sds, out_sds),
        grid_spec=grid_spec,
        compiler_params=pltpu.CompilerParams(dimension_semantics=("arbitrary",)),
    )(x0, noise, adj, eps, *weights)


# ----------------------------- fused feature encoder ----------------------------
def _feature_encode_kernel(f_ref, e_ref, epsf_ref,
                           w1_ref, b1_ref, we_ref, be_ref,
                           w2_ref, b2_ref, w3_ref, b3_ref,
                           muf_ref, logvarf_ref, zf_ref,
                           hf_scr, *, enc_sto):
    s = pl.program_id(0)

    @pl.when(s == 0)
    def _():
        hf = jnp.dot(f_ref[0], w1_ref[...], preferred_element_type=jnp.float32) + b1_ref[...]
        hf_scr[...] = jnp.tanh(hf)

    hiddenf = hf_scr[...]
    he = jnp.dot(e_ref[0], we_ref[...], preferred_element_type=jnp.float32) + be_ref[...]
    hiddene = jnp.tanh(he)
    hidden1 = hiddenf + hiddene
    muf = jnp.dot(hidden1, w2_ref[...], preferred_element_type=jnp.float32) + b2_ref[...]
    hidden_sd = enc_sto * hidden1 + (1.0 - enc_sto) * hiddenf
    logvarf = jnp.dot(hidden_sd, w3_ref[...], preferred_element_type=jnp.float32) + b3_ref[...]
    zf = epsf_ref[0] * jnp.exp(0.5 * logvarf) + muf                     # fused reparam
    muf_ref[0] = muf
    logvarf_ref[0] = logvarf
    zf_ref[0] = zf


def feature_encode_fused(params, cfg, f, e, epsf):
    S, feat, _ = e.shape
    h1, h2 = cfg["hidden_dim1"], cfg["hidden_dim2"]
    enc_sto = 1.0 if cfg["encsto"] == "full" else 0.0
    w1, b1 = params["mlp1"]
    we, be = params["mlpe"]
    w2, b2 = params["mlp2"]
    w3, b3 = params["mlp3"]
    weights = (w1, b1, we, be, w2, b2, w3, b3)

    out_sds = jax.ShapeDtypeStruct((S, feat, h2), jnp.float32)
    out_spec = _sample_spec((S, feat, h2))
    grid_spec = pltpu.PrefetchScalarGridSpec(
        num_scalar_prefetch=0,
        grid=(S,),
        in_specs=[_full_spec(f.shape), _sample_spec(e.shape), _sample_spec(epsf.shape)]
                 + [_full_spec(w.shape) for w in weights],
        out_specs=[out_spec, out_spec, out_spec],
        scratch_shapes=[pltpu.VMEM((feat, h1), jnp.float32)],
    )
    kernel = functools.partial(_feature_encode_kernel, enc_sto=enc_sto)
    return pl.pallas_call(
        kernel,
        out_shape=(out_sds, out_sds, out_sds),
        grid_spec=grid_spec,
        compiler_params=pltpu.CompilerParams(dimension_semantics=("arbitrary",)),
    )(f, e, epsf, *weights)


# ----------------------------- fused decoders -----------------------------------
def _decoder_kernel(za_ref, zf_ref, wr_ref, br_ref,
                    pred_src_ref, pred_a_ref, fea_ref,
                    *, src_off, n_src, fea_off):
    za = za_ref[0]                                                      # (N, h2)
    zf = zf_ref[0]                                                      # (feat, h2)
    nt = (((1,), (1,)), ((), ()))                                       # contract last dims
    z_src = za[src_off:src_off + n_src, :]
    # one lane-dense sigmoid decode against ALL nodes; relations sliced outside
    pred_src = jax.nn.sigmoid(
        lax.dot_general(z_src, za, nt, preferred_element_type=jnp.float32))      # (n_src, N)
    pred_a = jnp.tanh(
        lax.dot_general(za, zf, nt, preferred_element_type=jnp.float32))         # (N, feat)
    fea = pred_a[fea_off:fea_off + n_src, :]
    rec = jax.nn.sigmoid(
        jnp.dot(fea, wr_ref[...], preferred_element_type=jnp.float32) + br_ref[...])
    pred_src_ref[0] = pred_src
    pred_a_ref[0] = pred_a
    fea_ref[0] = rec


def decode_fused(params, za, zf, *, src_off, n_src, fea_off):
    J, N, h2 = za.shape
    feat = zf.shape[1]
    w_rec, b_rec = params["mlp_recover"]
    in_feat = w_rec.shape[1]
    kernel = functools.partial(_decoder_kernel, src_off=src_off, n_src=n_src, fea_off=fea_off)
    grid_spec = pltpu.PrefetchScalarGridSpec(
        num_scalar_prefetch=0,
        grid=(J,),
        in_specs=[_sample_spec(za.shape), _sample_spec(zf.shape),
                  _full_spec(w_rec.shape), _full_spec(b_rec.shape)],
        out_specs=[_sample_spec((J, n_src, N)),
                   _sample_spec((J, N, feat)),
                   _sample_spec((J, n_src, in_feat))],
    )
    return pl.pallas_call(
        kernel,
        out_shape=(jax.ShapeDtypeStruct((J, n_src, N), jnp.float32),
                   jax.ShapeDtypeStruct((J, N, feat), jnp.float32),
                   jax.ShapeDtypeStruct((J, n_src, in_feat), jnp.float32)),
        grid_spec=grid_spec,
        compiler_params=pltpu.CompilerParams(dimension_semantics=("parallel",)),
    )(za, zf, w_rec, b_rec)


# ----------------------------- parameters --------------------------------------
def _lin_init(key, din, dout):
    kw, kb = jax.random.split(key)
    w = jax.random.normal(kw, (din, dout), jnp.float32) * (1.0 / np.sqrt(din))
    b = jax.random.normal(kb, (1, dout), jnp.float32) * 0.01
    return w, b


def _gat_init(key, din, dout, heads):
    kw, kl, kr = jax.random.split(key, 3)
    w = jax.random.normal(kw, (din, heads * dout), jnp.float32) * (1.0 / np.sqrt(din))
    a_l = jax.random.normal(kl, (heads, dout), jnp.float32) * 0.1
    a_r = jax.random.normal(kr, (heads, dout), jnp.float32) * 0.1
    return w, a_l, a_r


def init_params(key, cfg):
    N, h, h1, h2 = cfg["num_nodes"], cfg["hidden_dim"], cfg["hidden_dim1"], cfg["hidden_dim2"]
    heads, in_feat = cfg["num_heads"], cfg["input_feat_dim"]
    ks = jax.random.split(key, 12)
    p = {}
    p["gat_e"] = _gat_init(ks[0], cfg["ndim"], h1, heads)
    p["gat_1"] = _gat_init(ks[1], h, h1, heads)
    p["gat_2"] = _gat_init(ks[2], h1, h2, heads)
    p["gat_3"] = _gat_init(ks[3], h1, h2, heads)
    p["mlpe"] = _lin_init(ks[4], cfg["ndim"], h1)
    p["mlp1"] = _lin_init(ks[5], N, h1)
    p["mlp2"] = _lin_init(ks[6], h1, h2)
    p["mlp3"] = _lin_init(ks[7], h1, h2)
    p["mlp_recover"] = _lin_init(ks[8], h, in_feat)
    p["rk_lgt1"] = jax.random.uniform(ks[9], (1, h2), jnp.float32, -6.0, 0.0)
    p["rk_lgt2"] = jax.random.uniform(ks[10], (1, h2), jnp.float32, -6.0, 0.0)
    return p


# ----------------------------- base_HGNN forward -------------------------------
def base_hgnn_forward(params, cfg, x, adj, x_all, key):
    # dropout == 0.0 and training=True semantics (dropout is identity, decoders skip mean)
    k_noise_n, k_noise_f, k_eps_n, k_eps_f = jax.random.split(key, 4)
    K, J = cfg["K"], cfg["J"]
    S = K + J
    N, h, h2 = cfg["num_nodes"], cfg["hidden_dim"], cfg["hidden_dim2"]
    ndim, reweight = cfg["ndim"], cfg["reweight"]
    src = cfg["src_node"]
    splits = cfg["splits"]

    # ---------------- node encoder (one fused pallas_call) ----------------
    x0 = jnp.concatenate(x_all, axis=0)[None]                           # (1, N, hidden_dim)
    noise = jax.random.bernoulli(k_noise_n, 0.5, (S, N, ndim)).astype(jnp.float32) * reweight
    eps_n = jax.random.normal(k_eps_n, (S, N, h2), jnp.float32)
    mu, logvar, z_full = node_encode_fused(params, cfg, adj, x0, noise, eps_n)

    idx = list(np.cumsum(splits)[:-1])
    mu_list = jnp.split(mu, idx, axis=1)
    logvar_list = jnp.split(logvar, idx, axis=1)
    z_emb = z_full[K:]                                                  # (J, N, h2)
    eps_emb = eps_n[K:]
    z_all = jnp.split(z_emb, idx, axis=1)
    eps_all = jnp.split(eps_emb, idx, axis=1)

    # ---------------- feature encoder (one fused pallas_call) -------------
    assert x.ndim == 3, "The input tensor dimension is not 3!"
    f = jnp.transpose(x, (0, 2, 1))                                     # (1, feat, num_nodes)
    feat = f.shape[1]
    e = jax.random.bernoulli(k_noise_f, 0.5, (S, feat, ndim)).astype(jnp.float32) * reweight
    eps_f = jax.random.normal(k_eps_f, (S, feat, h2), jnp.float32)
    muf, logvarf, zf_full = feature_encode_fused(params, cfg, f, e, eps_f)
    zf = zf_full[K:]
    epsf = eps_f[K:]

    # ---------------- decoders (one fused pallas_call) --------------------
    offsets = [0]
    for n_i in splits:
        offsets.append(offsets[-1] + int(n_i))
    n_src = int(splits[src])
    src_off = int(offsets[src])
    fea_off = 0 if src == 0 else int(splits[src - 1])                   # matches torch indexing
    Za = z_emb                                                          # == cat(z_all, dim=1)
    pred_src_all, pred_a, fea_recover = decode_fused(
        params, Za, zf, src_off=src_off, n_src=n_src, fea_off=fea_off)

    # GraphDecoder (gdc='ip' -> sigmoid), GraphDecoder2 (gdc='ip' -> tanh)
    rk1 = jax.nn.sigmoid(params["rk_lgt1"])                             # (sigmoid**0.5)**2
    pred_adj_all, z_scaled1_all, z_scaled2_all, rk_all = [], [], [], []
    for i in range(len(splits)):
        if i == src:
            continue
        pred_adj_all.append(pred_src_all[:, :, offsets[i]:offsets[i] + int(splits[i])])
        z_scaled1_all.append(z_all[src])
        z_scaled2_all.append(z_all[i])
        rk_all.append(rk1)

    z_scaleda, z_scaledf = Za, zf

    return (pred_adj_all, pred_a, fea_recover, mu_list, muf, logvar_list, logvarf,
            z_all, zf, Za, z_scaled1_all, z_scaled2_all, z_scaledf, z_scaleda,
            eps_all, epsf, rk_all)


# ----------------------------- main ---------------------------------------------
if __name__ == "__main__":
    splits = (8, 5, 3)          # ACM-style node types: paper / author / subject
    cfg = dict(
        dataset="ACM",
        splits=splits,
        num_nodes=int(sum(splits)),
        hidden_dim=8,
        hidden_dim1=16,
        hidden_dim2=8,
        input_feat_dim=12,
        num_heads=2,
        K=1,
        J=1,
        src_node=0,
        encsto="semi",
        gdc="ip",
    )
    cfg["ndim"] = cfg["hidden_dim"]  # ndim = hidden_dim in __init__
    cfg["reweight"] = ((cfg["ndim"] + cfg["hidden_dim1"]) /
                       (cfg["hidden_dim"] + cfg["hidden_dim1"])) ** 0.5

    root = jax.random.PRNGKey(0)
    k_param, k_x, k_adj, k_xall, k_fwd = jax.random.split(root, 5)

    params = init_params(k_param, cfg)

    N, h = cfg["num_nodes"], cfg["hidden_dim"]
    x = jax.random.normal(k_x, (1, N, h), jnp.float32)                  # (B, num_nodes, hidden_dim)

    x_all = []
    for i, n_i in enumerate(splits):
        x_all.append(jax.random.normal(jax.random.fold_in(k_xall, i), (n_i, h), jnp.float32))

    # dense symmetric adjacency with self-loops (stand-in for the DGL heterograph)
    a_rand = jax.random.bernoulli(k_adj, 0.3, (N, N))
    adj = jnp.logical_or(jnp.logical_or(a_rand, a_rand.T), jnp.eye(N, dtype=bool))
    adj = adj.astype(jnp.float32)

    fwd = jax.jit(lambda p, xx, aa, xa, kk: base_hgnn_forward(p, cfg, xx, aa, xa, kk))
    outs = fwd(params, x, adj, x_all, k_fwd)
    jax.block_until_ready(outs)

    # light sanity checks on shapes
    pred_adj_all, pred_a, fea_recover = outs[0], outs[1], outs[2]
    assert pred_a.shape == (cfg["J"], N, h)
    assert fea_recover.shape == (cfg["J"], splits[0], cfg["input_feat_dim"])
    assert pred_adj_all[0].shape == (cfg["J"], splits[0], splits[1])

    print("KERNEL_OK")
</pallas_src>

<mosaic_0001>
module attributes {stable_mosaic.version = 11 : i64} {
  func.func @_decoder_kernel(%arg0: i32, %arg1: memref<1x16x8xf32, #tpu.memory_space<vmem>>, %arg2: memref<1x8x8xf32, #tpu.memory_space<vmem>>, %arg3: memref<8x12xf32, #tpu.memory_space<vmem>>, %arg4: memref<1x12xf32, #tpu.memory_space<vmem>>, %arg5: memref<1x8x16xf32, #tpu.memory_space<vmem>>, %arg6: memref<1x16x8xf32, #tpu.memory_space<vmem>>, %arg7: memref<1x8x12xf32, #tpu.memory_space<vmem>>) attributes {dimension_semantics = [#tpu.dimension_semantics<parallel>], iteration_bounds = array<i64: 1>, scalar_prefetch = 0 : i64, scratch_operands = 0 : i64, tpu.core_type = #tpu.core_type<tc>, window_params = [{transform_indices = @transform_0, window_bounds = array<i64: 1, 16, 8>}, {transform_indices = @transform_1, window_bounds = array<i64: 1, 8, 8>}, {pipeline_mode = #tpu.pipeline_mode<synchronous>, transform_indices = @transform_2, window_bounds = array<i64: 8, 12>}, {pipeline_mode = #tpu.pipeline_mode<synchronous>, transform_indices = @transform_3, window_bounds = array<i64: 1, 12>}, {transform_indices = @transform_4, window_bounds = array<i64: 1, 8, 16>}, {transform_indices = @transform_5, window_bounds = array<i64: 1, 16, 8>}, {transform_indices = @transform_6, window_bounds = array<i64: 1, 8, 12>}]} {
    %c0 = arith.constant 0 : index
    %c0_0 = arith.constant 0 : index
    %c0_1 = arith.constant 0 : index
    %0 = vector.load %arg1[%c0, %c0_0, %c0_1] : memref<1x16x8xf32, #tpu.memory_space<vmem>>, vector<1x16x8xf32>
    %1 = vector.shape_cast %0 : vector<1x16x8xf32> to vector<16x8xf32>
    %c0_2 = arith.constant 0 : index
    %c0_3 = arith.constant 0 : index
    %c0_4 = arith.constant 0 : index
    %2 = vector.load %arg2[%c0_2, %c0_3, %c0_4] : memref<1x8x8xf32, #tpu.memory_space<vmem>>, vector<1x8x8xf32>
    %3 = vector.shape_cast %2 : vector<1x8x8xf32> to vector<8x8xf32>
    %4 = vector.extract_strided_slice %1 {offsets = [0, 0], sizes = [8, 8], strides = [1, 1]} : vector<16x8xf32> to vector<8x8xf32>
    %cst = arith.constant dense<0.000000e+00> : vector<8x16xf32>
    %5 = tpu.matmul %4, %1, %cst {dimension_numbers = #tpu.dot_dimension_numbers<[1], [1], [0], [0], [0, 0, 1, 0], [], []>} : vector<8x8xf32>, vector<16x8xf32>, vector<8x16xf32> -> vector<8x16xf32>
    %6 = arith.negf %5 : vector<8x16xf32>
    %7 = math.exp %6 : vector<8x16xf32>
    %cst_5 = arith.constant 1.000000e+00 : f32
    %8 = vector.broadcast %cst_5 : f32 to vector<8x16xf32>
    %9 = arith.addf %8, %7 : vector<8x16xf32>
    %10 = arith.divf %8, %9 : vector<8x16xf32>
    %cst_6 = arith.constant dense<0.000000e+00> : vector<16x8xf32>
    %11 = tpu.matmul %1, %3, %cst_6 {dimension_numbers = #tpu.dot_dimension_numbers<[1], [1], [0], [0], [0, 0, 1, 0], [], []>} : vector<16x8xf32>, vector<8x8xf32>, vector<16x8xf32> -> vector<16x8xf32>
    %12 = math.tanh %11 : vector<16x8xf32>
    %13 = vector.extract_strided_slice %12 {offsets = [0, 0], sizes = [8, 8], strides = [1, 1]} : vector<16x8xf32> to vector<8x8xf32>
    %c0_7 = arith.constant 0 : index
    %c0_8 = arith.constant 0 : index
    %14 = vector.load %arg3[%c0_7, %c0_8] : memref<8x12xf32, #tpu.memory_space<vmem>>, vector<8x12xf32>
    %cst_9 = arith.constant dense<0.000000e+00> : vector<8x12xf32>
    %15 = tpu.matmul %13, %14, %cst_9 {dimension_numbers = #tpu.dot_dimension_numbers<[1], [0], [0], [1], [0, 0, 1, 1], [], []>} : vector<8x8xf32>, vector<8x12xf32>, vector<8x12xf32> -> vector<8x12xf32>
    %c0_10 = arith.constant 0 : index
    %c0_11 = arith.constant 0 : index
    %16 = vector.load %arg4[%c0_10, %c0_11] : memref<1x12xf32, #tpu.memory_space<vmem>>, vector<1x12xf32>
    %17 = vector.broadcast %16 : vector<1x12xf32> to vector<8x12xf32>
    %18 = arith.addf %15, %17 : vector<8x12xf32>
    %19 = arith.negf %18 : vector<8x12xf32>
    %20 = math.exp %19 : vector<8x12xf32>
    %cst_12 = arith.constant 1.000000e+00 : f32
    %21 = vector.broadcast %cst_12 : f32 to vector<8x12xf32>
    %22 = arith.addf %21, %20 : vector<8x12xf32>
    %23 = arith.divf %21, %22 : vector<8x12xf32>
    %c0_13 = arith.constant 0 : index
    %c0_14 = arith.constant 0 : index
    %c0_15 = arith.constant 0 : index
    %24 = vector.load %arg5[%c0_13, %c0_14, %c0_15] : memref<1x8x16xf32, #tpu.memory_space<vmem>>, vector<1x8x16xf32>
    %25 = vector.shape_cast %24 : vector<1x8x16xf32> to vector<8x16xf32>
    %26 = vector.shape_cast %10 : vector<8x16xf32> to vector<1x8x16xf32>
    tpu.vector_store %arg5[%c0_13, %c0_14, %c0_15], %26 {strides = array<i32>} : memref<1x8x16xf32, #tpu.memory_space<vmem>>, vector<1x8x16xf32>,
    %c0_16 = arith.constant 0 : index
    %c0_17 = arith.constant 0 : index
    %c0_18 = arith.constant 0 : index
    %27 = vector.load %arg6[%c0_16, %c0_17, %c0_18] : memref<1x16x8xf32, #tpu.memory_space<vmem>>, vector<1x16x8xf32>
    %28 = vector.shape_cast %27 : vector<1x16x8xf32> to vector<16x8xf32>
    %29 = vector.shape_cast %12 : vector<16x8xf32> to vector<1x16x8xf32>
    tpu.vector_store %arg6[%c0_16, %c0_17, %c0_18], %29 {strides = array<i32>} : memref<1x16x8xf32, #tpu.memory_space<vmem>>, vector<1x16x8xf32>,
    %c0_19 = arith.constant 0 : index
    %c0_20 = arith.constant 0 : index
    %c0_21 = arith.constant 0 : index
    %30 = vector.load %arg7[%c0_19, %c0_20, %c0_21] : memref<1x8x12xf32, #tpu.memory_space<vmem>>, vector<1x8x12xf32>
    %31 = vector.shape_cast %30 : vector<1x8x12xf32> to vector<8x12xf32>
    %32 = vector.shape_cast %23 : vector<8x12xf32> to vector<1x8x12xf32>
    tpu.vector_store %arg7[%c0_19, %c0_20, %c0_21], %32 {strides = array<i32>} : memref<1x8x12xf32, #tpu.memory_space<vmem>>, vector<1x8x12xf32>,
    return
  }
  func.func @transform_0(%arg0: i32) -> (i32, i32, i32) {
    %c0_i32 = arith.constant 0 : i32
    %c0_i32_0 = arith.constant 0 : i32
    %c0_i32_1 = arith.constant 0 : i32
    return %arg0, %c0_i32, %c0_i32_0 : i32, i32, i32
  }
  func.func @transform_1(%arg0: i32) -> (i32, i32, i32) {
    %c0_i32 = arith.constant 0 : i32
    %c0_i32_0 = arith.constant 0 : i32
    %c0_i32_1 = arith.constant 0 : i32
    return %arg0, %c0_i32, %c0_i32_0 : i32, i32, i32
  }
  func.func @transform_2(%arg0: i32) -> (i32, i32) {
    %c0_i32 = arith.constant 0 : i32
    %c0_i32_0 = arith.constant 0 : i32
    %c0_i32_1 = arith.constant 0 : i32
    return %c0_i32, %c0_i32_0 : i32, i32
  }
  func.func @transform_3(%arg0: i32) -> (i32, i32) {
    %c0_i32 = arith.constant 0 : i32
    %c0_i32_0 = arith.constant 0 : i32
    %c0_i32_1 = arith.constant 0 : i32
    return %c0_i32, %c0_i32_0 : i32, i32
  }
  func.func @transform_4(%arg0: i32) -> (i32, i32, i32) {
    %c0_i32 = arith.constant 0 : i32
    %c0_i32_0 = arith.constant 0 : i32
    %c0_i32_1 = arith.constant 0 : i32
    return %arg0, %c0_i32, %c0_i32_0 : i32, i32, i32
  }
  func.func @transform_5(%arg0: i32) -> (i32, i32, i32) {
    %c0_i32 = arith.constant 0 : i32
    %c0_i32_0 = arith.constant 0 : i32
    %c0_i32_1 = arith.constant 0 : i32
    return %arg0, %c0_i32, %c0_i32_0 : i32, i32, i32
  }
  func.func @transform_6(%arg0: i32) -> (i32, i32, i32) {
    %c0_i32 = arith.constant 0 : i32
    %c0_i32_0 = arith.constant 0 : i32
    %c0_i32_1 = arith.constant 0 : i32
    return %arg0, %c0_i32, %c0_i32_0 : i32, i32, i32
  }
}

module attributes {stable_mosaic.version = 11 : i64} {
  func.func @_feature_encode_kernel(%arg0: i32, %arg1: memref<1x8x16xf32, #tpu.memory_space<vmem>>, %arg2: memref<1x8x8xf32, #tpu.memory_space<vmem>>, %arg3: memref<1x8x8xf32, #tpu.memory_space<vmem>>, %arg4: memref<16x16xf32, #tpu.memory_space<vmem>>, %arg5: memref<1x16xf32, #tpu.memory_space<vmem>>, %arg6: memref<8x16xf32, #tpu.memory_space<vmem>>, %arg7: memref<1x16xf32, #tpu.memory_space<vmem>>, %arg8: memref<16x8xf32, #tpu.memory_space<vmem>>, %arg9: memref<1x8xf32, #tpu.memory_space<vmem>>, %arg10: memref<16x8xf32, #tpu.memory_space<vmem>>, %arg11: memref<1x8xf32, #tpu.memory_space<vmem>>, %arg12: memref<1x8x8xf32, #tpu.memory_space<vmem>>, %arg13: memref<1x8x8xf32, #tpu.memory_space<vmem>>, %arg14: memref<1x8x8xf32, #tpu.memory_space<vmem>>, %arg15: memref<8x16xf32, #tpu.memory_space<vmem>>) attributes {dimension_semantics = [#tpu.dimension_semantics<arbitrary>], iteration_bounds = array<i64: 2>, scalar_prefetch = 0 : i64, scratch_operands = 1 : i64, tpu.core_type = #tpu.core_type<tc>, window_params = [{pipeline_mode = #tpu.pipeline_mode<synchronous>, transform_indices = @transform_0, window_bounds = array<i64: 1, 8, 16>}, {transform_indices = @transform_1, window_bounds = array<i64: 1, 8, 8>}, {transform_indices = @transform_2, window_bounds = array<i64: 1, 8, 8>}, {pipeline_mode = #tpu.pipeline_mode<synchronous>, transform_indices = @transform_3, window_bounds = array<i64: 16, 16>}, {pipeline_mode = #tpu.pipeline_mode<synchronous>, transform_indices = @transform_4, window_bounds = array<i64: 1, 16>}, {pipeline_mode = #tpu.pipeline_mode<synchronous>, transform_indices = @transform_5, window_bounds = array<i64: 8, 16>}, {pipeline_mode = #tpu.pipeline_mode<synchronous>, transform_indices = @transform_6, window_bounds = array<i64: 1, 16>}, {pipeline_mode = #tpu.pipeline_mode<synchronous>, transform_indices = @transform_7, window_bounds = array<i64: 16, 8>}, {pipeline_mode = #tpu.pipeline_mode<synchronous>, transform_indices = @transform_8, window_bounds = array<i64: 1, 8>}, {pipeline_mode = #tpu.pipeline_mode<synchronous>, transform_indices = @transform_9, window_bounds = array<i64: 16, 8>}, {pipeline_mode = #tpu.pipeline_mode<synchronous>, transform_indices = @transform_10, window_bounds = array<i64: 1, 8>}, {transform_indices = @transform_11, window_bounds = array<i64: 1, 8, 8>}, {transform_indices = @transform_12, window_bounds = array<i64: 1, 8, 8>}, {transform_indices = @transform_13, window_bounds = array<i64: 1, 8, 8>}]} {
    %c0_i32 = arith.constant 0 : i32
    %0 = arith.cmpi eq, %arg0, %c0_i32 : i32
    %1 = arith.extui %0 : i1 to i32
    %c0_i32_0 = arith.constant 0 : i32
    %2 = arith.cmpi ne, %1, %c0_i32_0 : i32
    scf.if %2 {
      %c0_34 = arith.constant 0 : index
      %c0_35 = arith.constant 0 : index
      %c0_36 = arith.constant 0 : index
      %44 = vector.load %arg1[%c0_34, %c0_35, %c0_36] : memref<1x8x16xf32, #tpu.memory_space<vmem>>, vector<1x8x16xf32>
      %45 = vector.shape_cast %44 : vector<1x8x16xf32> to vector<8x16xf32>
      %c0_37 = arith.constant 0 : index
      %c0_38 = arith.constant 0 : index
      %46 = vector.load %arg4[%c0_37, %c0_38] : memref<16x16xf32, #tpu.memory_space<vmem>>, vector<16x16xf32>
      %cst_39 = arith.constant dense<0.000000e+00> : vector<8x16xf32>
      %47 = tpu.matmul %45, %46, %cst_39 {dimension_numbers = #tpu.dot_dimension_numbers<[1], [0], [0], [1], [0, 0, 1, 1], [], []>} : vector<8x16xf32>, vector<16x16xf32>, vector<8x16xf32> -> vector<8x16xf32>
      %c0_40 = arith.constant 0 : index
      %c0_41 = arith.constant 0 : index
      %48 = vector.load %arg5[%c0_40, %c0_41] : memref<1x16xf32, #tpu.memory_space<vmem>>, vector<1x16xf32>
      %49 = vector.broadcast %48 : vector<1x16xf32> to vector<8x16xf32>
      %50 = arith.addf %47, %49 : vector<8x16xf32>
      %51 = math.tanh %50 : vector<8x16xf32>
      %c0_42 = arith.constant 0 : index
      %c0_43 = arith.constant 0 : index
      %52 = vector.load %arg15[%c0_42, %c0_43] : memref<8x16xf32, #tpu.memory_space<vmem>>, vector<8x16xf32>
      tpu.vector_store %arg15[%c0_42, %c0_43], %51 {strides = array<i32>} : memref<8x16xf32, #tpu.memory_space<vmem>>, vector<8x16xf32>,
    } else {
    }
    %c0 = arith.constant 0 : index
    %c0_1 = arith.constant 0 : index
    %3 = vector.load %arg15[%c0, %c0_1] : memref<8x16xf32, #tpu.memory_space<vmem>>, vector<8x16xf32>
    %c0_2 = arith.constant 0 : index
    %c0_3 = arith.constant 0 : index
    %c0_4 = arith.constant 0 : index
    %4 = vector.load %arg2[%c0_2, %c0_3, %c0_4] : memref<1x8x8xf32, #tpu.memory_space<vmem>>, vector<1x8x8xf32>
    %5 = vector.shape_cast %4 : vector<1x8x8xf32> to vector<8x8xf32>
    %c0_5 = arith.constant 0 : index
    %c0_6 = arith.constant 0 : index
    %6 = vector.load %arg6[%c0_5, %c0_6] : memref<8x16xf32, #tpu.memory_space<vmem>>, vector<8x16xf32>
    %cst = arith.constant dense<0.000000e+00> : vector<8x16xf32>
    %7 = tpu.matmul %5, %6, %cst {dimension_numbers = #tpu.dot_dimension_numbers<[1], [0], [0], [1], [0, 0, 1, 1], [], []>} : vector<8x8xf32>, vector<8x16xf32>, vector<8x16xf32> -> vector<8x16xf32>
    %c0_7 = arith.constant 0 : index
    %c0_8 = arith.constant 0 : index
    %8 = vector.load %arg7[%c0_7, %c0_8] : memref<1x16xf32, #tpu.memory_space<vmem>>, vector<1x16xf32>
    %9 = vector.broadcast %8 : vector<1x16xf32> to vector<8x16xf32>
    %10 = arith.addf %7, %9 : vector<8x16xf32>
    %11 = math.tanh %10 : vector<8x16xf32>
    %12 = arith.addf %3, %11 : vector<8x16xf32>
    %c0_9 = arith.constant 0 : index
    %c0_10 = arith.constant 0 : index
    %13 = vector.load %arg8[%c0_9, %c0_10] : memref<16x8xf32, #tpu.memory_space<vmem>>, vector<16x8xf32>
    %cst_11 = arith.constant dense<0.000000e+00> : vector<8x8xf32>
    %14 = tpu.matmul %12, %13, %cst_11 {dimension_numbers = #tpu.dot_dimension_numbers<[1], [0], [0], [1], [0, 0, 1, 1], [], []>} : vector<8x16xf32>, vector<16x8xf32>, vector<8x8xf32> -> vector<8x8xf32>
    %c0_12 = arith.constant 0 : index
    %c0_13 = arith.constant 0 : index
    %15 = vector.load %arg9[%c0_12, %c0_13] : memref<1x8xf32, #tpu.memory_space<vmem>>, vector<1x8xf32>
    %16 = vector.broadcast %15 : vector<1x8xf32> to vector<8x8xf32>
    %17 = arith.addf %14, %16 : vector<8x8xf32>
    %cst_14 = arith.constant 0.000000e+00 : f32
    %18 = vector.broadcast %cst_14 : f32 to vector<8x16xf32>
    %19 = arith.mulf %18, %12 : vector<8x16xf32>
    %cst_15 = arith.constant 1.000000e+00 : f32
    %20 = vector.broadcast %cst_15 : f32 to vector<8x16xf32>
    %21 = arith.mulf %20, %3 : vector<8x16xf32>
    %22 = arith.addf %19, %21 : vector<8x16xf32>
    %c0_16 = arith.constant 0 : index
    %c0_17 = arith.constant 0 : index
    %23 = vector.load %arg10[%c0_16, %c0_17] : memref<16x8xf32, #tpu.memory_space<vmem>>, vector<16x8xf32>
    %cst_18 = arith.constant dense<0.000000e+00> : vector<8x8xf32>
    %24 = tpu.matmul %22, %23, %cst_18 {dimension_numbers = #tpu.dot_dimension_numbers<[1], [0], [0], [1], [0, 0, 1, 1], [], []>} : vector<8x16xf32>, vector<16x8xf32>, vector<8x8xf32> -> vector<8x8xf32>
    %c0_19 = arith.constant 0 : index
    %c0_20 = arith.constant 0 : index
    %25 = vector.load %arg11[%c0_19, %c0_20] : memref<1x8xf32, #tpu.memory_space<vmem>>, vector<1x8xf32>
    %26 = vector.broadcast %25 : vector<1x8xf32> to vector<8x8xf32>
    %27 = arith.addf %24, %26 : vector<8x8xf32>
    %c0_21 = arith.constant 0 : index
    %c0_22 = arith.constant 0 : index
    %c0_23 = arith.constant 0 : index
    %28 = vector.load %arg3[%c0_21, %c0_22, %c0_23] : memref<1x8x8xf32, #tpu.memory_space<vmem>>, vector<1x8x8xf32>
    %29 = vector.shape_cast %28 : vector<1x8x8xf32> to vector<8x8xf32>
    %cst_24 = arith.constant 5.000000e-01 : f32
    %30 = vector.broadcast %cst_24 : f32 to vector<8x8xf32>
    %31 = arith.mulf %30, %27 : vector<8x8xf32>
    %32 = math.exp %31 : vector<8x8xf32>
    %33 = arith.mulf %29, %32 : vector<8x8xf32>
    %34 = arith.addf %33, %17 : vector<8x8xf32>
    %c0_25 = arith.constant 0 : index
    %c0_26 = arith.constant 0 : index
    %c0_27 = arith.constant 0 : index
    %35 = vector.load %arg12[%c0_25, %c0_26, %c0_27] : memref<1x8x8xf32, #tpu.memory_space<vmem>>, vector<1x8x8xf32>
    %36 = vector.shape_cast %35 : vector<1x8x8xf32> to vector<8x8xf32>
    %37 = vector.shape_cast %17 : vector<8x8xf32> to vector<1x8x8xf32>
    tpu.vector_store %arg12[%c0_25, %c0_26, %c0_27], %37 {strides = array<i32>} : memref<1x8x8xf32, #tpu.memory_space<vmem>>, vector<1x8x8xf32>,
    %c0_28 = arith.constant 0 : index
    %c0_29 = arith.constant 0 : index
    %c0_30 = arith.constant 0 : index
    %38 = vector.load %arg13[%c0_28, %c0_29, %c0_30] : memref<1x8x8xf32, #tpu.memory_space<vmem>>, vector<1x8x8xf32>
    %39 = vector.shape_cast %38 : vector<1x8x8xf32> to vector<8x8xf32>
    %40 = vector.shape_cast %27 : vector<8x8xf32> to vector<1x8x8xf32>
    tpu.vector_store %arg13[%c0_28, %c0_29, %c0_30], %40 {strides = array<i32>} : memref<1x8x8xf32, #tpu.memory_space<vmem>>, vector<1x8x8xf32>,
    %c0_31 = arith.constant 0 : index
    %c0_32 = arith.constant 0 : index
    %c0_33 = arith.constant 0 : index
    %41 = vector.load %arg14[%c0_31, %c0_32, %c0_33] : memref<1x8x8xf32, #tpu.memory_space<vmem>>, vector<1x8x8xf32>
    %42 = vector.shape_cast %41 : vector<1x8x8xf32> to vector<8x8xf32>
    %43 = vector.shape_cast %34 : vector<8x8xf32> to vector<1x8x8xf32>
    tpu.vector_store %arg14[%c0_31, %c0_32, %c0_33], %43 {strides = array<i32>} : memref<1x8x8xf32, #tpu.memory_space<vmem>>, vector<1x8x8xf32>,
    return
  }
  func.func @transform_0(%arg0: i32) -> (i32, i32, i32) {
    %c0_i32 = arith.constant 0 : i32
    %c0_i32_0 = arith.constant 0 : i32
    %c0_i32_1 = arith.constant 0 : i32
    %c0_i32_2 = arith.constant 0 : i32
    return %c0_i32, %c0_i32_0, %c0_i32_1 : i32, i32, i32
  }
  func.func @transform_1(%arg0: i32) -> (i32, i32, i32) {
    %c0_i32 = arith.constant 0 : i32
    %c0_i32_0 = arith.constant 0 : i32
    %c0_i32_1 = arith.constant 0 : i32
    return %arg0, %c0_i32, %c0_i32_0 : i32, i32, i32
  }
  func.func @transform_2(%arg0: i32) -> (i32, i32, i32) {
    %c0_i32 = arith.constant 0 : i32
    %c0_i32_0 = arith.constant 0 : i32
    %c0_i32_1 = arith.constant 0 : i32
    return %arg0, %c0_i32, %c0_i32_0 : i32, i32, i32
  }
  func.func @transform_3(%arg0: i32) -> (i32, i32) {
    %c0_i32 = arith.constant 0 : i32
    %c0_i32_0 = arith.constant 0 : i32
    %c0_i32_1 = arith.constant 0 : i32
    return %c0_i32, %c0_i32_0 : i32, i32
  }
  func.func @transform_4(%arg0: i32) -> (i32, i32) {
    %c0_i32 = arith.constant 0 : i32
    %c0_i32_0 = arith.constant 0 : i32
    %c0_i32_1 = arith.constant 0 : i32
    return %c0_i32, %c0_i32_0 : i32, i32
  }
  func.func @transform_5(%arg0: i32) -> (i32, i32) {
    %c0_i32 = arith.constant 0 : i32
    %c0_i32_0 = arith.constant 0 : i32
    %c0_i32_1 = arith.constant 0 : i32
    return %c0_i32, %c0_i32_0 : i32, i32
  }
  func.func @transform_6(%arg0: i32) -> (i32, i32) {
    %c0_i32 = arith.constant 0 : i32
    %c0_i32_0 = arith.constant 0 : i32
    %c0_i32_1 = arith.constant 0 : i32
    return %c0_i32, %c0_i32_0 : i32, i32
  }
  func.func @transform_7(%arg0: i32) -> (i32, i32) {
    %c0_i32 = arith.constant 0 : i32
    %c0_i32_0 = arith.constant 0 : i32
    %c0_i32_1 = arith.constant 0 : i32
    return %c0_i32, %c0_i32_0 : i32, i32
  }
  func.func @transform_8(%arg0: i32) -> (i32, i32) {
    %c0_i32 = arith.constant 0 : i32
    %c0_i32_0 = arith.constant 0 : i32
    %c0_i32_1 = arith.constant 0 : i32
    return %c0_i32, %c0_i32_0 : i32, i32
  }
  func.func @transform_9(%arg0: i32) -> (i32, i32) {
    %c0_i32 = arith.constant 0 : i32
    %c0_i32_0 = arith.constant 0 : i32
    %c0_i32_1 = arith.constant 0 : i32
    return %c0_i32, %c0_i32_0 : i32, i32
  }
  func.func @transform_10(%arg0: i32) -> (i32, i32) {
    %c0_i32 = arith.constant 0 : i32
    %c0_i32_0 = arith.constant 0 : i32
    %c0_i32_1 = arith.constant 0 : i32
    return %c0_i32, %c0_i32_0 : i32, i32
  }
  func.func @transform_11(%arg0: i32) -> (i32, i32, i32) {
    %c0_i32 = arith.constant 0 : i32
    %c0_i32_0 = arith.constant 0 : i32
    %c0_i32_1 = arith.constant 0 : i32
    return %arg0, %c0_i32, %c0_i32_0 : i32, i32, i32
  }
  func.func @transform_12(%arg0: i32) -> (i32, i32, i32) {
    %c0_i32 = arith.constant 0 : i32
    %c0_i32_0 = arith.constant 0 : i32
    %c0_i32_1 = arith.constant 0 : i32
    return %arg0, %c0_i32, %c0_i32_0 : i32, i32, i32
  }
  func.func @transform_13(%arg0: i32) -> (i32, i32, i32) {
    %c0_i32 = arith.constant 0 : i32
    %c0_i32_0 = arith.constant 0 : i32
    %c0_i32_1 = arith.constant 0 : i32
    return %arg0, %c0_i32, %c0_i32_0 : i32, i32, i32
  }
}

module attributes {stable_mosaic.version = 11 : i64} {
  func.func @_node_encode_kernel(%arg0: i32, %arg1: memref<1x16x8xf32, #tpu.memory_space<vmem>>, %arg2: memref<1x16x8xf32, #tpu.memory_space<vmem>>, %arg3: memref<16x16xf32, #tpu.memory_space<vmem>>, %arg4: memref<1x16x8xf32, #tpu.memory_space<vmem>>, %arg5: memref<8x32xf32, #tpu.memory_space<vmem>>, %arg6: memref<2x16xf32, #tpu.memory_space<vmem>>, %arg7: memref<2x16xf32, #tpu.memory_space<vmem>>, %arg8: memref<8x32xf32, #tpu.memory_space<vmem>>, %arg9: memref<2x16xf32, #tpu.memory_space<vmem>>, %arg10: memref<2x16xf32, #tpu.memory_space<vmem>>, %arg11: memref<16x16xf32, #tpu.memory_space<vmem>>, %arg12: memref<2x8xf32, #tpu.memory_space<vmem>>, %arg13: memref<2x8xf32, #tpu.memory_space<vmem>>, %arg14: memref<16x16xf32, #tpu.memory_space<vmem>>, %arg15: memref<2x8xf32, #tpu.memory_space<vmem>>, %arg16: memref<2x8xf32, #tpu.memory_space<vmem>>, %arg17: memref<1x16x8xf32, #tpu.memory_space<vmem>>, %arg18: memref<1x16x8xf32, #tpu.memory_space<vmem>>, %arg19: memref<1x16x8xf32, #tpu.memory_space<vmem>>, %arg20: memref<16x16xf32, #tpu.memory_space<vmem>>) attributes {dimension_semantics = [#tpu.dimension_semantics<arbitrary>], iteration_bounds = array<i64: 2>, scalar_prefetch = 0 : i64, scratch_operands = 1 : i64, tpu.core_type = #tpu.core_type<tc>, window_params = [{pipeline_mode = #tpu.pipeline_mode<synchronous>, transform_indices = @transform_0, window_bounds = array<i64: 1, 16, 8>}, {transform_indices = @transform_1, window_bounds = array<i64: 1, 16, 8>}, {pipeline_mode = #tpu.pipeline_mode<synchronous>, transform_indices = @transform_2, window_bounds = array<i64: 16, 16>}, {transform_indices = @transform_3, window_bounds = array<i64: 1, 16, 8>}, {pipeline_mode = #tpu.pipeline_mode<synchronous>, transform_indices = @transform_4, window_bounds = array<i64: 8, 32>}, {pipeline_mode = #tpu.pipeline_mode<synchronous>, transform_indices = @transform_5, window_bounds = array<i64: 2, 16>}, {pipeline_mode = #tpu.pipeline_mode<synchronous>, transform_indices = @transform_6, window_bounds = array<i64: 2, 16>}, {pipeline_mode = #tpu.pipeline_mode<synchronous>, transform_indices = @transform_7, window_bounds = array<i64: 8, 32>}, {pipeline_mode = #tpu.pipeline_mode<synchronous>, transform_indices = @transform_8, window_bounds = array<i64: 2, 16>}, {pipeline_mode = #tpu.pipeline_mode<synchronous>, transform_indices = @transform_9, window_bounds = array<i64: 2, 16>}, {pipeline_mode = #tpu.pipeline_mode<synchronous>, transform_indices = @transform_10, window_bounds = array<i64: 16, 16>}, {pipeline_mode = #tpu.pipeline_mode<synchronous>, transform_indices = @transform_11, window_bounds = array<i64: 2, 8>}, {pipeline_mode = #tpu.pipeline_mode<synchronous>, transform_indices = @transform_12, window_bounds = array<i64: 2, 8>}, {pipeline_mode = #tpu.pipeline_mode<synchronous>, transform_indices = @transform_13, window_bounds = array<i64: 16, 16>}, {pipeline_mode = #tpu.pipeline_mode<synchronous>, transform_indices = @transform_14, window_bounds = array<i64: 2, 8>}, {pipeline_mode = #tpu.pipeline_mode<synchronous>, transform_indices = @transform_15, window_bounds = array<i64: 2, 8>}, {transform_indices = @transform_16, window_bounds = array<i64: 1, 16, 8>}, {transform_indices = @transform_17, window_bounds = array<i64: 1, 16, 8>}, {transform_indices = @transform_18, window_bounds = array<i64: 1, 16, 8>}]} {
    %c0 = arith.constant 0 : index
    %c0_0 = arith.constant 0 : index
    %0 = vector.load %arg3[%c0, %c0_0] : memref<16x16xf32, #tpu.memory_space<vmem>>, vector<16x16xf32>
    %cst = arith.constant 0.000000e+00 : f32
    %1 = vector.broadcast %cst : f32 to vector<16x16xf32>
    %2 = arith.cmpf ogt, %0, %1 : vector<16x16xf32>
    %cst_1 = arith.constant 0.000000e+00 : f32
    %cst_2 = arith.constant -1.000000e+09 : f32
    %3 = vector.broadcast %cst_1 : f32 to vector<16x16xf32>
    %4 = vector.broadcast %cst_2 : f32 to vector<16x16xf32>
    %5 = arith.select %2, %3, %4 : vector<16x16xi1>, vector<16x16xf32>
    %c0_i32 = arith.constant 0 : i32
    %6 = arith.cmpi eq, %arg0, %c0_i32 : i32
    %7 = arith.extui %6 : i1 to i32
    %c0_i32_3 = arith.constant 0 : i32
    %8 = arith.cmpi ne, %7, %c0_i32_3 : i32
    scf.if %8 {
      %c0_94 = arith.constant 0 : index
      %c0_95 = arith.constant 0 : index
      %c0_96 = arith.constant 0 : index
      %225 = vector.load %arg1[%c0_94, %c0_95, %c0_96] : memref<1x16x8xf32, #tpu.memory_space<vmem>>, vector<1x16x8xf32>
      %226 = vector.shape_cast %225 : vector<1x16x8xf32> to vector<16x8xf32>
      %c0_97 = arith.constant 0 : index
      %c0_98 = arith.constant 0 : index
      %227 = vector.load %arg5[%c0_97, %c0_98] : memref<8x32xf32, #tpu.memory_space<vmem>>, vector<8x32xf32>
      %c0_99 = arith.constant 0 : index
      %c0_100 = arith.constant 0 : index
      %228 = vector.load %arg6[%c0_99, %c0_100] : memref<2x16xf32, #tpu.memory_space<vmem>>, vector<2x16xf32>
      %c0_101 = arith.constant 0 : index
      %c0_102 = arith.constant 0 : index
      %229 = vector.load %arg7[%c0_101, %c0_102] : memref<2x16xf32, #tpu.memory_space<vmem>>, vector<2x16xf32>
      %cst_103 = arith.constant dense<0.000000e+00> : vector<16x32xf32>
      %230 = tpu.matmul %226, %227, %cst_103 {dimension_numbers = #tpu.dot_dimension_numbers<[1], [0], [0], [1], [0, 0, 1, 1], [], []>} : vector<16x8xf32>, vector<8x32xf32>, vector<16x32xf32> -> vector<16x32xf32>
      %cst_104 = arith.constant 0.000000e+00 : f32
      %231 = vector.broadcast %cst_104 : f32 to vector<16x16xf32>
      %232 = vector.extract_strided_slice %230 {offsets = [0, 0], sizes = [16, 16], strides = [1, 1]} : vector<16x32xf32> to vector<16x16xf32>
      %233 = vector.extract_strided_slice %228 {offsets = [0, 0], sizes = [1, 16], strides = [1, 1]} : vector<2x16xf32> to vector<1x16xf32>
      %234 = vector.broadcast %233 : vector<1x16xf32> to vector<16x16xf32>
      %235 = arith.mulf %232, %234 : vector<16x16xf32>
      %cst_105 = arith.constant dense<0.000000e+00> : vector<16xf32>
      %236 = vector.multi_reduction <add>, %235, %cst_105 [1] : vector<16x16xf32> to vector<16xf32>
      %237 = vector.shape_cast %236 : vector<16xf32> to vector<16x1xf32>
      %238 = vector.extract_strided_slice %229 {offsets = [0, 0], sizes = [1, 16], strides = [1, 1]} : vector<2x16xf32> to vector<1x16xf32>
      %cst_106 = arith.constant dense<0.000000e+00> : vector<1x16xf32>
      %239 = tpu.matmul %238, %232, %cst_106 {dimension_numbers = #tpu.dot_dimension_numbers<[1], [1], [0], [0], [0, 0, 1, 0], [], []>} : vector<1x16xf32>, vector<16x16xf32>, vector<1x16xf32> -> vector<1x16xf32>
      %240 = vector.broadcast %237 : vector<16x1xf32> to vector<16x16xf32>
      %241 = vector.broadcast %239 : vector<1x16xf32> to vector<16x16xf32>
      %242 = arith.addf %240, %241 : vector<16x16xf32>
      %cst_107 = arith.constant 0.000000e+00 : f32
      %243 = vector.broadcast %cst_107 : f32 to vector<16x16xf32>
      %244 = arith.cmpf ogt, %242, %243 : vector<16x16xf32>
      %cst_108 = arith.constant 2.000000e-01 : f32
      %245 = vector.broadcast %cst_108 : f32 to vector<16x16xf32>
      %246 = arith.mulf %245, %242 : vector<16x16xf32>
      %247 = arith.select %244, %242, %246 : vector<16x16xi1>, vector<16x16xf32>
      %248 = arith.addf %247, %5 : vector<16x16xf32>
      %cst_109 = arith.constant dense<0xFF800000> : vector<16xf32>
      %249 = vector.multi_reduction <maximumf>, %248, %cst_109 [1] : vector<16x16xf32> to vector<16xf32>
      %250 = vector.shape_cast %249 : vector<16xf32> to vector<16x1xf32>
      %251 = vector.broadcast %250 : vector<16x1xf32> to vector<16x16xf32>
      %252 = arith.subf %248, %251 : vector<16x16xf32>
      %253 = math.exp %252 : vector<16x16xf32>
      %cst_110 = arith.constant dense<0.000000e+00> : vector<16xf32>
      %254 = vector.multi_reduction <add>, %253, %cst_110 [1] : vector<16x16xf32> to vector<16xf32>
      %255 = vector.shape_cast %254 : vector<16xf32> to vector<16x1xf32>
      %256 = vector.broadcast %255 : vector<16x1xf32> to vector<16x16xf32>
      %257 = arith.divf %253, %256 : vector<16x16xf32>
      %cst_111 = arith.constant dense<0.000000e+00> : vector<16x16xf32>
      %258 = tpu.matmul %257, %232, %cst_111 {dimension_numbers = #tpu.dot_dimension_numbers<[1], [0], [0], [1], [0, 0, 1, 1], [], []>} : vector<16x16xf32>, vector<16x16xf32>, vector<16x16xf32> -> vector<16x16xf32>
      %259 = arith.addf %231, %258 : vector<16x16xf32>
      %260 = vector.extract_strided_slice %230 {offsets = [0, 16], sizes = [16, 16], strides = [1, 1]} : vector<16x32xf32> to vector<16x16xf32>
      %261 = vector.extract_strided_slice %228 {offsets = [1, 0], sizes = [1, 16], strides = [1, 1]} : vector<2x16xf32> to vector<1x16xf32>
      %262 = vector.broadcast %261 : vector<1x16xf32> to vector<16x16xf32>
      %263 = arith.mulf %260, %262 : vector<16x16xf32>
      %cst_112 = arith.constant dense<0.000000e+00> : vector<16xf32>
      %264 = vector.multi_reduction <add>, %263, %cst_112 [1] : vector<16x16xf32> to vector<16xf32>
      %265 = vector.shape_cast %264 : vector<16xf32> to vector<16x1xf32>
      %266 = vector.extract_strided_slice %229 {offsets = [1, 0], sizes = [1, 16], strides = [1, 1]} : vector<2x16xf32> to vector<1x16xf32>
      %cst_113 = arith.constant dense<0.000000e+00> : vector<1x16xf32>
      %267 = tpu.matmul %266, %260, %cst_113 {dimension_numbers = #tpu.dot_dimension_numbers<[1], [1], [0], [0], [0, 0, 1, 0], [], []>} : vector<1x16xf32>, vector<16x16xf32>, vector<1x16xf32> -> vector<1x16xf32>
      %268 = vector.broadcast %265 : vector<16x1xf32> to vector<16x16xf32>
      %269 = vector.broadcast %267 : vector<1x16xf32> to vector<16x16xf32>
      %270 = arith.addf %268, %269 : vector<16x16xf32>
      %cst_114 = arith.constant 0.000000e+00 : f32
      %271 = vector.broadcast %cst_114 : f32 to vector<16x16xf32>
      %272 = arith.cmpf ogt, %270, %271 : vector<16x16xf32>
      %cst_115 = arith.constant 2.000000e-01 : f32
      %273 = vector.broadcast %cst_115 : f32 to vector<16x16xf32>
      %274 = arith.mulf %273, %270 : vector<16x16xf32>
      %275 = arith.select %272, %270, %274 : vector<16x16xi1>, vector<16x16xf32>
      %276 = arith.addf %275, %5 : vector<16x16xf32>
      %cst_116 = arith.constant dense<0xFF800000> : vector<16xf32>
      %277 = vector.multi_reduction <maximumf>, %276, %cst_116 [1] : vector<16x16xf32> to vector<16xf32>
      %278 = vector.shape_cast %277 : vector<16xf32> to vector<16x1xf32>
      %279 = vector.broadcast %278 : vector<16x1xf32> to vector<16x16xf32>
      %280 = arith.subf %276, %279 : vector<16x16xf32>
      %281 = math.exp %280 : vector<16x16xf32>
      %cst_117 = arith.constant dense<0.000000e+00> : vector<16xf32>
      %282 = vector.multi_reduction <add>, %281, %cst_117 [1] : vector<16x16xf32> to vector<16xf32>
      %283 = vector.shape_cast %282 : vector<16xf32> to vector<16x1xf32>
      %284 = vector.broadcast %283 : vector<16x1xf32> to vector<16x16xf32>
      %285 = arith.divf %281, %284 : vector<16x16xf32>
      %cst_118 = arith.constant dense<0.000000e+00> : vector<16x16xf32>
      %286 = tpu.matmul %285, %260, %cst_118 {dimension_numbers = #tpu.dot_dimension_numbers<[1], [0], [0], [1], [0, 0, 1, 1], [], []>} : vector<16x16xf32>, vector<16x16xf32>, vector<16x16xf32> -> vector<16x16xf32>
      %287 = arith.addf %259, %286 : vector<16x16xf32>
      %cst_119 = arith.constant 5.000000e-01 : f32
      %288 = vector.broadcast %cst_119 : f32 to vector<16x16xf32>
      %289 = arith.mulf %287, %288 : vector<16x16xf32>
      %cst_120 = arith.constant 0.000000e+00 : f32
      %290 = vector.broadcast %cst_120 : f32 to vector<16x16xf32>
      %291 = arith.maximumf %289, %290 : vector<16x16xf32>
      %c0_121 = arith.constant 0 : index
      %c0_122 = arith.constant 0 : index
      %292 = vector.load %arg20[%c0_121, %c0_122] : memref<16x16xf32, #tpu.memory_space<vmem>>, vector<16x16xf32>
      tpu.vector_store %arg20[%c0_121, %c0_122], %291 {strides = array<i32>} : memref<16x16xf32, #tpu.memory_space<vmem>>, vector<16x16xf32>,
    } else {
    }
    %c0_4 = arith.constant 0 : index
    %c0_5 = arith.constant 0 : index
    %9 = vector.load %arg20[%c0_4, %c0_5] : memref<16x16xf32, #tpu.memory_space<vmem>>, vector<16x16xf32>
    %c0_6 = arith.constant 0 : index
    %c0_7 = arith.constant 0 : index
    %c0_8 = arith.constant 0 : index
    %10 = vector.load %arg2[%c0_6, %c0_7, %c0_8] : memref<1x16x8xf32, #tpu.memory_space<vmem>>, vector<1x16x8xf32>
    %11 = vector.shape_cast %10 : vector<1x16x8xf32> to vector<16x8xf32>
    %c0_9 = arith.constant 0 : index
    %c0_10 = arith.constant 0 : index
    %12 = vector.load %arg8[%c0_9, %c0_10] : memref<8x32xf32, #tpu.memory_space<vmem>>, vector<8x32xf32>
    %c0_11 = arith.constant 0 : index
    %c0_12 = arith.constant 0 : index
    %13 = vector.load %arg9[%c0_11, %c0_12] : memref<2x16xf32, #tpu.memory_space<vmem>>, vector<2x16xf32>
    %c0_13 = arith.constant 0 : index
    %c0_14 = arith.constant 0 : index
    %14 = vector.load %arg10[%c0_13, %c0_14] : memref<2x16xf32, #tpu.memory_space<vmem>>, vector<2x16xf32>
    %cst_15 = arith.constant dense<0.000000e+00> : vector<16x32xf32>
    %15 = tpu.matmul %11, %12, %cst_15 {dimension_numbers = #tpu.dot_dimension_numbers<[1], [0], [0], [1], [0, 0, 1, 1], [], []>} : vector<16x8xf32>, vector<8x32xf32>, vector<16x32xf32> -> vector<16x32xf32>
    %cst_16 = arith.constant 0.000000e+00 : f32
    %16 = vector.broadcast %cst_16 : f32 to vector<16x16xf32>
    %17 = vector.extract_strided_slice %15 {offsets = [0, 0], sizes = [16, 16], strides = [1, 1]} : vector<16x32xf32> to vector<16x16xf32>
    %18 = vector.extract_strided_slice %13 {offsets = [0, 0], sizes = [1, 16], strides = [1, 1]} : vector<2x16xf32> to vector<1x16xf32>
    %19 = vector.broadcast %18 : vector<1x16xf32> to vector<16x16xf32>
    %20 = arith.mulf %17, %19 : vector<16x16xf32>
    %cst_17 = arith.constant dense<0.000000e+00> : vector<16xf32>
    %21 = vector.multi_reduction <add>, %20, %cst_17 [1] : vector<16x16xf32> to vector<16xf32>
    %22 = vector.shape_cast %21 : vector<16xf32> to vector<16x1xf32>
    %23 = vector.extract_strided_slice %14 {offsets = [0, 0], sizes = [1, 16], strides = [1, 1]} : vector<2x16xf32> to vector<1x16xf32>
    %cst_18 = arith.constant dense<0.000000e+00> : vector<1x16xf32>
    %24 = tpu.matmul %23, %17, %cst_18 {dimension_numbers = #tpu.dot_dimension_numbers<[1], [1], [0], [0], [0, 0, 1, 0], [], []>} : vector<1x16xf32>, vector<16x16xf32>, vector<1x16xf32> -> vector<1x16xf32>
    %25 = vector.broadcast %22 : vector<16x1xf32> to vector<16x16xf32>
    %26 = vector.broadcast %24 : vector<1x16xf32> to vector<16x16xf32>
    %27 = arith.addf %25, %26 : vector<16x16xf32>
    %cst_19 = arith.constant 0.000000e+00 : f32
    %28 = vector.broadcast %cst_19 : f32 to vector<16x16xf32>
    %29 = arith.cmpf ogt, %27, %28 : vector<16x16xf32>
    %cst_20 = arith.constant 2.000000e-01 : f32
    %30 = vector.broadcast %cst_20 : f32 to vector<16x16xf32>
    %31 = arith.mulf %30, %27 : vector<16x16xf32>
    %32 = arith.select %29, %27, %31 : vector<16x16xi1>, vector<16x16xf32>
    %33 = arith.addf %32, %5 : vector<16x16xf32>
    %cst_21 = arith.constant dense<0xFF800000> : vector<16xf32>
    %34 = vector.multi_reduction <maximumf>, %33, %cst_21 [1] : vector<16x16xf32> to vector<16xf32>
    %35 = vector.shape_cast %34 : vector<16xf32> to vector<16x1xf32>
    %36 = vector.broadcast %35 : vector<16x1xf32> to vector<16x16xf32>
    %37 = arith.subf %33, %36 : vector<16x16xf32>
    %38 = math.exp %37 : vector<16x16xf32>
    %cst_22 = arith.constant dense<0.000000e+00> : vector<16xf32>
    %39 = vector.multi_reduction <add>, %38, %cst_22 [1] : vector<16x16xf32> to vector<16xf32>
    %40 = vector.shape_cast %39 : vector<16xf32> to vector<16x1xf32>
    %41 = vector.broadcast %40 : vector<16x1xf32> to vector<16x16xf32>
    %42 = arith.divf %38, %41 : vector<16x16xf32>
    %cst_23 = arith.constant dense<0.000000e+00> : vector<16x16xf32>
    %43 = tpu.matmul %42, %17, %cst_23 {dimension_numbers = #tpu.dot_dimension_numbers<[1], [0], [0], [1], [0, 0, 1, 1], [], []>} : vector<16x16xf32>, vector<16x16xf32>, vector<16x16xf32> -> vector<16x16xf32>
    %44 = arith.addf %16, %43 : vector<16x16xf32>
    %45 = vector.extract_strided_slice %15 {offsets = [0, 16], sizes = [16, 16], strides = [1, 1]} : vector<16x32xf32> to vector<16x16xf32>
    %46 = vector.extract_strided_slice %13 {offsets = [1, 0], sizes = [1, 16], strides = [1, 1]} : vector<2x16xf32> to vector<1x16xf32>
    %47 = vector.broadcast %46 : vector<1x16xf32> to vector<16x16xf32>
    %48 = arith.mulf %45, %47 : vector<16x16xf32>
    %cst_24 = arith.constant dense<0.000000e+00> : vector<16xf32>
    %49 = vector.multi_reduction <add>, %48, %cst_24 [1] : vector<16x16xf32> to vector<16xf32>
    %50 = vector.shape_cast %49 : vector<16xf32> to vector<16x1xf32>
    %51 = vector.extract_strided_slice %14 {offsets = [1, 0], sizes = [1, 16], strides = [1, 1]} : vector<2x16xf32> to vector<1x16xf32>
    %cst_25 = arith.constant dense<0.000000e+00> : vector<1x16xf32>
    %52 = tpu.matmul %51, %45, %cst_25 {dimension_numbers = #tpu.dot_dimension_numbers<[1], [1], [0], [0], [0, 0, 1, 0], [], []>} : vector<1x16xf32>, vector<16x16xf32>, vector<1x16xf32> -> vector<1x16xf32>
    %53 = vector.broadcast %50 : vector<16x1xf32> to vector<16x16xf32>
    %54 = vector.broadcast %52 : vector<1x16xf32> to vector<16x16xf32>
    %55 = arith.addf %53, %54 : vector<16x16xf32>
    %cst_26 = arith.constant 0.000000e+00 : f32
    %56 = vector.broadcast %cst_26 : f32 to vector<16x16xf32>
    %57 = arith.cmpf ogt, %55, %56 : vector<16x16xf32>
    %cst_27 = arith.constant 2.000000e-01 : f32
    %58 = vector.broadcast %cst_27 : f32 to vector<16x16xf32>
    %59 = arith.mulf %58, %55 : vector<16x16xf32>
    %60 = arith.select %57, %55, %59 : vector<16x16xi1>, vector<16x16xf32>
    %61 = arith.addf %60, %5 : vector<16x16xf32>
    %cst_28 = arith.constant dense<0xFF800000> : vector<16xf32>
    %62 = vector.multi_reduction <maximumf>, %61, %cst_28 [1] : vector<16x16xf32> to vector<16xf32>
    %63 = vector.shape_cast %62 : vector<16xf32> to vector<16x1xf32>
    %64 = vector.broadcast %63 : vector<16x1xf32> to vector<16x16xf32>
    %65 = arith.subf %61, %64 : vector<16x16xf32>
    %66 = math.exp %65 : vector<16x16xf32>
    %cst_29 = arith.constant dense<0.000000e+00> : vector<16xf32>
    %67 = vector.multi_reduction <add>, %66, %cst_29 [1] : vector<16x16xf32> to vector<16xf32>
    %68 = vector.shape_cast %67 : vector<16xf32> to vector<16x1xf32>
    %69 = vector.broadcast %68 : vector<16x1xf32> to vector<16x16xf32>
    %70 = arith.divf %66, %69 : vector<16x16xf32>
    %cst_30 = arith.constant dense<0.000000e+00> : vector<16x16xf32>
    %71 = tpu.matmul %70, %45, %cst_30 {dimension_numbers = #tpu.dot_dimension_numbers<[1], [0], [0], [1], [0, 0, 1, 1], [], []>} : vector<16x16xf32>, vector<16x16xf32>, vector<16x16xf32> -> vector<16x16xf32>
    %72 = arith.addf %44, %71 : vector<16x16xf32>
    %cst_31 = arith.constant 5.000000e-01 : f32
    %73 = vector.broadcast %cst_31 : f32 to vector<16x16xf32>
    %74 = arith.mulf %72, %73 : vector<16x16xf32>
    %cst_32 = arith.constant 0.000000e+00 : f32
    %75 = vector.broadcast %cst_32 : f32 to vector<16x16xf32>
    %76 = arith.maximumf %74, %75 : vector<16x16xf32>
    %77 = arith.addf %9, %76 : vector<16x16xf32>
    %c0_33 = arith.constant 0 : index
    %c0_34 = arith.constant 0 : index
    %78 = vector.load %arg11[%c0_33, %c0_34] : memref<16x16xf32, #tpu.memory_space<vmem>>, vector<16x16xf32>
    %c0_35 = arith.constant 0 : index
    %c0_36 = arith.constant 0 : index
    %79 = vector.load %arg12[%c0_35, %c0_36] : memref<2x8xf32, #tpu.memory_space<vmem>>, vector<2x8xf32>
    %c0_37 = arith.constant 0 : index
    %c0_38 = arith.constant 0 : index
    %80 = vector.load %arg13[%c0_37, %c0_38] : memref<2x8xf32, #tpu.memory_space<vmem>>, vector<2x8xf32>
    %cst_39 = arith.constant dense<0.000000e+00> : vector<16x16xf32>
    %81 = tpu.matmul %77, %78, %cst_39 {dimension_numbers = #tpu.dot_dimension_numbers<[1], [0], [0], [1], [0, 0, 1, 1], [], []>} : vector<16x16xf32>, vector<16x16xf32>, vector<16x16xf32> -> vector<16x16xf32>
    %cst_40 = arith.constant 0.000000e+00 : f32
    %82 = vector.broadcast %cst_40 : f32 to vector<16x8xf32>
    %83 = vector.extract_strided_slice %81 {offsets = [0, 0], sizes = [16, 8], strides = [1, 1]} : vector<16x16xf32> to vector<16x8xf32>
    %84 = vector.extract_strided_slice %79 {offsets = [0, 0], sizes = [1, 8], strides = [1, 1]} : vector<2x8xf32> to vector<1x8xf32>
    %85 = vector.broadcast %84 : vector<1x8xf32> to vector<16x8xf32>
    %86 = arith.mulf %83, %85 : vector<16x8xf32>
    %cst_41 = arith.constant dense<0.000000e+00> : vector<16xf32>
    %87 = vector.multi_reduction <add>, %86, %cst_41 [1] : vector<16x8xf32> to vector<16xf32>
    %88 = vector.shape_cast %87 : vector<16xf32> to vector<16x1xf32>
    %89 = vector.extract_strided_slice %80 {offsets = [0, 0], sizes = [1, 8], strides = [1, 1]} : vector<2x8xf32> to vector<1x8xf32>
    %cst_42 = arith.constant dense<0.000000e+00> : vector<1x16xf32>
    %90 = tpu.matmul %89, %83, %cst_42 {dimension_numbers = #tpu.dot_dimension_numbers<[1], [1], [0], [0], [0, 0, 1, 0], [], []>} : vector<1x8xf32>, vector<16x8xf32>, vector<1x16xf32> -> vector<1x16xf32>
    %91 = vector.broadcast %88 : vector<16x1xf32> to vector<16x16xf32>
    %92 = vector.broadcast %90 : vector<1x16xf32> to vector<16x16xf32>
    %93 = arith.addf %91, %92 : vector<16x16xf32>
    %cst_43 = arith.constant 0.000000e+00 : f32
    %94 = vector.broadcast %cst_43 : f32 to vector<16x16xf32>
    %95 = arith.cmpf ogt, %93, %94 : vector<16x16xf32>
    %cst_44 = arith.constant 2.000000e-01 : f32
    %96 = vector.broadcast %cst_44 : f32 to vector<16x16xf32>
    %97 = arith.mulf %96, %93 : vector<16x16xf32>
    %98 = arith.select %95, %93, %97 : vector<16x16xi1>, vector<16x16xf32>
    %99 = arith.addf %98, %5 : vector<16x16xf32>
    %cst_45 = arith.constant dense<0xFF800000> : vector<16xf32>
    %100 = vector.multi_reduction <maximumf>, %99, %cst_45 [1] : vector<16x16xf32> to vector<16xf32>
    %101 = vector.shape_cast %100 : vector<16xf32> to vector<16x1xf32>
    %102 = vector.broadcast %101 : vector<16x1xf32> to vector<16x16xf32>
    %103 = arith.subf %99, %102 : vector<16x16xf32>
    %104 = math.exp %103 : vector<16x16xf32>
    %cst_46 = arith.constant dense<0.000000e+00> : vector<16xf32>
    %105 = vector.multi_reduction <add>, %104, %cst_46 [1] : vector<16x16xf32> to vector<16xf32>
    %106 = vector.shape_cast %105 : vector<16xf32> to vector<16x1xf32>
    %107 = vector.broadcast %106 : vector<16x1xf32> to vector<16x16xf32>
    %108 = arith.divf %104, %107 : vector<16x16xf32>
    %cst_47 = arith.constant dense<0.000000e+00> : vector<16x8xf32>
    %109 = tpu.matmul %108, %83, %cst_47 {dimension_numbers = #tpu.dot_dimension_numbers<[1], [0], [0], [1], [0, 0, 1, 1], [], []>} : vector<16x16xf32>, vector<16x8xf32>, vector<16x8xf32> -> vector<16x8xf32>
    %110 = arith.addf %82, %109 : vector<16x8xf32>
    %111 = vector.extract_strided_slice %81 {offsets = [0, 8], sizes = [16, 8], strides = [1, 1]} : vector<16x16xf32> to vector<16x8xf32>
    %112 = vector.extract_strided_slice %79 {offsets = [1, 0], sizes = [1, 8], strides = [1, 1]} : vector<2x8xf32> to vector<1x8xf32>
    %113 = vector.broadcast %112 : vector<1x8xf32> to vector<16x8xf32>
    %114 = arith.mulf %111, %113 : vector<16x8xf32>
    %cst_48 = arith.constant dense<0.000000e+00> : vector<16xf32>
    %115 = vector.multi_reduction <add>, %114, %cst_48 [1] : vector<16x8xf32> to vector<16xf32>
    %116 = vector.shape_cast %115 : vector<16xf32> to vector<16x1xf32>
    %117 = vector.extract_strided_slice %80 {offsets = [1, 0], sizes = [1, 8], strides = [1, 1]} : vector<2x8xf32> to vector<1x8xf32>
    %cst_49 = arith.constant dense<0.000000e+00> : vector<1x16xf32>
    %118 = tpu.matmul %117, %111, %cst_49 {dimension_numbers = #tpu.dot_dimension_numbers<[1], [1], [0], [0], [0, 0, 1, 0], [], []>} : vector<1x8xf32>, vector<16x8xf32>, vector<1x16xf32> -> vector<1x16xf32>
    %119 = vector.broadcast %116 : vector<16x1xf32> to vector<16x16xf32>
    %120 = vector.broadcast %118 : vector<1x16xf32> to vector<16x16xf32>
    %121 = arith.addf %119, %120 : vector<16x16xf32>
    %cst_50 = arith.constant 0.000000e+00 : f32
    %122 = vector.broadcast %cst_50 : f32 to vector<16x16xf32>
    %123 = arith.cmpf ogt, %121, %122 : vector<16x16xf32>
    %cst_51 = arith.constant 2.000000e-01 : f32
    %124 = vector.broadcast %cst_51 : f32 to vector<16x16xf32>
    %125 = arith.mulf %124, %121 : vector<16x16xf32>
    %126 = arith.select %123, %121, %125 : vector<16x16xi1>, vector<16x16xf32>
    %127 = arith.addf %126, %5 : vector<16x16xf32>
    %cst_52 = arith.constant dense<0xFF800000> : vector<16xf32>
    %128 = vector.multi_reduction <maximumf>, %127, %cst_52 [1] : vector<16x16xf32> to vector<16xf32>
    %129 = vector.shape_cast %128 : vector<16xf32> to vector<16x1xf32>
    %130 = vector.broadcast %129 : vector<16x1xf32> to vector<16x16xf32>
    %131 = arith.subf %127, %130 : vector<16x16xf32>
    %132 = math.exp %131 : vector<16x16xf32>
    %cst_53 = arith.constant dense<0.000000e+00> : vector<16xf32>
    %133 = vector.multi_reduction <add>, %132, %cst_53 [1] : vector<16x16xf32> to vector<16xf32>
    %134 = vector.shape_cast %133 : vector<16xf32> to vector<16x1xf32>
    %135 = vector.broadcast %134 : vector<16x1xf32> to vector<16x16xf32>
    %136 = arith.divf %132, %135 : vector<16x16xf32>
    %cst_54 = arith.constant dense<0.000000e+00> : vector<16x8xf32>
    %137 = tpu.matmul %136, %111, %cst_54 {dimension_numbers = #tpu.dot_dimension_numbers<[1], [0], [0], [1], [0, 0, 1, 1], [], []>} : vector<16x16xf32>, vector<16x8xf32>, vector<16x8xf32> -> vector<16x8xf32>
    %138 = arith.addf %110, %137 : vector<16x8xf32>
    %cst_55 = arith.constant 5.000000e-01 : f32
    %139 = vector.broadcast %cst_55 : f32 to vector<16x8xf32>
    %140 = arith.mulf %138, %139 : vector<16x8xf32>
    %cst_56 = arith.constant 0.000000e+00 : f32
    %141 = vector.broadcast %cst_56 : f32 to vector<16x16xf32>
    %142 = arith.mulf %141, %77 : vector<16x16xf32>
    %cst_57 = arith.constant 1.000000e+00 : f32
    %143 = vector.broadcast %cst_57 : f32 to vector<16x16xf32>
    %144 = arith.mulf %143, %9 : vector<16x16xf32>
    %145 = arith.addf %142, %144 : vector<16x16xf32>
    %c0_58 = arith.constant 0 : index
    %c0_59 = arith.constant 0 : index
    %146 = vector.load %arg14[%c0_58, %c0_59] : memref<16x16xf32, #tpu.memory_space<vmem>>, vector<16x16xf32>
    %c0_60 = arith.constant 0 : index
    %c0_61 = arith.constant 0 : index
    %147 = vector.load %arg15[%c0_60, %c0_61] : memref<2x8xf32, #tpu.memory_space<vmem>>, vector<2x8xf32>
    %c0_62 = arith.constant 0 : index
    %c0_63 = arith.constant 0 : index
    %148 = vector.load %arg16[%c0_62, %c0_63] : memref<2x8xf32, #tpu.memory_space<vmem>>, vector<2x8xf32>
    %cst_64 = arith.constant dense<0.000000e+00> : vector<16x16xf32>
    %149 = tpu.matmul %145, %146, %cst_64 {dimension_numbers = #tpu.dot_dimension_numbers<[1], [0], [0], [1], [0, 0, 1, 1], [], []>} : vector<16x16xf32>, vector<16x16xf32>, vector<16x16xf32> -> vector<16x16xf32>
    %cst_65 = arith.constant 0.000000e+00 : f32
    %150 = vector.broadcast %cst_65 : f32 to vector<16x8xf32>
    %151 = vector.extract_strided_slice %149 {offsets = [0, 0], sizes = [16, 8], strides = [1, 1]} : vector<16x16xf32> to vector<16x8xf32>
    %152 = vector.extract_strided_slice %147 {offsets = [0, 0], sizes = [1, 8], strides = [1, 1]} : vector<2x8xf32> to vector<1x8xf32>
    %153 = vector.broadcast %152 : vector<1x8xf32> to vector<16x8xf32>
    %154 = arith.mulf %151, %153 : vector<16x8xf32>
    %cst_66 = arith.constant dense<0.000000e+00> : vector<16xf32>
    %155 = vector.multi_reduction <add>, %154, %cst_66 [1] : vector<16x8xf32> to vector<16xf32>
    %156 = vector.shape_cast %155 : vector<16xf32> to vector<16x1xf32>
    %157 = vector.extract_strided_slice %148 {offsets = [0, 0], sizes = [1, 8], strides = [1, 1]} : vector<2x8xf32> to vector<1x8xf32>
    %cst_67 = arith.constant dense<0.000000e+00> : vector<1x16xf32>
    %158 = tpu.matmul %157, %151, %cst_67 {dimension_numbers = #tpu.dot_dimension_numbers<[1], [1], [0], [0], [0, 0, 1, 0], [], []>} : vector<1x8xf32>, vector<16x8xf32>, vector<1x16xf32> -> vector<1x16xf32>
    %159 = vector.broadcast %156 : vector<16x1xf32> to vector<16x16xf32>
    %160 = vector.broadcast %158 : vector<1x16xf32> to vector<16x16xf32>
    %161 = arith.addf %159, %160 : vector<16x16xf32>
    %cst_68 = arith.constant 0.000000e+00 : f32
    %162 = vector.broadcast %cst_68 : f32 to vector<16x16xf32>
    %163 = arith.cmpf ogt, %161, %162 : vector<16x16xf32>
    %cst_69 = arith.constant 2.000000e-01 : f32
    %164 = vector.broadcast %cst_69 : f32 to vector<16x16xf32>
    %165 = arith.mulf %164, %161 : vector<16x16xf32>
    %166 = arith.select %163, %161, %165 : vector<16x16xi1>, vector<16x16xf32>
    %167 = arith.addf %166, %5 : vector<16x16xf32>
    %cst_70 = arith.constant dense<0xFF800000> : vector<16xf32>
    %168 = vector.multi_reduction <maximumf>, %167, %cst_70 [1] : vector<16x16xf32> to vector<16xf32>
    %169 = vector.shape_cast %168 : vector<16xf32> to vector<16x1xf32>
    %170 = vector.broadcast %169 : vector<16x1xf32> to vector<16x16xf32>
    %171 = arith.subf %167, %170 : vector<16x16xf32>
    %172 = math.exp %171 : vector<16x16xf32>
    %cst_71 = arith.constant dense<0.000000e+00> : vector<16xf32>
    %173 = vector.multi_reduction <add>, %172, %cst_71 [1] : vector<16x16xf32> to vector<16xf32>
    %174 = vector.shape_cast %173 : vector<16xf32> to vector<16x1xf32>
    %175 = vector.broadcast %174 : vector<16x1xf32> to vector<16x16xf32>
    %176 = arith.divf %172, %175 : vector<16x16xf32>
    %cst_72 = arith.constant dense<0.000000e+00> : vector<16x8xf32>
    %177 = tpu.matmul %176, %151, %cst_72 {dimension_numbers = #tpu.dot_dimension_numbers<[1], [0], [0], [1], [0, 0, 1, 1], [], []>} : vector<16x16xf32>, vector<16x8xf32>, vector<16x8xf32> -> vector<16x8xf32>
    %178 = arith.addf %150, %177 : vector<16x8xf32>
    %179 = vector.extract_strided_slice %149 {offsets = [0, 8], sizes = [16, 8], strides = [1, 1]} : vector<16x16xf32> to vector<16x8xf32>
    %180 = vector.extract_strided_slice %147 {offsets = [1, 0], sizes = [1, 8], strides = [1, 1]} : vector<2x8xf32> to vector<1x8xf32>
    %181 = vector.broadcast %180 : vector<1x8xf32> to vector<16x8xf32>
    %182 = arith.mulf %179, %181 : vector<16x8xf32>
    %cst_73 = arith.constant dense<0.000000e+00> : vector<16xf32>
    %183 = vector.multi_reduction <add>, %182, %cst_73 [1] : vector<16x8xf32> to vector<16xf32>
    %184 = vector.shape_cast %183 : vector<16xf32> to vector<16x1xf32>
    %185 = vector.extract_strided_slice %148 {offsets = [1, 0], sizes = [1, 8], strides = [1, 1]} : vector<2x8xf32> to vector<1x8xf32>
    %cst_74 = arith.constant dense<0.000000e+00> : vector<1x16xf32>
    %186 = tpu.matmul %185, %179, %cst_74 {dimension_numbers = #tpu.dot_dimension_numbers<[1], [1], [0], [0], [0, 0, 1, 0], [], []>} : vector<1x8xf32>, vector<16x8xf32>, vector<1x16xf32> -> vector<1x16xf32>
    %187 = vector.broadcast %184 : vector<16x1xf32> to vector<16x16xf32>
    %188 = vector.broadcast %186 : vector<1x16xf32> to vector<16x16xf32>
    %189 = arith.addf %187, %188 : vector<16x16xf32>
    %cst_75 = arith.constant 0.000000e+00 : f32
    %190 = vector.broadcast %cst_75 : f32 to vector<16x16xf32>
    %191 = arith.cmpf ogt, %189, %190 : vector<16x16xf32>
    %cst_76 = arith.constant 2.000000e-01 : f32
    %192 = vector.broadcast %cst_76 : f32 to vector<16x16xf32>
    %193 = arith.mulf %192, %189 : vector<16x16xf32>
    %194 = arith.select %191, %189, %193 : vector<16x16xi1>, vector<16x16xf32>
    %195 = arith.addf %194, %5 : vector<16x16xf32>
    %cst_77 = arith.constant dense<0xFF800000> : vector<16xf32>
    %196 = vector.multi_reduction <maximumf>, %195, %cst_77 [1] : vector<16x16xf32> to vector<16xf32>
    %197 = vector.shape_cast %196 : vector<16xf32> to vector<16x1xf32>
    %198 = vector.broadcast %197 : vector<16x1xf32> to vector<16x16xf32>
    %199 = arith.subf %195, %198 : vector<16x16xf32>
    %200 = math.exp %199 : vector<16x16xf32>
    %cst_78 = arith.constant dense<0.000000e+00> : vector<16xf32>
    %201 = vector.multi_reduction <add>, %200, %cst_78 [1] : vector<16x16xf32> to vector<16xf32>
    %202 = vector.shape_cast %201 : vector<16xf32> to vector<16x1xf32>
    %203 = vector.broadcast %202 : vector<16x1xf32> to vector<16x16xf32>
    %204 = arith.divf %200, %203 : vector<16x16xf32>
    %cst_79 = arith.constant dense<0.000000e+00> : vector<16x8xf32>
    %205 = tpu.matmul %204, %179, %cst_79 {dimension_numbers = #tpu.dot_dimension_numbers<[1], [0], [0], [1], [0, 0, 1, 1], [], []>} : vector<16x16xf32>, vector<16x8xf32>, vector<16x8xf32> -> vector<16x8xf32>
    %206 = arith.addf %178, %205 : vector<16x8xf32>
    %cst_80 = arith.constant 5.000000e-01 : f32
    %207 = vector.broadcast %cst_80 : f32 to vector<16x8xf32>
    %208 = arith.mulf %206, %207 : vector<16x8xf32>
    %c0_81 = arith.constant 0 : index
    %c0_82 = arith.constant 0 : index
    %c0_83 = arith.constant 0 : index
    %209 = vector.load %arg4[%c0_81, %c0_82, %c0_83] : memref<1x16x8xf32, #tpu.memory_space<vmem>>, vector<1x16x8xf32>
    %210 = vector.shape_cast %209 : vector<1x16x8xf32> to vector<16x8xf32>
    %cst_84 = arith.constant 5.000000e-01 : f32
    %211 = vector.broadcast %cst_84 : f32 to vector<16x8xf32>
    %212 = arith.mulf %211, %208 : vector<16x8xf32>
    %213 = math.exp %212 : vector<16x8xf32>
    %214 = arith.mulf %210, %213 : vector<16x8xf32>
    %215 = arith.addf %214, %140 : vector<16x8xf32>
    %c0_85 = arith.constant 0 : index
    %c0_86 = arith.constant 0 : index
    %c0_87 = arith.constant 0 : index
    %216 = vector.load %arg17[%c0_85, %c0_86, %c0_87] : memref<1x16x8xf32, #tpu.memory_space<vmem>>, vector<1x16x8xf32>
    %217 = vector.shape_cast %216 : vector<1x16x8xf32> to vector<16x8xf32>
    %218 = vector.shape_cast %140 : vector<16x8xf32> to vector<1x16x8xf32>
    tpu.vector_store %arg17[%c0_85, %c0_86, %c0_87], %218 {strides = array<i32>} : memref<1x16x8xf32, #tpu.memory_space<vmem>>, vector<1x16x8xf32>,
    %c0_88 = arith.constant 0 : index
    %c0_89 = arith.constant 0 : index
    %c0_90 = arith.constant 0 : index
    %219 = vector.load %arg18[%c0_88, %c0_89, %c0_90] : memref<1x16x8xf32, #tpu.memory_space<vmem>>, vector<1x16x8xf32>
    %220 = vector.shape_cast %219 : vector<1x16x8xf32> to vector<16x8xf32>
    %221 = vector.shape_cast %208 : vector<16x8xf32> to vector<1x16x8xf32>
    tpu.vector_store %arg18[%c0_88, %c0_89, %c0_90], %221 {strides = array<i32>} : memref<1x16x8xf32, #tpu.memory_space<vmem>>, vector<1x16x8xf32>,
    %c0_91 = arith.constant 0 : index
    %c0_92 = arith.constant 0 : index
    %c0_93 = arith.constant 0 : index
    %222 = vector.load %arg19[%c0_91, %c0_92, %c0_93] : memref<1x16x8xf32, #tpu.memory_space<vmem>>, vector<1x16x8xf32>
    %223 = vector.shape_cast %222 : vector<1x16x8xf32> to vector<16x8xf32>
    %224 = vector.shape_cast %215 : vector<16x8xf32> to vector<1x16x8xf32>
    tpu.vector_store %arg19[%c0_91, %c0_92, %c0_93], %224 {strides = array<i32>} : memref<1x16x8xf32, #tpu.memory_space<vmem>>, vector<1x16x8xf32>,
    return
  }
  func.func @transform_0(%arg0: i32) -> (i32, i32, i32) {
    %c0_i32 = arith.constant 0 : i32
    %c0_i32_0 = arith.constant 0 : i32
    %c0_i32_1 = arith.constant 0 : i32
    %c0_i32_2 = arith.constant 0 : i32
    return %c0_i32, %c0_i32_0, %c0_i32_1 : i32, i32, i32
  }
  func.func @transform_1(%arg0: i32) -> (i32, i32, i32) {
    %c0_i32 = arith.constant 0 : i32
    %c0_i32_0 = arith.constant 0 : i32
    %c0_i32_1 = arith.constant 0 : i32
    return %arg0, %c0_i32, %c0_i32_0 : i32, i32, i32
  }
  func.func @transform_2(%arg0: i32) -> (i32, i32) {
    %c0_i32 = arith.constant 0 : i32
    %c0_i32_0 = arith.constant 0 : i32
    %c0_i32_1 = arith.constant 0 : i32
    return %c0_i32, %c0_i32_0 : i32, i32
  }
  func.func @transform_3(%arg0: i32) -> (i32, i32, i32) {
    %c0_i32 = arith.constant 0 : i32
    %c0_i32_0 = arith.constant 0 : i32
    %c0_i32_1 = arith.constant 0 : i32
    return %arg0, %c0_i32, %c0_i32_0 : i32, i32, i32
  }
  func.func @transform_4(%arg0: i32) -> (i32, i32) {
    %c0_i32 = arith.constant 0 : i32
    %c0_i32_0 = arith.constant 0 : i32
    %c0_i32_1 = arith.constant 0 : i32
    return %c0_i32, %c0_i32_0 : i32, i32
  }
  func.func @transform_5(%arg0: i32) -> (i32, i32) {
    %c0_i32 = arith.constant 0 : i32
    %c0_i32_0 = arith.constant 0 : i32
    %c0_i32_1 = arith.constant 0 : i32
    return %c0_i32, %c0_i32_0 : i32, i32
  }
  func.func @transform_6(%arg0: i32) -> (i32, i32) {
    %c0_i32 = arith.constant 0 : i32
    %c0_i32_0 = arith.constant 0 : i32
    %c0_i32_1 = arith.constant 0 : i32
    return %c0_i32, %c0_i32_0 : i32, i32
  }
  func.func @transform_7(%arg0: i32) -> (i32, i32) {
    %c0_i32 = arith.constant 0 : i32
    %c0_i32_0 = arith.constant 0 : i32
    %c0_i32_1 = arith.constant 0 : i32
    return %c0_i32, %c0_i32_0 : i32, i32
  }
  func.func @transform_8(%arg0: i32) -> (i32, i32) {
    %c0_i32 = arith.constant 0 : i32
    %c0_i32_0 = arith.constant 0 : i32
    %c0_i32_1 = arith.constant 0 : i32
    return %c0_i32, %c0_i32_0 : i32, i32
  }
  func.func @transform_9(%arg0: i32) -> (i32, i32) {
    %c0_i32 = arith.constant 0 : i32
    %c0_i32_0 = arith.constant 0 : i32
    %c0_i32_1 = arith.constant 0 : i32
    return %c0_i32, %c0_i32_0 : i32, i32
  }
  func.func @transform_10(%arg0: i32) -> (i32, i32) {
    %c0_i32 = arith.constant 0 : i32
    %c0_i32_0 = arith.constant 0 : i32
    %c0_i32_1 = arith.constant 0 : i32
    return %c0_i32, %c0_i32_0 : i32, i32
  }
  func.func @transform_11(%arg0: i32) -> (i32, i32) {
    %c0_i32 = arith.constant 0 : i32
    %c0_i32_0 = arith.constant 0 : i32
    %c0_i32_1 = arith.constant 0 : i32
    return %c0_i32, %c0_i32_0 : i32, i32
  }
  func.func @transform_12(%arg0: i32) -> (i32, i32) {
    %c0_i32 = arith.constant 0 : i32
    %c0_i32_0 = arith.constant 0 : i32
    %c0_i32_1 = arith.constant 0 : i32
    return %c0_i32, %c0_i32_0 : i32, i32
  }
  func.func @transform_13(%arg0: i32) -> (i32, i32) {
    %c0_i32 = arith.constant 0 : i32
    %c0_i32_0 = arith.constant 0 : i32
    %c0_i32_1 = arith.constant 0 : i32
    return %c0_i32, %c0_i32_0 : i32, i32
  }
  func.func @transform_14(%arg0: i32) -> (i32, i32) {
    %c0_i32 = arith.constant 0 : i32
    %c0_i32_0 = arith.constant 0 : i32
    %c0_i32_1 = arith.constant 0 : i32
    return %c0_i32, %c0_i32_0 : i32, i32
  }
  func.func @transform_15(%arg0: i32) -> (i32, i32) {
    %c0_i32 = arith.constant 0 : i32
    %c0_i32_0 = arith.constant 0 : i32
    %c0_i32_1 = arith.constant 0 : i32
    return %c0_i32, %c0_i32_0 : i32, i32
  }
  func.func @transform_16(%arg0: i32) -> (i32, i32, i32) {
    %c0_i32 = arith.constant 0 : i32
    %c0_i32_0 = arith.constant 0 : i32
    %c0_i32_1 = arith.constant 0 : i32
    return %arg0, %c0_i32, %c0_i32_0 : i32, i32, i32
  }
  func.func @transform_17(%arg0: i32) -> (i32, i32, i32) {
    %c0_i32 = arith.constant 0 : i32
    %c0_i32_0 = arith.constant 0 : i32
    %c0_i32_1 = arith.constant 0 : i32
    return %arg0, %c0_i32, %c0_i32_0 : i32, i32, i32
  }
  func.func @transform_18(%arg0: i32) -> (i32, i32, i32) {
    %c0_i32 = arith.constant 0 : i32
    %c0_i32_0 = arith.constant 0 : i32
    %c0_i32_1 = arith.constant 0 : i32
    return %arg0, %c0_i32, %c0_i32_0 : i32, i32, i32
  }
}

</mosaic_0001>

<bundles_post_ra>
// kernel: split.2
= control target key start
LH: loop header
LB: loop body
LE: loop exit
PB: predicated region body
PF: predicated region fallthrough
CT: control target
= control target key end

     0   :  { %vm6_vm0 = vcmask 1044480   ;;  %s27_s0 = inlined_call_operand.vmem [shape: f32[2,16,8], index: 0, kind: input, shape index: {}]   ;;  %s28_s1 = inlined_call_operand.vmem [shape: f32[1,3,8], index: 1, kind: output, shape index: {}]  }
   0x1   :  { %v10_v0 = vld [vmem:[%s27_s0 + $0x18] sm:$0xff] }
   0x2   :  { %v7_v1 = vsel %vm6_vm0, 0, %v10_v0 }
   0x3   :  { %v8_v2 = vrot.slane %v7_v1, 5 }
   0x5   :  { %9 = vst [vmem:[%s28_s1] sm:$0xf] %v8_v2 }

// kernel: split.1
= control target key start
LH: loop header
LB: loop body
LE: loop exit
PB: predicated region body
PF: predicated region fallthrough
CT: control target
= control target key end

     0   :  { %s24_s0 = inlined_call_operand.vmem [shape: f32[2,16,8], index: 0, kind: input, shape index: {}]   ;;  %s25_s1 = inlined_call_operand.vmem [shape: f32[1,5,8], index: 1, kind: output, shape index: {}]  }
   0x1   :  { %v7_v0 = vld [vmem:[%s24_s0 + $0x18] sm:$0xff] }
   0x2   :  { %6 = vst [vmem:[%s25_s1] sm:$0xff] %v7_v0 }

// kernel: split.0
= control target key start
LH: loop header
LB: loop body
LE: loop exit
PB: predicated region body
PF: predicated region fallthrough
CT: control target
= control target key end

     0   :  { %2 = vsyncpa [#allocation6], 0  ;;  %s70_s0 = inlined_call_operand.vmem [shape: f32[2,16,8], index: 0, kind: input, shape index: {}]   ;;  %s71_s1 = inlined_call_operand.hbm [shape: f32[1,8,8], index: 1, kind: output, shape index: {}]  }
   0x1   :  { %v18_v0 = vld [vmem:[%s70_s0 + $0x10] sm:$0xff]  ;;  %s44_s0 = smov [#allocation5]  }
   0x2   :  { %7 = vst [vmem:[#allocation5] sm:$0xff] %v18_v0  ;;  %s12_s8 = sshll.u32 %s44_s0, 4  ;;  %s13_s8 = int_to_ptr.vmem [resolvable:$true] %s12_s8 }
   0x3   :  { %s20_s9 = scalar_lea.vmem %s13_s8, 128  ;;  %p25_p1 = scmp.lt.s32.totalorder %s13_s8, %s13_s8 }
   0x4   :  { %p21_p0 = scmp.ne.s32.totalorder %s13_s8, %s20_s9  ;;  %p26_p2 = scmp.lt.s32.totalorder %s20_s9, %s20_s9 }
   0x6   :  { %p27_p3 = por %p26_p2, %p25_p1 }
   0x8   :  { %p28_p4 = pnand %p27_p3, %p21_p0 }
   0xa   :  { %31 = shalt.err (!%p28_p4)
}
   0xb   :  { %s32_s12 = scalar_lea.hbm %s71_s1, 128 }
   0xc   :  { %p33_p5 = scmp.ne.s32.totalorder %s71_s1, %s32_s12  ;;  %p36_p6 = scmp.lt.u32.totalorder %s32_s12, %s71_s1 }
   0xe   :  { %p38_p7 = pnand %p36_p6, %p33_p5 }
  0x10   :  { %41 = shalt.err (!%p38_p7)
}
  0x11   :  { %15 = dma.vmem_to_hbm [thread:$0]  %s13_s8, 128, %s71_s1, [#allocation6]  }
  0x12   :  { %42 = dma.done.wait [#allocation6], 128  }
  0x13   :  { %43 = vsyncadd [#allocation6], 4294967168 }
  0x14   :  { %17 = vsyncpa [#allocation6], 1 }

// kernel: split.18
= control target key start
LH: loop header
LB: loop body
LE: loop exit
PB: predicated region body
PF: predicated region fallthrough
CT: control target
= control target key end

     0   :  { %s24_s0 = inlined_call_operand.vmem [shape: f32[2,16,8], index: 0, kind: input, shape index: {}]   ;;  %s25_s1 = inlined_call_operand.vmem [shape: f32[1,8,8], index: 1, kind: output, shape index: {}]  }
   0x1   :  { %v7_v0 = vld [vmem:[%s24_s0 + $0x10] sm:$0xff] }
   0x2   :  { %6 = vst [vmem:[%s25_s1] sm:$0xff] %v7_v0 }

// kernel: split.14
= control target key start
LH: loop header
LB: loop body
LE: loop exit
PB: predicated region body
PF: predicated region fallthrough
CT: control target
= control target key end

     0   :  { %vm6_vm0 = vcmask 1044480   ;;  %s43_s0 = inlined_call_operand.vmem [shape: f32[2,16,8], index: 0, kind: input, shape index: {}]   ;;  %s44_s1 = inlined_call_operand.vmem [shape: f32[2,3,8], index: 1, kind: output, shape index: {}]  }
   0x1   :  { %v18_v0 = vld [vmem:[%s43_s0 + $0x8] sm:$0xff]  ;;  %v19_v1 = vld [vmem:[%s43_s0 + $0x18] sm:$0xff] }
   0x2   :  { %v7_v2 = vsel %vm6_vm0, 0, %v18_v0  ;;  %v13_v3 = vsel %vm6_vm0, 0, %v19_v1 }
   0x3   :  { %v8_v4 = vrot.slane %v7_v2, 5  ;;  %v14_v5 = vrot.slane %v13_v3, 5 }
   0x5   :  { %9 = vst [vmem:[%s44_s1] sm:$0xf] %v8_v4  ;;  %20 = vst [vmem:[%s44_s1 + $0x4] sm:$0xf] %v14_v5 }

// kernel: split.13
= control target key start
LH: loop header
LB: loop body
LE: loop exit
PB: predicated region body
PF: predicated region fallthrough
CT: control target
= control target key end

     0   :  { %s37_s0 = inlined_call_operand.vmem [shape: f32[2,16,8], index: 0, kind: input, shape index: {}]   ;;  %s38_s1 = inlined_call_operand.vmem [shape: f32[2,5,8], index: 1, kind: output, shape index: {}]  }
   0x1   :  { %v12_v0 = vld [vmem:[%s37_s0 + $0x8] sm:$0xff]  ;;  %v13_v1 = vld [vmem:[%s37_s0 + $0x18] sm:$0xff] }
   0x2   :  { %6 = vst [vmem:[%s38_s1] sm:$0xff] %v12_v0  ;;  %14 = vst [vmem:[%s38_s1 + $0x8] sm:$0xff] %v13_v1 }

// kernel: split.12
= control target key start
LH: loop header
LB: loop body
LE: loop exit
PB: predicated region body
PF: predicated region fallthrough
CT: control target
= control target key end

     0   :  { %2 = vsyncpa [#allocation6], 0  ;;  %s80_s0 = inlined_call_operand.vmem [shape: f32[2,16,8], index: 0, kind: input, shape index: {}]   ;;  %s81_s1 = inlined_call_operand.hbm [shape: f32[2,8,8], index: 1, kind: output, shape index: {}]  }
   0x1   :  { %v3_v0 = vld [vmem:[%s80_s0] sm:$0xff]  ;;  %v21_v1 = vld [vmem:[%s80_s0 + $0x10] sm:$0xff]  ;;  %s49_s0 = smov [#allocation5]  }
   0x2   :  { %4 = vst [vmem:[#allocation5] sm:$0xff] %v3_v0  ;;  %8 = vst [vmem:[#allocation5 + $0x8] sm:$0xff] %v21_v1  ;;  %s12_s10 = sshll.u32 %s49_s0, 4  ;;  %s13_s10 = int_to_ptr.vmem [resolvable:$true] %s12_s10 }
   0x3   :  { %s25_s11 = scalar_lea.vmem %s13_s10, 256  ;;  %p30_p1 = scmp.lt.s32.totalorder %s13_s10, %s13_s10 }
   0x4   :  { %p26_p0 = scmp.ne.s32.totalorder %s13_s10, %s25_s11  ;;  %p31_p2 = scmp.lt.s32.totalorder %s25_s11, %s25_s11 }
   0x6   :  { %p32_p3 = por %p31_p2, %p30_p1 }
   0x8   :  { %p33_p4 = pnand %p32_p3, %p26_p0 }
   0xa   :  { %36 = shalt.err (!%p33_p4)
}
   0xb   :  { %s37_s14 = scalar_lea.hbm %s81_s1, 256 }
   0xc   :  { %p38_p5 = scmp.ne.s32.totalorder %s81_s1, %s37_s14  ;;  %p41_p6 = scmp.lt.u32.totalorder %s37_s14, %s81_s1 }
   0xe   :  { %p43_p7 = pnand %p41_p6, %p38_p5 }
  0x10   :  { %46 = shalt.err (!%p43_p7)
}
  0x11   :  { %s50_s19 = smov 128   ;;  %s51_s20 = smov 8  }
  0x12   :  { %18 = dma.vmem_to_hbm [thread:$0]  %s13_s10, 256, %s81_s1, [#allocation6], %s50_s19, %s50_s19, %s51_s20  }
  0x13   :  { %47 = dma.done.wait [#allocation6], 256  }
  0x14   :  { %48 = vsyncadd [#allocation6], 4294967040 }
  0x15   :  { %20 = vsyncpa [#allocation6], 1 }

// kernel: _lambda_.4
= control target key start
LH: loop header
LB: loop body
LE: loop exit
PB: predicated region body
PF: predicated region fallthrough
CT: control target
= control target key end

     0   :  { %s1505_s0 = inlined_call_operand.vmem [shape: f32[1,8,16], index: 0, kind: input, shape index: {}]   ;;  %s1506_s1 = inlined_call_operand.vmem [shape: f32[2,8,8], index: 1, kind: input, shape index: {}]   ;;  %s1507_s2 = inlined_call_operand.vmem [shape: f32[2,8,8], index: 2, kind: input, shape index: {}]   ;;  %s1508_s3 = inlined_call_operand.vmem [shape: f32[16,16], index: 3, kind: input, shape index: {}]   ;;  %s1509_s4 = inlined_call_operand.vmem [shape: f32[1,16], index: 4, kind: input, shape index: {}]   ;;  %s1510_s5 = inlined_call_operand.vmem [shape: f32[8,16], index: 5, kind: input, shape index: {}]   ;;  %s1511_s6 = inlined_call_operand.vmem [shape: f32[1,16], index: 6, kind: input, shape index: {}]   ;;  %s1512_s7 = inlined_call_operand.vmem [shape: f32[16,8], index: 7, kind: input, shape index: {}]   ;;  %s1513_s8 = inlined_call_operand.vmem [shape: f32[1,8], index: 8, kind: input, shape index: {}]   ;;  %s1514_s9 = inlined_call_operand.vmem [shape: f32[16,8], index: 9, kind: input, shape index: {}]   ;;  %s1515_s10 = inlined_call_operand.vmem [shape: f32[1,8], index: 10, kind: input, shape index: {}]   ;;  %s1516_s11 = inlined_call_operand.hbm [shape: f32[2,8,8], index: 11, kind: output, shape index: {0}]   ;;  %s1517_s12 = inlined_call_operand.hbm [shape: f32[2,8,8], index: 12, kind: output, shape index: {1}]   ;;  %s1518_s13 = inlined_call_operand.vmem [shape: f32[2,8,8], index: 13, kind: output, shape index: {2}]  }
   0x1   :  { %1526 = sst [smem:[#allocation16_spill]] %s1506_s1 }
   0x2   :  { %19 = vsyncpa [#allocation4], 0 }
   0x3   :  { %21 = vsyncpa [#allocation4 + $0x1], 0 }
   0x4   :  { %22 = vsyncpa [#allocation6], 0 }
   0x5   :  { %24 = vsyncpa [#allocation6 + $0x1], 0  ;;  %s1292_s25 = smov 0   ;;  %s1294_s26 = smov 0  }
   0x6   :  { %s1296_s27 = smov 0   ;;  %s1298_s28 = smov 0  }
   0x7 LB: > { %1527 = sst [smem:[#allocation9_spill]] %s1200_s25  ;;  %s1313_s29 = sadd.s32 4294967295, %s1212_s28   ;;  %s1212_s28 = sphi %s1298_s28, %s1542_s28   ;;  %s1208_s27 = sphi %s1296_s27, %s1545_s27   ;;  %s1204_s26 = sphi %s1294_s26, %s1544_s26   ;;  %s1200_s25 = sphi %s1292_s25, %s1543_s25  }
   0x8   : > { %1528 = sst [smem:[#allocation10_spill]] %s1204_s26  ;;  %s992_s30 = sadd.s32 4294967294, %s1212_s28  }
   0x9   : > { %1529 = sst [smem:[#allocation11_spill]] %s1208_s27  ;;  %s1317_s14 = sadd.s32 1, %s1212_s28  }
   0xa   : > { %1530 = sst [smem:[#allocation12_spill]] %s1212_s28  ;;  %s278_s15 = sadd.s32 1, %s1208_s27 }
   0xb   : > { %1531 = sst [smem:[#allocation13_spill]] %s1317_s14  ;;  %s275_s16 = ssub.s32 %s1212_s28, %s1317_s14 }
   0xc   : > { %p288_p0 = scmp.ne.s32.totalorder %s1208_s27, %s1204_s26  ;;  %p276_p1 = scmp.eq.s32.totalorder %s275_s16, 0 }
   0xd   : > { %p289_p2 = scmp.eq.s32.totalorder %s1313_s29, 1  ;;  %p294_p3 = scmp.ne.s32.totalorder %s1204_s26, %s1200_s25 }
   0xe   : > { %p295_p4 = scmp.eq.s32.totalorder %s992_s30, 1  ;;  %p995_p7 = scmp.ge.s32.totalorder %s1212_s28, 1 }
   0xf   : > { %s1328_s17 = scalar_select %p276_p1, %s1208_s27, %s278_s15  }
  0x10   : > { %p1330_p5 = por %p289_p2, %p288_p0  ;;  %p1334_p6 = por %p295_p4, %p294_p3 }
  0x11   : > { %1532 = sst [smem:[#allocation14_spill]] %s1328_s17  ;;  %p406_p8 = scmp.lt.s32.totalorder %s1212_s28, 3 }
  0x12   : > { %s1534_s19 = scalar_select %p1334_p6, 1, 0 }
  0x13   : > { %p407_p9 = pnand %p995_p7, %p406_p8 }
  0x14   : > { %1535 = sst [smem:[#allocation15_spill]] %s1534_s19  ;;  %s1341_s20 = sand.u32 (!%p407_p9), 1, %s1204_s26  }
  0x15   : > { %410 = sbr.rel (%p407_p9) target bundleno = 760 (0x2f8), region = 64  ;;  %p462_p10 = scmp.lt.s32.totalorder (!%p407_p9), %s1313_s29, 1 }
  0x16   : > { %s996_s21 = sshll.u32 (!%p407_p9), %s1341_s20, 3  ;;  %s1536_s1 = sld [smem:[#allocation16_spill]] (!%p407_p9) }
  0x17   : > { %s1360_s25 = scalar_lea.vmem (!%p407_p9), [#allocation3], %s996_s21  ;;  %s1362_s28 = scalar_lea.vmem (!%p407_p9), [#allocation5], %s996_s21 }
  0x18   : > { %p1001_p11 = scmp.ne.s32.totalorder (!%p407_p9), %s1313_s29, 0 }
  0x1c   : > { %s463_s22 = scalar_select %p462_p10, %s1313_s29, 1 }
  0x1d   : > { %477 = sbr.rel (%p1001_p11) target bundleno = 261 (0x105), region = 68  ;;  %v479_v0 = vld [vmem:[%s1508_s3] sm:$0xff] (!%p1001_p11)  ;;  %v480_v1 = vld [vmem:[%s1508_s3 + $0x8] sm:$0xff] (!%p1001_p11)  ;;  %v1214_v2 = vmov (!%p1001_p11), 0.0|0.0   ;;  %vm1215_vm0 = vmmov (!%p1001_p11), 0   ;;  %v1216_v4 = vmov (!%p1001_p11), 0.0  }
  0x1e   : > { %s1346_s23 = sshll.u32 %s463_s22, 3  ;;  %1053 = vmatprep.subr.bf16.mxu0 (!%p1001_p11), %v1214_v2  ;;  %v1054_v3 = vpack.c.bf16 (!%p1001_p11), %v480_v1, %v479_v0  ;;  %1031 = vmatprep.mubr.msk.f32.mxu0 (!%p1001_p11), %vm1215_vm0, %v1216_v4  ;;  %v478_v5 = vld [vmem:[%s1505_s0] sm:$0xff] (!%p1001_p11)  ;;  %vm488_vm1 = vcmask (!%p1001_p11), 130048  }
  0x1f   : > { %s465_s15 = scalar_lea.vmem %s1536_s1, %s1346_s23  ;;  %v1002_v6 = vld [vmem:[%s1509_s4] ss:$0 sm:$0xff] (!%p1001_p11) }
  0x20   : > { %1055 = vmatpush3.bf16.msra.mxu0 (!%p1001_p11), %v1054_v3 }
  0x23   : > { %1032 = vmatmul.mubr.msk.f32.vlgmr.msra.gmra.mrb[0].mxu0 (!%p1001_p11), %vm488_vm1, %v478_v5 }
  0xf6   : > { %v558_v7 = vpop.f32.mrb[0].mxu0 }
  0xf7   : > { %v559_v8 = vadd.f32 %v1002_v6, %v558_v7  ;;  %v1033_v9 = vpop.f32.mrb[1].mxu0 }
  0xf9   : > { %1112 = vtanh.f32 %v559_v8 }
 0x103   : > { %v1113_v10 = vpop.eup %1112 }
 0x104   : > { %563 = vst.msk [vmem:[#allocation2] sm:$0xff] %vm488_vm1, %v1113_v10 }
 0x105 PF: > { %v566_v11 = vld [vmem:[%s1510_s5] sm:$0xff]  ;;  %vm574_vm2 = vcmask 64512   ;;  %v1217_v13 = vmov 0.0   ;;  %vm1218_vm3 = vmmov 0   ;;  %v651_v15 = vld [vmem:[%s1512_s7 + $0x8] sm:$0xff]  ;;  %v1219_v16 = vmov 0.0|0.0  }
 0x106   : > { %v565_v12 = vld [vmem:[%s465_s15] sm:$0xff]  ;;  %1034 = vmatprep.subr.mxu0 %v1217_v13  ;;  %1036 = vmatprep.mubr.msk.f32.mxu0 %vm1218_vm3, %v1217_v13  ;;  %v736_v19 = vld [vmem:[%s1514_s9 + $0x8] sm:$0xff]  ;;  %vm659_vm4 = vcmask 130048   ;;  %s1012_s30 = sshll.u32 %s1313_s29, 7  ;;  %s849_s26 = sshll.u32 %s1360_s25, 4  ;;  %s1410_s26 = int_to_ptr.vmem [resolvable:$true] %s849_s26 }
 0x107   : > { %1035 = vmatpush3.msra.mxu0 %v566_v11  ;;  %1043 = vmatprep.mubr.msk.f32.mxu1 %vm1218_vm3, %v1217_v13  ;;  %v650_v14 = vld [vmem:[%s1512_s7] sm:$0xff]  ;;  %s1408_s17 = scalar_lea.hbm %s1516_s11, %s1012_s30  ;;  %s862_s16 = sshll.u32 %s1362_s28, 4  ;;  %s1450_s16 = int_to_ptr.vmem [resolvable:$true] %s862_s16 }
 0x108   : > { %1037 = vmatmul.mubr.msk.f32.vlgmr.msra.gmra.mrb[0].mxu0 %vm574_vm2, %v565_v12  ;;  %1056 = vmatprep.subr.bf16.mxu1 %v1219_v16  ;;  %v1057_v17 = vpack.c.bf16 %v651_v15, %v650_v14  ;;  %v735_v18 = vld [vmem:[%s1514_s9] sm:$0xff]  ;;  %s827_s22 = scalar_lea.sflag [#allocation4], %s1341_s20  ;;  %s1118_s24 = scalar_lea.vmem %s1410_s26, 128 }
 0x109   : > { %1050 = vmatprep.mubr.msk.f32.mxu0 %vm1218_vm3, %v1217_v13  ;;  %1059 = vmatprep.subr.bf16.mxu0 %v1219_v16  ;;  %v1060_v20 = vpack.c.bf16 %v736_v19, %v735_v18  ;;  %v1004_v21 = vld [vmem:[%s1511_s6] ss:$0 sm:$0xff]  ;;  %p1119_p12 = scmp.ne.s32.totalorder %s1410_s26, %s1118_s24  ;;  %s1220_s15 = smov [#allocation3]  }
 0x10a   : > { %1058 = vmatpush3.bf16.msra.mxu1 %v1057_v17  ;;  %v1006_v30 = vld [vmem:[%s1513_s8] ss:$0 sm:$0xff]  ;;  %s1122_s14 = sshll.u32 %s1220_s15, 4  ;;  %s1123_s14 = int_to_ptr.vmem [resolvable:$false] %s1122_s14 }
 0x10b   : > { %1061 = vmatpush3.bf16.msra.mxu0 %v1060_v20  ;;  %v564_v25 = vld [vmem:[#allocation2] sm:$0xff]  ;;  %p1120_p13 = pnand %p1119_p12, %p1330_p5  ;;  %s1124_s19 = scalar_lea.vmem %s1123_s14, 256 }
 0x10c   : > { %v1008_v34 = vld [vmem:[%s1515_s10] ss:$0 sm:$0xff]  ;;  %p1125_p1 = scmp.lt.s32.totalorder %s1410_s26, %s1123_s14  ;;  %p1126_p2 = scmp.lt.s32.totalorder %s1124_s19, %s1118_s24 }
 0x10d   : > { %p1121_p0 = pneg %p1120_p13 }
 0x10e   : > { %p1127_p3 = por %p1126_p2, %p1125_p1 }
 0x110   : > { %p1128_p4 = pnand %p1127_p3, %p1121_p0 }
 0x1db   : > { %v644_v22 = vpop.f32.mrb[0].mxu0 }
 0x1dc   : > { %v645_v23 = vadd.f32 %v1004_v21, %v644_v22  ;;  %v1038_v24 = vpop.f32.mrb[1].mxu0 }
 0x1de   : > { %1114 = vtanh.f32 %v645_v23 }
 0x1e8   : > { %v1115_v26 = vpop.eup %1114 }
 0x1e9   : > { %v649_v27 = vadd.f32 %v1115_v26, %v564_v25 }
 0x1eb   : > { %1044 = vmatmul.mubr.msk.f32.vlgmr.msra.gmra.mrb[0].mxu1 %vm659_vm4, %v649_v27  ;;  %v733_v28 = vmul.f32 0.0, %v649_v27 }
 0x1ed   : > { %v734_v29 = vadd.f32 %v733_v28, %v564_v25 }
 0x1ef   : > { %1051 = vmatmul.mubr.msk.f32.vlgmr.msra.gmra.mrb[2].mxu0 %vm659_vm4, %v734_v29 }
 0x2be   : > { %v729_v31 = vpop.f32.mrb[0].mxu1 }
 0x2bf   : > { %v1401_v32 = vadd.f32 %v1006_v30, %v729_v31  ;;  %v1045_v33 = vpop.f32.mrb[1].mxu1 }
 0x2c1   : > { %823 = vst.msk [vmem:[%s1360_s25] sm:$0xff] %vm574_vm2, %v1401_v32 }
 0x2c2   : > { %v813_v35 = vpop.f32.mrb[2].mxu0 }
 0x2c3   : > { %1131 = shalt.err (!%p1128_p4)
}
 0x2c4   : > { %s1132_s25 = scalar_lea.hbm %s1408_s17, 128  ;;  %s1136_s15 = scalar_lea.hbm %s1516_s11, 256 }
 0x2c5   : > { %p1133_p7 = scmp.ne.s32.totalorder %s1408_s17, %s1132_s25  ;;  %p1137_p10 = scmp.lt.u32.totalorder %s1408_s17, %s1516_s11 }
 0x2c6   : > { %p1138_p11 = scmp.lt.u32.totalorder %s1136_s15, %s1132_s25  ;;  %p1140_p13 = scmp.lt.u32.totalorder %s1132_s25, %s1408_s17 }
 0x2c7   : > { %p1134_p8 = pnand %p1133_p7, %p1330_p5 }
 0x2c8   : > { %p1139_p12 = por %p1138_p11, %p1137_p10 }
 0x2c9   : > { %p1135_p9 = pneg %p1134_p8 }
 0x2ca   : > { %p1141_p0 = por %p1140_p13, %p1139_p12 }
 0x2cc   : > { %p1142_p1 = pnand %p1141_p0, %p1135_p9 }
 0x2ce   : > { %1145 = shalt.err (!%p1142_p1)
}
 0x2cf   : > { %1062 = dma.vmem_to_hbm [thread:$0]  (%p1330_p5), %s1410_s26, 128, %s1408_s17, %s827_s22   ;;  %v814_v36 = vadd.f32 %v1008_v34, %v813_v35  ;;  %v1052_v37 = vpop.f32.mrb[3].mxu0 }
 0x2d0   : > { %s1446_s24 = scalar_lea.hbm %s1517_s12, %s1012_s30  ;;  %s832_s25 = scalar_lea.sflag [#allocation6], %s1341_s20 }
 0x2d1   : > { %v818_v38 = vmul.f32 0.5, %v814_v36  ;;  %824 = vst.msk [vmem:[%s1362_s28] sm:$0xff] %vm574_vm2, %v814_v36  ;;  %s1146_s21 = scalar_lea.vmem %s1450_s16, 128  ;;  %s1221_s29 = smov [#allocation5]  }
 0x2d2   : > { %p1147_p2 = scmp.ne.s32.totalorder %s1450_s16, %s1146_s21  ;;  %s1150_s26 = sshll.u32 %s1221_s29, 4  ;;  %s1151_s26 = int_to_ptr.vmem [resolvable:$false] %s1150_s26 }
 0x2d3   : > { %s1152_s30 = scalar_lea.vmem %s1151_s26, 256  ;;  %p1153_p7 = scmp.lt.s32.totalorder %s1450_s16, %s1151_s26 }
 0x2d4   : > { %p1148_p3 = pnand %p1147_p2, %p1330_p5  ;;  %p1154_p8 = scmp.lt.s32.totalorder %s1152_s30, %s1146_s21 }
 0x2d6   : > { %p1149_p4 = pneg %p1148_p3  ;;  %p1155_p9 = por %p1154_p8, %p1153_p7 }
 0x2d8   : > { %p1156_p10 = pnand %p1155_p9, %p1149_p4 }
 0x2da   : > { %1159 = shalt.err (!%p1156_p10)
}
 0x2db   : > { %s1160_s28 = scalar_lea.hbm %s1446_s24, 128  ;;  %s1164_s22 = scalar_lea.hbm %s1517_s12, 256 }
 0x2dc   : > { %p1161_p11 = scmp.ne.s32.totalorder %s1446_s24, %s1160_s28  ;;  %p1165_p0 = scmp.lt.u32.totalorder %s1446_s24, %s1517_s12 }
 0x2dd   : > { %p1166_p1 = scmp.lt.u32.totalorder %s1164_s22, %s1160_s28  ;;  %p1168_p3 = scmp.lt.u32.totalorder %s1160_s28, %s1446_s24 }
 0x2de   : > { %p1162_p12 = pnand %p1161_p11, %p1330_p5 }
 0x2df   : > { %p1167_p2 = por %p1166_p1, %p1165_p0 }
 0x2e0   : > { %p1163_p13 = pneg %p1162_p12 }
 0x2e1   : > { %p1169_p4 = por %p1168_p3, %p1167_p2 }
 0x2e3   : > { %p1170_p7 = pnand %p1169_p4, %p1163_p13 }
 0x2e5   : > { %1173 = shalt.err (!%p1170_p7)
}
 0x2e6   : > { %1063 = dma.vmem_to_hbm [thread:$0]  (%p1330_p5), %s1450_s16, 128, %s1446_s24, %s832_s25   ;;  %v819_v39 = vmul.f32 1.442695, %v818_v38 }
 0x2e7   : > { %s1537_s19 = scalar_lea.vmem %s1507_s2, %s1346_s23  ;;  %s1538_s18 = scalar_lea.vmem %s1518_s13, %s1346_s23 }
 0x2e8   : > { %1116 = vpow2.f32 %v819_v39  ;;  %v817_v40 = vld [vmem:[%s1537_s19] sm:$0xff] }
 0x2f2   : > { %v1117_v41 = vpop.eup %1116 }
 0x2f3   : > { %v821_v42 = vmul.f32 %v1117_v41, %v817_v40 }
 0x2f5   : > { %v822_v43 = vadd.f32 %v821_v42, %v1401_v32 }
 0x2f7   : > { %825 = vst.msk [vmem:[%s1538_s18] sm:$0xff] %vm574_vm2, %v822_v43 }
 0x2f8 PF: > { %s1539_s26 = sld [smem:[#allocation12_spill]]  ;;  %s1540_s16 = sld [smem:[#allocation9_spill]] }
 0x2fe   : > { %p1073_p5 = scmp.ge.s32.totalorder %s1539_s26, 2  ;;  %s877_s25 = sand.u32 1, %s1540_s16  }
 0x2ff   : > { %s878_s30 = scalar_lea.sflag [#allocation4], %s877_s25 }
 0x300   : > { %p1067_p8 = pnand %p1073_p5, %p1334_p6 }
 0x302   : > { %1191 = dma.done.wait (!%p1067_p8), %s878_s30, 128  }
 0x303   : > { %1193 = vsyncadd (!%p1067_p8), %s878_s30, 4294967168  ;;  %s887_s28 = scalar_lea.sflag [#allocation6], %s877_s25 }
 0x304   : > { %1195 = dma.done.wait (!%p1067_p8), %s887_s28, 128  }
 0x305   : > { %1197 = vsyncadd (!%p1067_p8), %s887_s28, 4294967168  ;;  %s1542_s28 = sld [smem:[#allocation13_spill]]  ;;  %s1543_s25 = sld [smem:[#allocation10_spill]] }
 0x306   : > { %s1544_s26 = sld [smem:[#allocation11_spill]]  ;;  %s1545_s27 = sld [smem:[#allocation14_spill]] }
 0x30b   : > { %p27_p9 = scmp.ge.s32.totalorder %s1542_s28, 4  }
 0x30d   :  { %29 = sbr.rel (!%p27_p9) target bundleno = 7 (0x7), region = 135 }
 0x314   :  { %899 = vsyncpa [#allocation4], 1 }
 0x315   :  { %901 = vsyncpa [#allocation4 + $0x1], 1 }
 0x316   :  { %902 = vsyncpa [#allocation6], 1 }
 0x317   :  { %904 = vsyncpa [#allocation6 + $0x1], 1 }

// kernel: _lambda_.5
= control target key start
LH: loop header
LB: loop body
LE: loop exit
PB: predicated region body
PF: predicated region fallthrough
CT: control target
= control target key end

     0   :  { %vm24_vm0 = vcmask 64512   ;;  %s466_s0 = inlined_call_operand.vmem [shape: f32[1,16,8], index: 0, kind: input, shape index: {}]   ;;  %s467_s1 = inlined_call_operand.vmem [shape: f32[1,8,8], index: 1, kind: input, shape index: {}]   ;;  %s468_s2 = inlined_call_operand.vmem [shape: f32[8,12], index: 2, kind: input, shape index: {}]   ;;  %s469_s3 = inlined_call_operand.vmem [shape: f32[1,12], index: 3, kind: input, shape index: {}]   ;;  %s470_s4 = inlined_call_operand.vmem [shape: f32[1,8,16], index: 4, kind: output, shape index: {0}]   ;;  %s471_s5 = inlined_call_operand.vmem [shape: f32[1,16,8], index: 5, kind: output, shape index: {1}]   ;;  %s472_s6 = inlined_call_operand.hbm [shape: f32[1,8,12], index: 6, kind: output, shape index: {2}]  }
   0x1   :  { %v23_v0 = vld [vmem:[%s467_s1] sm:$0xff] }
   0x2   :  { %v21_v1 = vld [vmem:[%s466_s0] sm:$0xff]  ;;  %327 = vmatprep.subr.msk.mxu1 %vm24_vm0, %v23_v0 }
   0x3   :  { %329 = vmatprep.mubr.msk.f32.mxu1 %vm24_vm0, %v21_v1 }
   0x4   :  { %12 = vsyncpa [#allocation3], 0  ;;  %328 = vmatpush3.xpose.msk.msra.mxu1 %vm24_vm0, %v23_v0  ;;  %v22_v2 = vld [vmem:[%s466_s0 + $0x8] sm:$0xff]  ;;  %v381_v4 = vmov 0.0|0.0   ;;  %v382_v5 = vmov 0.0   ;;  %v187_v6 = vld [vmem:[%s468_s2] sm:$0xff] }
   0x5   :  { %v338_v3 = vpack.c.bf16 %v22_v2, %v21_v1  ;;  %337 = vmatprep.subr.bf16.mxu0 %v381_v4  ;;  %vm339_vm1 = vmpackc.low %vm24_vm0, %vm24_vm0  ;;  %332 = vmatprep.subr.mxu1 %v382_v5  ;;  %vm383_vm2 = vmmov 0   ;;  %vm274_vm3 = vcmask 130048   ;;  %v309_v17 = vld [vmem:[%s469_s3] ss:$0 sm:$0xff]  ;;  %vm278_vm4 = vcmask 97280  }
   0x6   :  { %324 = vmatprep.mubr.msk.f32.mxu0 %vm383_vm2, %v382_v5 }
   0x7   :  { %330 = vmatmul.mubr.msk.f32.vlgmr.msra.gmra.mrb[0].mxu1 %vm24_vm0, %v22_v2  ;;  %340 = vmatpush3.bf16.xpose.msk.msra.mxu0 %vm339_vm1, %v338_v3 }
   0x8   :  { %333 = vmatpush3.msra.mxu1 %v187_v6  ;;  %334 = vmatprep.mubr.msk.f32.mxu1 %vm383_vm2, %v382_v5 }
   0xe   :  { %325 = vmatmul.mubr.msk.f32.vlgmr.msra.gmra.mrb[0].mxu0 %vm24_vm0, %v21_v1 }
  0xda   :  { %v331_v7 = vpop.f32.mrb[0].mxu1 }
  0xdb   :  { %345 = vtanh.f32 %v331_v7  ;;  %v176_v8 = vpop.f32.mrb[1].mxu1 }
  0xdc   :  { %347 = vtanh.f32 %v176_v8 }
  0xe1   :  { %v97_v11 = vpop.f32.mrb[0].mxu0 }
  0xe2   :  { %v326_v12 = vpop.f32.mrb[1].mxu0  ;;  %v305_v13 = vmul.f32 -1.442695, %v97_v11 }
  0xe4   :  { %349 = vpow2.f32 %v305_v13 }
  0xe5   :  { %v346_v9 = vpop.eup %345 }
  0xe6   :  { %v348_v10 = vpop.eup %347  ;;  %277 = vst.msk [vmem:[%s471_s5 + $0x8] sm:$0xff] %vm24_vm0, %v346_v9 }
  0xe7   :  { %276 = vst.msk [vmem:[%s471_s5] sm:$0xff] %vm24_vm0, %v348_v10  ;;  %335 = vmatmul.mubr.msk.f32.vlgmr.msra.gmra.mrb[2].mxu1 %vm24_vm0, %v348_v10  ;;  %s384_s5 = smov [#allocation2]  }
  0xe8   :  { %s290_s10 = sshll.u32 %s384_s5, 4  ;;  %s291_s10 = int_to_ptr.vmem [resolvable:$true] %s290_s10 }
  0xe9   :  { %s357_s11 = scalar_lea.vmem %s291_s10, 128  ;;  %p362_p1 = scmp.lt.s32.totalorder %s291_s10, %s291_s10 }
  0xea   :  { %p358_p0 = scmp.ne.s32.totalorder %s291_s10, %s357_s11  ;;  %p363_p2 = scmp.lt.s32.totalorder %s357_s11, %s357_s11 }
  0xec   :  { %p364_p3 = por %p363_p2, %p362_p1 }
  0xee   :  { %v350_v14 = vpop.eup %349  ;;  %p365_p4 = pnand %p364_p3, %p358_p0 }
  0xef   :  { %v104_v15 = vadd.f32 1.0, %v350_v14 }
  0xf1   :  { %351 = vrcp.f32 %v104_v15 }
  0xfb   :  { %v352_v16 = vpop.eup %351 }
  0xfc   :  { %275 = vst.msk [vmem:[%s470_s4] sm:$0xff] %vm274_vm3, %v352_v16 }
 0x1ba   :  { %v264_v18 = vpop.f32.mrb[2].mxu1 }
 0x1bb   :  { %v265_v19 = vadd.f32 %v309_v17, %v264_v18  ;;  %v336_v20 = vpop.f32.mrb[3].mxu1 }
 0x1bd   :  { %v311_v21 = vmul.f32 -1.442695, %v265_v19 }
 0x1bf   :  { %353 = vpow2.f32 %v311_v21 }
 0x1c9   :  { %v354_v22 = vpop.eup %353 }
 0x1ca   :  { %v271_v23 = vadd.f32 1.0, %v354_v22 }
 0x1cc   :  { %355 = vrcp.f32 %v271_v23 }
 0x1d6   :  { %v356_v24 = vpop.eup %355 }
 0x1d7   :  { %279 = vst.msk [vmem:[#allocation2] sm:$0xff] %vm278_vm4, %v356_v24 }
 0x1d8   :  { %368 = shalt.err (!%p365_p4)
}
 0x1d9   :  { %s369_s12 = scalar_lea.hbm %s472_s6, 128 }
 0x1da   :  { %p370_p5 = scmp.ne.s32.totalorder %s472_s6, %s369_s12  ;;  %p373_p6 = scmp.lt.u32.totalorder %s369_s12, %s472_s6 }
 0x1dc   :  { %p375_p7 = pnand %p373_p6, %p370_p5 }
 0x1de   :  { %378 = shalt.err (!%p375_p7)
}
 0x1df   :  { %293 = dma.vmem_to_hbm [thread:$0]  %s291_s10, 128, %s472_s6, [#allocation3]  }
 0x1e0   :  { %379 = dma.done.wait [#allocation3], 128  }
 0x1e1   :  { %380 = vsyncadd [#allocation3], 4294967168 }
 0x1e2   :  { %301 = vsyncpa [#allocation3], 1 }

// kernel: _lambda_.3
= control target key start
LH: loop header
LB: loop body
LE: loop exit
PB: predicated region body
PF: predicated region fallthrough
CT: control target
= control target key end

     0   :  { %s3460_s27 = smov 0   ;;  %s3772_s0 = inlined_call_operand.vmem [shape: f32[1,16,8], index: 0, kind: input, shape index: {}]   ;;  %s3773_s1 = inlined_call_operand.vmem [shape: f32[2,16,8], index: 1, kind: input, shape index: {}]   ;;  %s3774_s2 = inlined_call_operand.vmem [shape: f32[16,16], index: 2, kind: input, shape index: {}]   ;;  %s3775_s3 = inlined_call_operand.vmem [shape: f32[2,16,8], index: 3, kind: input, shape index: {}]   ;;  %s3776_s4 = inlined_call_operand.vmem [shape: f32[8,32], index: 4, kind: input, shape index: {}]   ;;  %s3777_s5 = inlined_call_operand.vmem [shape: f32[2,16], index: 5, kind: input, shape index: {}]   ;;  %s3778_s6 = inlined_call_operand.vmem [shape: f32[2,16], index: 6, kind: input, shape index: {}]   ;;  %s3779_s7 = inlined_call_operand.vmem [shape: f32[8,32], index: 7, kind: input, shape index: {}]   ;;  %s3780_s8 = inlined_call_operand.vmem [shape: f32[2,16], index: 8, kind: input, shape index: {}]   ;;  %s3781_s9 = inlined_call_operand.vmem [shape: f32[2,16], index: 9, kind: input, shape index: {}]   ;;  %s3782_s10 = inlined_call_operand.vmem [shape: f32[16,16], index: 10, kind: input, shape index: {}]   ;;  %s3783_s11 = inlined_call_operand.vmem [shape: f32[2,8], index: 11, kind: input, shape index: {}]   ;;  %s3784_s12 = inlined_call_operand.vmem [shape: f32[2,8], index: 12, kind: input, shape index: {}]   ;;  %s3785_s13 = inlined_call_operand.vmem [shape: f32[16,16], index: 13, kind: input, shape index: {}]   ;;  %s3786_s14 = inlined_call_operand.vmem [shape: f32[2,8], index: 14, kind: input, shape index: {}]   ;;  %s3787_s15 = inlined_call_operand.vmem [shape: f32[2,8], index: 15, kind: input, shape index: {}]   ;;  %s3788_s16 = inlined_call_operand.vmem [shape: f32[2,16,8], index: 16, kind: output, shape index: {0}]   ;;  %s3789_s17 = inlined_call_operand.vmem [shape: f32[2,16,8], index: 17, kind: output, shape index: {1}]   ;;  %s3790_s18 = inlined_call_operand.vmem [shape: f32[2,16,8], index: 18, kind: output, shape index: {2}]  }
   0x1   :  { %3795 = sst [smem:[#allocation4_spill]] %s3772_s0 }
   0x2   :  { %3796 = sst [smem:[#allocation5_spill]] %s3773_s1 }
   0x3   :  { %3797 = sst [smem:[#allocation6_spill]] %s3774_s2 }
   0x4   :  { %3798 = sst [smem:[#allocation7_spill]] %s3786_s14 }
   0x5   :  { %3799 = sst [smem:[#allocation8_spill]] %s3787_s15 }
   0x6 LB: > { %3800 = sst [smem:[#allocation3_spill]] %s3350_s27  ;;  %s2878_s28 = sadd.s32 4294967295, %s3350_s27   ;;  %s3350_s27 = sphi %s3460_s27, %s29_s27  }
   0x7   : > { %p2882_p0 = scmp.ge.s32.totalorder %s3350_s27, 1  ;;  %p527_p1 = scmp.lt.s32.totalorder %s3350_s27, 3 }
   0x9   : > { %p528_p2 = pnand %p2882_p0, %p527_p1 }
   0xa   : > { %p596_p3 = scmp.lt.s32.totalorder (!%p528_p2), %s2878_s28, 1  ;;  %s3801_s0 = sld [smem:[#allocation6_spill]] (!%p528_p2)  ;;  %v3352_v2 = vmov (!%p528_p2), -1e+09  }
   0xb   : > { %531 = sbr.rel (%p528_p2) target bundleno = 4010 (0xfaa), region = 84  ;;  %s3802_s23 = sld [smem:[#allocation5_spill]] (!%p528_p2) }
   0xc   : > { %p2893_p4 = scmp.ne.s32.totalorder (!%p528_p2), %s2878_s28, 0 }
  0x10   : > { %v621_v0 = vld [vmem:[%s3801_s0] sm:$0xff] (!%p528_p2)  ;;  %v622_v1 = vld [vmem:[%s3801_s0 + $0x8] sm:$0xff] (!%p528_p2) }
  0x11   : > { %vm623_vm0 = vcmp.gt.f32.partialorder (!%p528_p2), %v621_v0, 0.0  ;;  %vm624_vm1 = vcmp.gt.f32.partialorder (!%p528_p2), %v622_v1, 0.0 }
  0x12   : > { %s597_s20 = scalar_select %p596_p3, %s2878_s28, 1  ;;  %v3474_v3 = vsel %vm623_vm0, 0.0, %v3352_v2  ;;  %v3476_v4 = vsel %vm624_vm1, 0.0, %v3352_v2 }
  0x13   : > { %630 = sbr.rel (%p2893_p4) target bundleno = 1166 (0x48e), region = 88  ;;  %v633_v5 = vld [vmem:[%s3776_s4] sm:$0xff] (!%p2893_p4)  ;;  %s3803_s30 = sld [smem:[#allocation4_spill]] (!%p2893_p4)  ;;  %vm636_vm2 = vcmask (!%p2893_p4), 64512   ;;  %v3353_v8 = vmov (!%p2893_p4), 0.0|0.0   ;;  %vm3354_vm3 = vmmov (!%p2893_p4), 0   ;;  %v718_v10 = vlaneseq (!%p2893_p4) }
  0x14   : > { %s2944_s21 = sshll.u32 %s597_s20, 4  ;;  %3019 = vmatprep.subr.mxu0 (!%p2893_p4), %v633_v5  ;;  %3155 = vmatprep.subr.bf16.mxu1 (!%p2893_p4), %v3353_v8  ;;  %v3355_v9 = vmov (!%p2893_p4), 0.0   ;;  %vm724_vm4 = vcmask (!%p2893_p4), 130048   ;;  %v634_v18 = vld [vmem:[%s3777_s5] sm:$0x3] (!%p2893_p4)  ;;  %s3356_s0 = smov (!%p2893_p4), 112  }
  0x15   : > { %s3481_s24 = scalar_lea.vmem %s3802_s23, %s2944_s21  ;;  %s3486_s29 = scalar_lea.vmem %s3775_s3, %s2944_s21  ;;  %3020 = vmatpush3.msra.mxu0 (!%p2893_p4), %v633_v5  ;;  %3028 = vmatprep.mubr.msk.f32.mxu1 (!%p2893_p4), %vm3354_vm3, %v3355_v9  ;;  %v719_v11 = vshrl.u32 (!%p2893_p4), %v718_v10, 7  ;;  %vm3514_vm5 = vmpackc.low (!%p2893_p4), %vm724_vm4, %vm724_vm4  ;;  %v635_v20 = vld [vmem:[%s3778_s6] sm:$0x3] (!%p2893_p4) }
  0x16   : > { %s3491_s1 = scalar_lea.vmem %s3788_s16, %s2944_s21  ;;  %s3496_s15 = scalar_lea.vmem %s3789_s17, %s2944_s21  ;;  %3159 = vmatprep.subr.bf16.mxu0 (!%p2893_p4), %v3353_v8  ;;  %v870_v33 = vrot.slane (!%p2893_p4), %v635_v20, 1 }
  0x17   : > { %s3501_s22 = scalar_lea.vmem %s3790_s18, %s2944_s21  ;;  %v848_v13 = vsub.s32 (!%p2893_p4), 1, %v719_v11  ;;  %s3357_s21 = smov (!%p2893_p4), 16   ;;  %v720_v21 = vsub.s32 (!%p2893_p4), 0, %v719_v11 }
  0x19   : > { %v631_v6 = vld [vmem:[%s3803_s30] sm:$0xff] (!%p2893_p4)  ;;  %v632_v7 = vld [vmem:[%s3803_s30 + $0x8] sm:$0xff] (!%p2893_p4)  ;;  %v849_v19 = vrot.slane (!%p2893_p4), %v634_v18, %v848_v13  ;;  %v721_v22 = vrot.slane (!%p2893_p4), %v634_v18, %v720_v21 }
  0x1a   : > { %3021 = vmatprep.mubr.msk.f32.mxu0 %vm636_vm2, %v631_v6 }
  0x1b   : > { %3022 = vmatmul.mubr.msk.f32.vlgmr.msra.gmra.mrb[0].mxu0 %vm636_vm2, %v632_v7 }
  0x1c   : > { %3035 = vmatprep.mubr.msk.f32.mxu0 %vm3354_vm3, %v3355_v9 }
  0xee   : > { %v3023_v12 = vpop.f32.mrb[0].mxu0 }
  0xef   : > { %v709_v14 = vpop.f32.mrb[1].mxu0  ;;  %v723_v25 = vmul.f32 %v3023_v12, %v721_v22 }
  0xf0   : > { %v3256_v16 = vpack.i.bf16 %v3023_v12, %v709_v14  ;;  %v3156_v17 = vpack.c.bf16 %v3023_v12, %v709_v14  ;;  %v722_v23 = vmul.f32 %v721_v22, %v709_v14 }
  0xf1   : > { %v728_v26 = vsel %vm724_vm4, %v723_v25, 0.0 }
  0xf2   : > { %3257 = vrot.lane.b32.xlu0 %v3256_v16, %s3356_s0  ;;  %3158 = vmatpush3.bf16.xpose.msk.msra.mxu1 %vm3514_vm5, %v3156_v17  ;;  %v725_v24 = vsel %vm724_vm4, %v722_v23, 0.0 }
  0xf3   : > { %3168 = vmatprep.subr.bf16.mxu1 %v3156_v17 }
  0xf6   : > { %851 = vrot.lane.b32.xlu0 %v849_v19, %s3357_s21 }
  0xf9   : > { %3029 = vmatmul.mubr.msk.f32.vlgmr.msra.gmra.mrb[0].mxu1 %vm724_vm4, %v635_v20 }
  0xfa   : > { %3170 = vmatpush3.bf16.msra.mxu1 %v3156_v17 }
 0x115   : > { %726 = vadd.xlane.f32.xlu0 %v725_v24 }
 0x119   : > { %729 = vadd.xlane.f32.xlu0 %v728_v26 }
 0x164   : > { %v3258_v27 = vpop.permute.xlu0 %3257 }
 0x165   : > { %v3260_v28 = vunpack.i.h.bf16 %v3258_v27  ;;  %v3259_v29 = vunpack.i.l.bf16 %v3258_v27 }
 0x167   : > { %v3160_v30 = vpack.c.bf16 %v3260_v28, %v3259_v29 }
 0x168   : > { %v852_v31 = vpop.permute.xlu0 %851 }
 0x169   : > { %3162 = vmatpush3.bf16.xpose.msk.msra.mxu0 %vm3514_vm5, %v3160_v30  ;;  %v854_v32 = vmul.f32 %v852_v31, %v709_v14  ;;  %v855_v34 = vmul.f32 %v3023_v12, %v852_v31 }
 0x16a   : > { %3164 = vmatprep.subr.bf16.mxu0 %v3160_v30 }
 0x16b   : > { %858 = vrot.lane.b32.xlu1 %v854_v32, %s3356_s0 }
 0x16f   : > { %860 = vrot.lane.b32.xlu1 %v855_v34, %s3356_s0 }
 0x170   : > { %3036 = vmatmul.mubr.msk.f32.vlgmr.msra.gmra.mrb[2].mxu0 %vm724_vm4, %v870_v33 }
 0x171   : > { %3166 = vmatpush3.bf16.msra.mxu0 %v3160_v30 }
 0x1a2   : > { %v727_v38 = vpop.xlane.xlu0 %726 }
 0x1a6   : > { %v730_v40 = vpop.xlane.xlu0 %729 }
 0x1cc   : > { %v806_v35 = vpop.f32.mrb[0].mxu1 }
 0x1cd   : > { %v3030_v36 = vpop.f32.mrb[1].mxu1  ;;  %v813_v37 = vrot.slane %v806_v35, %v720_v21 }
 0x1cf   : > { %v814_v39 = vadd.f32 %v813_v37, %v727_v38  ;;  %v815_v41 = vadd.f32 %v813_v37, %v730_v40 }
 0x1d1   : > { %v818_v42 = vmul.f32 0.2, %v814_v39  ;;  %vm816_vm6 = vcmp.gt.f32.partialorder %v814_v39, 0.0  ;;  %v819_v43 = vmul.f32 0.2, %v815_v41  ;;  %vm817_vm7 = vcmp.gt.f32.partialorder %v815_v41, 0.0 }
 0x1d3   : > { %v820_v44 = vsel %vm816_vm6, %v814_v39, %v818_v42  ;;  %v821_v48 = vsel %vm817_vm7, %v815_v41, %v819_v43 }
 0x1d4   : > { %v822_v47 = vadd.f32 %v820_v44, %v3474_v3  ;;  %v823_v52 = vadd.f32 %v821_v48, %v3476_v4 }
 0x1d6   : > { %v824_v51 = vsel %vm724_vm4, %v822_v47, -inf  ;;  %v827_v53 = vsel %vm724_vm4, %v823_v52, -inf }
 0x1dd   : > { %v859_v45 = vpop.permute.xlu1 %858 }
 0x1de   : > { %v864_v46 = vsel %vm724_vm4, %v859_v45, 0.0 }
 0x1df   : > { %865 = vadd.xlane.f32.xlu1 %v864_v46 }
 0x1e1   : > { %v861_v49 = vpop.permute.xlu1 %860 }
 0x1e2   : > { %v867_v50 = vsel %vm724_vm4, %v861_v49, 0.0 }
 0x1e3   : > { %868 = vadd.xlane.f32.xlu0 %v867_v50  ;;  %825 = vmax.xlane.f32.xlu1 %v824_v51 }
 0x1e7   : > { %828 = vmax.xlane.f32.xlu1 %v827_v53 }
 0x243   : > { %v947_v54 = vpop.f32.mrb[2].mxu0 }
 0x244   : > { %v3037_v55 = vpop.f32.mrb[3].mxu0  ;;  %v954_v56 = vrot.slane %v947_v54, %v720_v21 }
 0x26c   : > { %v866_v57 = vpop.xlane.xlu1 %865 }
 0x26d   : > { %v955_v58 = vadd.f32 %v954_v56, %v866_v57 }
 0x26f   : > { %v959_v59 = vmul.f32 0.2, %v955_v58  ;;  %vm957_vm8 = vcmp.gt.f32.partialorder %v955_v58, 0.0 }
 0x270   : > { %v826_v60 = vpop.xlane.xlu1 %825  ;;  %v869_v61 = vpop.xlane.xlu0 %868 }
 0x271   : > { %v830_v62 = vsub.f32 %v822_v47, %v826_v60  ;;  %v956_v63 = vadd.f32 %v954_v56, %v869_v61  ;;  %v961_v0 = vsel %vm957_vm8, %v955_v58, %v959_v59 }
 0x272   : > { %v963_v1 = vadd.f32 %v961_v0, %v3474_v3 }
 0x273   : > { %v832_v2 = vmul.f32 1.442695, %v830_v62  ;;  %v960_v5 = vmul.f32 0.2, %v956_v63  ;;  %vm958_vm9 = vcmp.gt.f32.partialorder %v956_v63, 0.0 }
 0x274   : > { %v829_v6 = vpop.xlane.xlu1 %828  ;;  %v965_v7 = vsel %vm724_vm4, %v963_v1, -inf }
 0x275   : > { %3261 = vpow2.f32 %v832_v2  ;;  %v831_v8 = vsub.f32 %v823_v52, %v829_v6  ;;  %966 = vmax.xlane.f32.xlu0 %v965_v7  ;;  %v962_v9 = vsel %vm958_vm9, %v956_v63, %v960_v5 }
 0x276   : > { %v964_v10 = vadd.f32 %v962_v9, %v3476_v4 }
 0x277   : > { %v834_v11 = vmul.f32 1.442695, %v831_v8 }
 0x278   : > { %v968_v12 = vsel %vm724_vm4, %v964_v10, -inf }
 0x279   : > { %3263 = vpow2.f32 %v834_v11  ;;  %969 = vmax.xlane.f32.xlu0 %v968_v12 }
 0x27f   : > { %v3262_v13 = vpop.eup %3261 }
 0x280   : > { %v836_v14 = vsel %vm724_vm4, %v3262_v13, 0.0 }
 0x281   : > { %837 = vadd.xlane.f32.xlu1 %v836_v14 }
 0x283   : > { %v3264_v15 = vpop.eup %3263 }
 0x284   : > { %v839_v16 = vsel %vm724_vm4, %v3264_v15, 0.0 }
 0x285   : > { %840 = vadd.xlane.f32.xlu1 %v839_v16 }
 0x302   : > { %v967_v17 = vpop.xlane.xlu0 %966 }
 0x303   : > { %v971_v18 = vsub.f32 %v963_v1, %v967_v17 }
 0x305   : > { %v973_v19 = vmul.f32 1.442695, %v971_v18 }
 0x306   : > { %v970_v20 = vpop.xlane.xlu0 %969 }
 0x307   : > { %3265 = vpow2.f32 %v973_v19  ;;  %v972_v21 = vsub.f32 %v964_v10, %v970_v20 }
 0x309   : > { %v975_v22 = vmul.f32 1.442695, %v972_v21 }
 0x30b   : > { %3267 = vpow2.f32 %v975_v22 }
 0x30e   : > { %v838_v23 = vpop.xlane.xlu1 %837 }
 0x30f   : > { %3269 = vrcp.f32 %v838_v23 }
 0x311   : > { %v3266_v24 = vpop.eup %3265 }
 0x312   : > { %v841_v25 = vpop.xlane.xlu1 %840  ;;  %v977_v26 = vsel %vm724_vm4, %v3266_v24, 0.0 }
 0x313   : > { %3271 = vrcp.f32 %v841_v25  ;;  %978 = vadd.xlane.f32.xlu0 %v977_v26 }
 0x315   : > { %v3268_v27 = vpop.eup %3267 }
 0x316   : > { %v980_v28 = vsel %vm724_vm4, %v3268_v27, 0.0 }
 0x317   : > { %981 = vadd.xlane.f32.xlu0 %v980_v28 }
 0x319   : > { %v3270_v29 = vpop.eup %3269 }
 0x31a   : > { %v843_v30 = vmul.f32 %v3270_v29, %v3262_v13 }
 0x31c   : > { %3049 = vmatprep.mubr.msk.f32.mxu1 %vm724_vm4, %v843_v30 }
 0x31d   : > { %v3272_v31 = vpop.eup %3271 }
 0x31e   : > { %v845_v32 = vmul.f32 %v3272_v31, %v3264_v15 }
 0x320   : > { %3050 = vmatmul.mubr.msk.f32.vlgmr.msra.gmra.mrb[2].mxu1 %vm724_vm4, %v845_v32 }
 0x3a0   : > { %v979_v33 = vpop.xlane.xlu0 %978 }
 0x3a1   : > { %3273 = vrcp.f32 %v979_v33 }
 0x3a4   : > { %v982_v34 = vpop.xlane.xlu0 %981 }
 0x3a5   : > { %3275 = vrcp.f32 %v982_v34 }
 0x3ab   : > { %v3274_v35 = vpop.eup %3273 }
 0x3ac   : > { %v984_v36 = vmul.f32 %v3274_v35, %v3266_v24 }
 0x3ae   : > { %3042 = vmatprep.mubr.msk.f32.mxu0 %vm724_vm4, %v984_v36 }
 0x3af   : > { %v3276_v37 = vpop.eup %3275 }
 0x3b0   : > { %v986_v38 = vmul.f32 %v3276_v37, %v3268_v27 }
 0x3b2   : > { %3043 = vmatmul.mubr.msk.f32.vlgmr.msra.gmra.mrb[4].mxu0 %vm724_vm4, %v986_v38 }
 0x3f3   : > { %v3051_v39 = vpop.f32.mrb[2].mxu1 }
 0x3f4   : > { %v1142_v40 = vpop.f32.mrb[3].mxu1 }
 0x485   : > { %v3044_v41 = vpop.f32.mrb[4].mxu0 }
 0x486   : > { %v1148_v42 = vadd.f32 %v3051_v39, %v3044_v41  ;;  %v1061_v43 = vpop.f32.mrb[5].mxu0 }
 0x487   : > { %v1143_v44 = vadd.f32 %v1142_v40, %v1061_v43 }
 0x488   : > { %v1152_v45 = vmul.f32 0.5, %v1148_v42 }
 0x489   : > { %v1151_v46 = vmul.f32 0.5, %v1143_v44 }
 0x48a   : > { %v1154_v47 = vmax.f32 %v1152_v45, 0.0 }
 0x48b   : > { %v1153_v48 = vmax.f32 %v1151_v46, 0.0 }
 0x48c   : > { %1156 = vst.msk [vmem:[#allocation2 + $0x8] sm:$0xff] %vm724_vm4, %v1154_v47 }
 0x48d   : > { %1155 = vst.msk [vmem:[#allocation2] sm:$0xff] %vm724_vm4, %v1153_v48 }
 0x48e PF: > { %v1161_v49 = vld [vmem:[%s3779_s7] sm:$0xff]  ;;  %vm1164_vm10 = vcmask 64512   ;;  %v1160_v51 = vld [vmem:[%s3481_s24 + $0x8] sm:$0xff]  ;;  %v3358_v52 = vmov 0.0|0.0   ;;  %vm3359_vm11 = vmmov 0   ;;  %v3360_v53 = vmov 0.0  }
 0x48f   : > { %v1159_v50 = vld [vmem:[%s3481_s24] sm:$0xff]  ;;  %3052 = vmatprep.subr.mxu0 %v1161_v49  ;;  %3171 = vmatprep.subr.bf16.mxu1 %v3358_v52  ;;  %v1246_v54 = vlaneseq  ;;  %vm1252_vm12 = vcmask 130048   ;;  %s3361_s19 = smov 112   ;;  %s3362_s27 = smov 16   ;;  %vm3632_vm2 = vmpackc.low %vm1164_vm10, %vm1164_vm10 }
 0x490   : > { %3054 = vmatprep.mubr.msk.f32.mxu0 %vm1164_vm10, %v1159_v50  ;;  %3053 = vmatpush3.msra.mxu0 %v1161_v49  ;;  %vm3569_vm13 = vmpackc.low %vm1252_vm12, %vm1252_vm12  ;;  %v1162_v62 = vld [vmem:[%s3780_s8] sm:$0x3]  ;;  %s3363_s24 = smov 8   ;;  %s3364_s26 = smov 120  }
 0x491   : > { %3055 = vmatmul.mubr.msk.f32.vlgmr.msra.gmra.mrb[0].mxu0 %vm1164_vm10, %v1160_v51  ;;  %3175 = vmatprep.subr.bf16.mxu0 %v3358_v52  ;;  %v1247_v55 = vshrl.u32 %v1246_v54, 7  ;;  %v1163_v0 = vld [vmem:[%s3781_s9] sm:$0x3]  ;;  %s3810_s23 = sld [smem:[#allocation7_spill]] }
 0x492   : > { %3061 = vmatprep.mubr.msk.f32.mxu1 %vm3359_vm11, %v3360_v53  ;;  %3068 = vmatprep.mubr.msk.f32.mxu0 %vm3359_vm11, %v3360_v53  ;;  %v1398_v15 = vrot.slane %v1163_v0, 1 }
 0x493   : > { %v3565_v57 = vsub.s32 1, %v1247_v55  ;;  %v3584_v1 = vsub.s32 0, %v1247_v55 }
 0x495   : > { %v1377_v63 = vrot.slane %v1162_v62, %v3565_v57  ;;  %v1249_v2 = vrot.slane %v1162_v62, %v3584_v1 }
 0x564   : > { %v3056_v56 = vpop.f32.mrb[0].mxu0 }
 0x565   : > { %v1237_v58 = vpop.f32.mrb[1].mxu0  ;;  %v1251_v7 = vmul.f32 %v3056_v56, %v1249_v2 }
 0x566   : > { %v3277_v60 = vpack.i.bf16 %v3056_v56, %v1237_v58  ;;  %v3172_v61 = vpack.c.bf16 %v3056_v56, %v1237_v58  ;;  %v1250_v5 = vmul.f32 %v1249_v2, %v1237_v58 }
 0x567   : > { %v1256_v8 = vsel %vm1252_vm12, %v1251_v7, 0.0 }
 0x568   : > { %3278 = vrot.lane.b32.xlu0 %v3277_v60, %s3361_s19  ;;  %3174 = vmatpush3.bf16.xpose.msk.msra.mxu1 %vm3569_vm13, %v3172_v61  ;;  %v1253_v6 = vsel %vm1252_vm12, %v1250_v5, 0.0 }
 0x569   : > { %3184 = vmatprep.subr.bf16.mxu1 %v3172_v61 }
 0x56c   : > { %1379 = vrot.lane.b32.xlu0 %v1377_v63, %s3362_s27  ;;  %s3811_s27 = sld [smem:[#allocation8_spill]] }
 0x56f   : > { %3062 = vmatmul.mubr.msk.f32.vlgmr.msra.gmra.mrb[0].mxu1 %vm1252_vm12, %v1163_v0 }
 0x570   : > { %3186 = vmatpush3.bf16.msra.mxu1 %v3172_v61 }
 0x571   : > { %3195 = vmatprep.subr.bf16.mxu1 %v3358_v52 }
 0x58b   : > { %1254 = vadd.xlane.f32.xlu0 %v1253_v6 }
 0x58f   : > { %1257 = vadd.xlane.f32.xlu0 %v1256_v8 }
 0x5da   : > { %v3279_v9 = vpop.permute.xlu0 %3278 }
 0x5db   : > { %v3281_v10 = vunpack.i.h.bf16 %v3279_v9  ;;  %v3280_v11 = vunpack.i.l.bf16 %v3279_v9 }
 0x5dd   : > { %v3176_v12 = vpack.c.bf16 %v3281_v10, %v3280_v11 }
 0x5de   : > { %v1380_v13 = vpop.permute.xlu0 %1379 }
 0x5df   : > { %3178 = vmatpush3.bf16.xpose.msk.msra.mxu0 %vm3569_vm13, %v3176_v12  ;;  %v1382_v14 = vmul.f32 %v1380_v13, %v1237_v58  ;;  %v1383_v16 = vmul.f32 %v3056_v56, %v1380_v13 }
 0x5e0   : > { %3180 = vmatprep.subr.bf16.mxu0 %v3176_v12 }
 0x5e1   : > { %1386 = vrot.lane.b32.xlu1 %v1382_v14, %s3361_s19 }
 0x5e5   : > { %1388 = vrot.lane.b32.xlu1 %v1383_v16, %s3361_s19 }
 0x5e6   : > { %3069 = vmatmul.mubr.msk.f32.vlgmr.msra.gmra.mrb[2].mxu0 %vm1252_vm12, %v1398_v15 }
 0x5e7   : > { %3182 = vmatpush3.bf16.msra.mxu0 %v3176_v12 }
 0x618   : > { %v1255_v20 = vpop.xlane.xlu0 %1254 }
 0x61c   : > { %v1258_v22 = vpop.xlane.xlu0 %1257 }
 0x642   : > { %v1334_v17 = vpop.f32.mrb[0].mxu1 }
 0x643   : > { %v3063_v18 = vpop.f32.mrb[1].mxu1  ;;  %v1341_v19 = vrot.slane %v1334_v17, %v3584_v1 }
 0x645   : > { %v1342_v21 = vadd.f32 %v1341_v19, %v1255_v20  ;;  %v1343_v23 = vadd.f32 %v1341_v19, %v1258_v22 }
 0x647   : > { %v1346_v24 = vmul.f32 0.2, %v1342_v21  ;;  %vm1344_vm14 = vcmp.gt.f32.partialorder %v1342_v21, 0.0  ;;  %v1347_v25 = vmul.f32 0.2, %v1343_v23  ;;  %vm1345_vm15 = vcmp.gt.f32.partialorder %v1343_v23, 0.0 }
 0x649   : > { %v1348_v26 = vsel %vm1344_vm14, %v1342_v21, %v1346_v24  ;;  %v1349_v30 = vsel %vm1345_vm15, %v1343_v23, %v1347_v25 }
 0x64a   : > { %v1350_v29 = vadd.f32 %v1348_v26, %v3474_v3  ;;  %v1351_v34 = vadd.f32 %v1349_v30, %v3476_v4  ;;  %v1687_v30 = vld [vmem:[%s3783_s11] sm:$0x3] }
 0x64c   : > { %v1352_v33 = vsel %vm1252_vm12, %v1350_v29, -inf  ;;  %v1355_v35 = vsel %vm1252_vm12, %v1351_v34, -inf }
 0x653   : > { %v1387_v27 = vpop.permute.xlu1 %1386 }
 0x654   : > { %v1392_v28 = vsel %vm1252_vm12, %v1387_v27, 0.0  ;;  %v1685_v27 = vld [vmem:[%s3782_s10] sm:$0xff] }
 0x655   : > { %1393 = vadd.xlane.f32.xlu1 %v1392_v28  ;;  %v1686_v28 = vld [vmem:[%s3782_s10 + $0x8] sm:$0xff] }
 0x657   : > { %v1389_v31 = vpop.permute.xlu1 %1388 }
 0x658   : > { %v1395_v32 = vsel %vm1252_vm12, %v1389_v31, 0.0  ;;  %v1900_v31 = vrot.slane %v1687_v30, %v3565_v57 }
 0x659   : > { %1396 = vadd.xlane.f32.xlu0 %v1395_v32  ;;  %1353 = vmax.xlane.f32.xlu1 %v1352_v33 }
 0x65d   : > { %1356 = vmax.xlane.f32.xlu1 %v1355_v35 }
 0x6b9   : > { %v1475_v36 = vpop.f32.mrb[2].mxu0 }
 0x6ba   : > { %v3070_v37 = vpop.f32.mrb[3].mxu0  ;;  %v1482_v38 = vrot.slane %v1475_v36, %v3584_v1 }
 0x6bb   : > { %v1158_v37 = vld [vmem:[#allocation2 + $0x8] sm:$0xff] }
 0x6e2   : > { %v1394_v39 = vpop.xlane.xlu1 %1393 }
 0x6e3   : > { %v1483_v40 = vadd.f32 %v1482_v38, %v1394_v39 }
 0x6e5   : > { %v1487_v41 = vmul.f32 0.2, %v1483_v40  ;;  %vm1485_vm0 = vcmp.gt.f32.partialorder %v1483_v40, 0.0 }
 0x6e6   : > { %v1354_v42 = vpop.xlane.xlu1 %1353  ;;  %v1397_v43 = vpop.xlane.xlu0 %1396 }
 0x6e7   : > { %v1358_v44 = vsub.f32 %v1350_v29, %v1354_v42  ;;  %v1484_v45 = vadd.f32 %v1482_v38, %v1397_v43  ;;  %v1489_v46 = vsel %vm1485_vm0, %v1483_v40, %v1487_v41  ;;  %v3187_v29 = vpack.c.bf16 %v1686_v28, %v1685_v27  ;;  %v1157_v40 = vld [vmem:[#allocation2] sm:$0xff] }
 0x6e8   : > { %v1491_v47 = vadd.f32 %v1489_v46, %v3474_v3 }
 0x6e9   : > { %v1360_v48 = vmul.f32 1.442695, %v1358_v44  ;;  %v1488_v49 = vmul.f32 0.2, %v1484_v45  ;;  %vm1486_vm1 = vcmp.gt.f32.partialorder %v1484_v45, 0.0  ;;  %3188 = vmatprep.subr.bf16.mxu0 %v3187_v29 }
 0x6ea   : > { %v1357_v50 = vpop.xlane.xlu1 %1356  ;;  %v1493_v51 = vsel %vm1252_vm12, %v1491_v47, -inf }
 0x6eb   : > { %3292 = vpow2.f32 %v1360_v48  ;;  %v1359_v54 = vsub.f32 %v1351_v34, %v1357_v50  ;;  %1494 = vmax.xlane.f32.xlu0 %v1493_v51  ;;  %v1490_v55 = vsel %vm1486_vm1, %v1484_v45, %v1488_v49 }
 0x6ec   : > { %v1492_v56 = vadd.f32 %v1490_v55, %v3476_v4 }
 0x6ed   : > { %v1362_v58 = vmul.f32 1.442695, %v1359_v54 }
 0x6ee   : > { %v1496_v59 = vsel %vm1252_vm12, %v1492_v56, -inf }
 0x6ef   : > { %3294 = vpow2.f32 %v1362_v58  ;;  %1497 = vmax.xlane.f32.xlu0 %v1496_v59  ;;  %v1688_v58 = vld [vmem:[%s3784_s12] sm:$0x3] }
 0x6f5   : > { %v3293_v60 = vpop.eup %3292 }
 0x6f6   : > { %v1364_v61 = vsel %vm1252_vm12, %v3293_v60, 0.0 }
 0x6f7   : > { %1365 = vadd.xlane.f32.xlu1 %v1364_v61  ;;  %v2208_v61 = vld [vmem:[%s3785_s13] sm:$0xff] }
 0x6f9   : > { %v3295_v62 = vpop.eup %3294 }
 0x6fa   : > { %v1367_v63 = vsel %vm1252_vm12, %v3295_v62, 0.0 }
 0x6fb   : > { %1368 = vadd.xlane.f32.xlu1 %v1367_v63 }
 0x778   : > { %v1495_v0 = vpop.xlane.xlu0 %1494 }
 0x779   : > { %v1499_v2 = vsub.f32 %v1491_v47, %v1495_v0 }
 0x77b   : > { %v1501_v5 = vmul.f32 1.442695, %v1499_v2  ;;  %v1773_v2 = vrot.slane %v1687_v30, %v3584_v1 }
 0x77c   : > { %v1498_v6 = vpop.xlane.xlu0 %1497 }
 0x77d   : > { %3296 = vpow2.f32 %v1501_v5  ;;  %v1500_v7 = vsub.f32 %v1492_v56, %v1498_v6 }
 0x77f   : > { %v1503_v8 = vmul.f32 1.442695, %v1500_v7 }
 0x781   : > { %3298 = vpow2.f32 %v1503_v8 }
 0x784   : > { %v1366_v9 = vpop.xlane.xlu1 %1365 }
 0x785   : > { %3300 = vrcp.f32 %v1366_v9 }
 0x787   : > { %v3297_v10 = vpop.eup %3296 }
 0x788   : > { %v1369_v11 = vpop.xlane.xlu1 %1368  ;;  %v1505_v12 = vsel %vm1252_vm12, %v3297_v10, 0.0 }
 0x789   : > { %3302 = vrcp.f32 %v1369_v11  ;;  %1506 = vadd.xlane.f32.xlu0 %v1505_v12 }
 0x78b   : > { %v3299_v13 = vpop.eup %3298 }
 0x78c   : > { %v1508_v14 = vsel %vm1252_vm12, %v3299_v13, 0.0 }
 0x78d   : > { %1509 = vadd.xlane.f32.xlu0 %v1508_v14 }
 0x78f   : > { %v3301_v15 = vpop.eup %3300 }
 0x790   : > { %v1371_v16 = vmul.f32 %v3301_v15, %v3293_v60 }
 0x792   : > { %3082 = vmatprep.mubr.msk.f32.mxu1 %vm1252_vm12, %v1371_v16 }
 0x793   : > { %v3303_v17 = vpop.eup %3302 }
 0x794   : > { %v1373_v18 = vmul.f32 %v3303_v17, %v3295_v62  ;;  %v2209_v62 = vld [vmem:[%s3785_s13 + $0x8] sm:$0xff] }
 0x795   : > { %v3207_v6 = vpack.c.bf16 %v2209_v62, %v2208_v61 }
 0x796   : > { %3083 = vmatmul.mubr.msk.f32.vlgmr.msra.gmra.mrb[2].mxu1 %vm1252_vm12, %v1373_v18 }
 0x797   : > { %3103 = vmatprep.mubr.msk.f32.mxu1 %vm3359_vm11, %v3360_v53 }
 0x7a3   : > { %1902 = vrot.lane.b32.xlu0 %v1900_v31, %s3363_s24 }
 0x816   : > { %v1507_v19 = vpop.xlane.xlu0 %1506 }
 0x817   : > { %3304 = vrcp.f32 %v1507_v19 }
 0x81a   : > { %v1510_v20 = vpop.xlane.xlu0 %1509 }
 0x81b   : > { %3306 = vrcp.f32 %v1510_v20 }
 0x81e   : > { %v1903_v55 = vpop.permute.xlu0 %1902 }
 0x821   : > { %v3305_v21 = vpop.eup %3304 }
 0x822   : > { %v1512_v22 = vmul.f32 %v3305_v21, %v3297_v10  ;;  %v1921_v10 = vrot.slane %v1688_v58, 1 }
 0x824   : > { %3075 = vmatprep.mubr.msk.f32.mxu0 %vm1252_vm12, %v1512_v22 }
 0x825   : > { %v3307_v23 = vpop.eup %3306 }
 0x826   : > { %v1514_v24 = vmul.f32 %v3307_v23, %v3299_v13 }
 0x828   : > { %3076 = vmatmul.mubr.msk.f32.vlgmr.msra.gmra.mrb[4].mxu0 %vm1252_vm12, %v1514_v24 }
 0x829   : > { %3190 = vmatpush3.bf16.msra.mxu0 %v3187_v29 }
 0x82a   : > { %3191 = vmatprep.subr.bf16.mxu0 %v3358_v52 }
 0x869   : > { %v3084_v25 = vpop.f32.mrb[2].mxu1 }
 0x86a   : > { %v1670_v26 = vpop.f32.mrb[3].mxu1 }
 0x8fb   : > { %v3077_v32 = vpop.f32.mrb[4].mxu0 }
 0x8fc   : > { %v1676_v33 = vadd.f32 %v3084_v25, %v3077_v32  ;;  %v1589_v34 = vpop.f32.mrb[5].mxu0 }
 0x8fd   : > { %v1671_v35 = vadd.f32 %v1670_v26, %v1589_v34 }
 0x8fe   : > { %v1680_v36 = vmul.f32 0.5, %v1676_v33 }
 0x8ff   : > { %v1679_v38 = vmul.f32 0.5, %v1671_v35 }
 0x900   : > { %v1682_v39 = vmax.f32 %v1680_v36, 0.0 }
 0x901   : > { %v1681_v41 = vmax.f32 %v1679_v38, 0.0 }
 0x902   : > { %v1684_v42 = vadd.f32 %v1682_v39, %v1158_v37 }
 0x903   : > { %v1683_v43 = vadd.f32 %v1681_v41, %v1157_v40 }
 0x904   : > { %v2205_v44 = vmul.f32 0.0, %v1684_v42 }
 0x905   : > { %v2204_v45 = vmul.f32 0.0, %v1683_v43  ;;  %3089 = vmatprep.mubr.msk.f32.mxu0 %vm1252_vm12, %v1683_v43 }
 0x906   : > { %v2207_v46 = vadd.f32 %v2205_v44, %v1158_v37  ;;  %3090 = vmatmul.mubr.msk.f32.vlgmr.msra.gmra.mrb[6].mxu0 %vm1252_vm12, %v1684_v42 }
 0x907   : > { %v2206_v47 = vadd.f32 %v2204_v45, %v1157_v40  ;;  %3096 = vmatprep.mubr.msk.f32.mxu0 %vm3359_vm11, %v3360_v53 }
 0x9d9   : > { %v3091_v48 = vpop.f32.mrb[6].mxu0 }
 0x9da   : > { %v1761_v49 = vpop.f32.mrb[7].mxu0  ;;  %v1906_v59 = vmul.f32 %v3091_v48, %v1903_v55  ;;  %v1775_v14 = vmul.f32 %v3091_v48, %v1773_v2 }
 0x9db   : > { %v3636_v51 = vpack.c.bf16 %v3091_v48, %v1761_v49  ;;  %v3282_v54 = vpack.i.bf16 %v3091_v48, %v1761_v49  ;;  %v1905_v56 = vmul.f32 %v1903_v55, %v1761_v49  ;;  %v1774_v9 = vmul.f32 %v1773_v2, %v1761_v49 }
 0x9dc   : > { %v1779_v15 = vsel %vm1164_vm10, %v1775_v14, 0.0  ;;  %v2210_v14 = vld [vmem:[%s3810_s23] sm:$0x3] }
 0x9dd   : > { %3283 = vrot.lane.b32.xlu1 %v3282_v54, %s3364_s26  ;;  %3194 = vmatpush3.bf16.xpose.msk.msra.mxu0 %vm3632_vm2, %v3636_v51  ;;  %v1776_v13 = vsel %vm1164_vm10, %v1774_v9, 0.0 }
 0x9e1   : > { %1909 = vrot.lane.b32.xlu1 %v1905_v56, %s3364_s26 }
 0x9e4   : > { %3097 = vmatmul.mubr.msk.f32.vlgmr.msra.gmra.mrb[8].mxu0 %vm1164_vm10, %v1688_v58 }
 0x9e5   : > { %1911 = vrot.lane.b32.xlu1 %v1906_v59, %s3364_s26 }
 0xa4f   : > { %v3284_v60 = vpop.permute.xlu1 %3283 }
 0xa50   : > { %v3286_v63 = vunpack.i.h.bf16 %v3284_v60  ;;  %v3285_v0 = vunpack.i.l.bf16 %v3284_v60 }
 0xa52   : > { %v3196_v5 = vpack.c.bf16 %v3286_v63, %v3285_v0 }
 0xa53   : > { %v1910_v7 = vpop.permute.xlu1 %1909 }
 0xa54   : > { %3198 = vmatpush3.bf16.xpose.msk.msra.mxu1 %vm3632_vm2, %v3196_v5  ;;  %3200 = vmatprep.subr.bf16.mxu0 %v3196_v5  ;;  %v1915_v8 = vsel %vm1164_vm10, %v1910_v7, 0.0 }
 0xa55   : > { %1916 = vadd.xlane.f32.xlu0 %v1915_v8  ;;  %3202 = vmatpush3.bf16.msra.mxu0 %v3196_v5 }
 0xa56   : > { %3204 = vmatprep.subr.bf16.mxu0 %v3636_v51  ;;  %3208 = vmatprep.subr.bf16.mxu1 %v3207_v6 }
 0xa57   : > { %v1912_v11 = vpop.permute.xlu1 %1911 }
 0xa58   : > { %v1918_v12 = vsel %vm1164_vm10, %v1912_v11, 0.0 }
 0xa59   : > { %1919 = vadd.xlane.f32.xlu1 %v1918_v12  ;;  %1777 = vadd.xlane.f32.xlu0 %v1776_v13 }
 0xa5b   : > { %3104 = vmatmul.mubr.msk.f32.vlgmr.msra.gmra.mrb[4].mxu1 %vm1164_vm10, %v1921_v10 }
 0xa5c   : > { %3210 = vmatpush3.bf16.msra.mxu1 %v3207_v6  ;;  %3124 = vmatprep.mubr.msk.f32.mxu1 %vm1252_vm12, %v2206_v47 }
 0xa5d   : > { %1780 = vadd.xlane.f32.xlu0 %v1779_v15  ;;  %3211 = vmatprep.subr.bf16.mxu1 %v3358_v52  ;;  %v2423_v15 = vrot.slane %v2210_v14, %v3565_v57 }
 0xa5f   : > { %3125 = vmatmul.mubr.msk.f32.vlgmr.msra.gmra.mrb[6].mxu1 %vm1252_vm12, %v2207_v46 }
 0xa60   : > { %3131 = vmatprep.mubr.msk.f32.mxu1 %vm3359_vm11, %v3360_v53 }
 0xab7   : > { %v1857_v16 = vpop.f32.mrb[8].mxu0 }
 0xab8   : > { %v3098_v17 = vpop.f32.mrb[9].mxu0  ;;  %v1864_v20 = vrot.slane %v1857_v16, %v3584_v1  ;;  %v2211_v16 = vld [vmem:[%s3811_s27] sm:$0x3] }
 0xae2   : > { %v1917_v18 = vpop.xlane.xlu0 %1916 }
 0xae6   : > { %v1778_v19 = vpop.xlane.xlu0 %1777  ;;  %v1920_v27 = vpop.xlane.xlu1 %1919 }
 0xae7   : > { %v1865_v22 = vadd.f32 %v1864_v20, %v1778_v19 }
 0xae9   : > { %v1869_v28 = vmul.f32 0.2, %v1865_v22  ;;  %vm1867_vm3 = vcmp.gt.f32.partialorder %v1865_v22, 0.0 }
 0xaea   : > { %v1781_v21 = vpop.xlane.xlu0 %1780 }
 0xaeb   : > { %v1866_v23 = vadd.f32 %v1864_v20, %v1781_v21  ;;  %v1871_v40 = vsel %vm1867_vm3, %v1865_v22, %v1869_v28 }
 0xaec   : > { %v1873_v46 = vadd.f32 %v1871_v40, %v3474_v3 }
 0xaed   : > { %v1870_v29 = vmul.f32 0.2, %v1866_v23  ;;  %vm1868_vm4 = vcmp.gt.f32.partialorder %v1866_v23, 0.0 }
 0xaee   : > { %v1875_v48 = vsel %vm1252_vm12, %v1873_v46, -inf }
 0xaef   : > { %v1872_v41 = vsel %vm1868_vm4, %v1866_v23, %v1870_v29 }
 0xaf0   : > { %v1874_v47 = vadd.f32 %v1872_v41, %v3476_v4 }
 0xaf2   : > { %v1878_v49 = vsel %vm1252_vm12, %v1874_v47, -inf }
 0xb2e   : > { %v1998_v24 = vpop.f32.mrb[4].mxu1 }
 0xb2f   : > { %v2005_v25 = vrot.slane %v1998_v24, %v3584_v1  ;;  %v3105_v26 = vpop.f32.mrb[5].mxu1 }
 0xb31   : > { %v2006_v30 = vadd.f32 %v2005_v25, %v1917_v18  ;;  %v2007_v31 = vadd.f32 %v2005_v25, %v1920_v27 }
 0xb32   : > { %v3670_v32 = vpop.f32.mrb[6].mxu1 }
 0xb33   : > { %v2010_v33 = vmul.f32 0.2, %v2006_v30  ;;  %v2011_v34 = vmul.f32 0.2, %v2007_v31  ;;  %v3672_v35 = vpop.f32.mrb[7].mxu1  ;;  %vm2008_vm5 = vcmp.gt.f32.partialorder %v2006_v30, 0.0 }
 0xb34   : > { %v3676_v36 = vpack.c.bf16 %v3670_v32, %v3672_v35  ;;  %vm2009_vm6 = vcmp.gt.f32.partialorder %v2007_v31, 0.0  ;;  %v3287_v37 = vpack.i.bf16 %v3670_v32, %v3672_v35 }
 0xb35   : > { %v2012_v38 = vsel %vm2008_vm5, %v2006_v30, %v2010_v33  ;;  %v2013_v39 = vsel %vm2009_vm6, %v2007_v31, %v2011_v34 }
 0xb36   : > { %3214 = vmatpush3.bf16.xpose.msk.msra.mxu1 %vm3632_vm2, %v3676_v36  ;;  %v2014_v42 = vadd.f32 %v2012_v38, %v3474_v3  ;;  %v2015_v43 = vadd.f32 %v2013_v39, %v3476_v4  ;;  %v2444_v38 = vrot.slane %v2211_v16, 1 }
 0xb38   : > { %v2016_v44 = vsel %vm1252_vm12, %v2014_v42, -inf  ;;  %v2019_v45 = vsel %vm1252_vm12, %v2015_v43, -inf }
 0xb39   : > { %2017 = vmax.xlane.f32.xlu1 %v2016_v44  ;;  %2020 = vmax.xlane.f32.xlu0 %v2019_v45 }
 0xb3d   : > { %1876 = vmax.xlane.f32.xlu1 %v1875_v48  ;;  %1879 = vmax.xlane.f32.xlu0 %v1878_v49 }
 0xb3e   : > { %3132 = vmatmul.mubr.msk.f32.vlgmr.msra.gmra.mrb[8].mxu1 %vm1164_vm10, %v2211_v16 }
 0xbc6   : > { %v2018_v54 = vpop.xlane.xlu1 %2017  ;;  %v2021_v55 = vpop.xlane.xlu0 %2020 }
 0xbc7   : > { %v2022_v56 = vsub.f32 %v2014_v42, %v2018_v54  ;;  %v2023_v58 = vsub.f32 %v2015_v43, %v2021_v55 }
 0xbc9   : > { %v2024_v59 = vmul.f32 1.442695, %v2022_v56  ;;  %v2026_v60 = vmul.f32 1.442695, %v2023_v58 }
 0xbca   : > { %v1877_v61 = vpop.xlane.xlu1 %1876  ;;  %v1880_v62 = vpop.xlane.xlu0 %1879 }
 0xbcb   : > { %3308 = vpow2.f32 %v2024_v59  ;;  %v1881_v63 = vsub.f32 %v1873_v46, %v1877_v61  ;;  %v1882_v0 = vsub.f32 %v1874_v47, %v1880_v62 }
 0xbcc   : > { %3310 = vpow2.f32 %v2026_v60 }
 0xbcd   : > { %v1883_v2 = vmul.f32 1.442695, %v1881_v63  ;;  %v1885_v5 = vmul.f32 1.442695, %v1882_v0 }
 0xbcf   : > { %3312 = vpow2.f32 %v1883_v2 }
 0xbd0   : > { %3314 = vpow2.f32 %v1885_v5 }
 0xbd5   : > { %v3309_v6 = vpop.eup %3308 }
 0xbd6   : > { %v3311_v7 = vpop.eup %3310  ;;  %v2028_v8 = vsel %vm1252_vm12, %v3309_v6, 0.0 }
 0xbd7   : > { %2029 = vadd.xlane.f32.xlu1 %v2028_v8  ;;  %v2031_v9 = vsel %vm1252_vm12, %v3311_v7, 0.0 }
 0xbd8   : > { %2032 = vadd.xlane.f32.xlu0 %v2031_v9 }
 0xbd9   : > { %v3313_v10 = vpop.eup %3312 }
 0xbda   : > { %v3315_v11 = vpop.eup %3314  ;;  %v1887_v12 = vsel %vm1252_vm12, %v3313_v10, 0.0 }
 0xbdb   : > { %1888 = vadd.xlane.f32.xlu1 %v1887_v12  ;;  %v1890_v13 = vsel %vm1252_vm12, %v3315_v11, 0.0 }
 0xbdc   : > { %1891 = vadd.xlane.f32.xlu0 %v1890_v13 }
 0xbec   : > { %3288 = vrot.lane.b32.xlu1 %v3287_v37, %s3364_s26 }
 0xbf2   : > { %2425 = vrot.lane.b32.xlu0 %v2423_v15, %s3363_s24 }
 0xc11   : > { %v2380_v44 = vpop.f32.mrb[8].mxu1 }
 0xc12   : > { %v3133_v45 = vpop.f32.mrb[9].mxu1  ;;  %v2387_v58 = vrot.slane %v2380_v44, %v3584_v1 }
 0xc64   : > { %v2030_v17 = vpop.xlane.xlu1 %2029 }
 0xc65   : > { %3316 = vrcp.f32 %v2030_v17  ;;  %v2033_v18 = vpop.xlane.xlu0 %2032 }
 0xc66   : > { %3318 = vrcp.f32 %v2033_v18 }
 0xc68   : > { %v1889_v19 = vpop.xlane.xlu1 %1888 }
 0xc69   : > { %3320 = vrcp.f32 %v1889_v19  ;;  %v1892_v20 = vpop.xlane.xlu0 %1891 }
 0xc6a   : > { %3322 = vrcp.f32 %v1892_v20 }
 0xc6c   : > { %v3289_v21 = vpop.permute.xlu1 %3288 }
 0xc6d   : > { %v3291_v22 = vunpack.i.h.bf16 %v3289_v21  ;;  %v3290_v23 = vunpack.i.l.bf16 %v3289_v21  ;;  %v2426_v57 = vpop.permute.xlu0 %2425 }
 0xc6e   : > { %v2428_v24 = vmul.f32 %v2426_v57, %v3672_v35  ;;  %v2429_v30 = vmul.f32 %v3670_v32, %v2426_v57 }
 0xc6f   : > { %v3317_v25 = vpop.eup %3316  ;;  %v3216_v26 = vpack.c.bf16 %v3291_v22, %v3290_v23 }
 0xc70   : > { %v3319_v27 = vpop.eup %3318  ;;  %2432 = vrot.lane.b32.xlu1 %v2428_v24, %s3364_s26  ;;  %v2035_v28 = vmul.f32 %v3317_v25, %v3309_v6 }
 0xc71   : > { %v2037_v29 = vmul.f32 %v3319_v27, %v3311_v7  ;;  %3220 = vmatprep.subr.bf16.mxu1 %v3216_v26 }
 0xc72   : > { %3110 = vmatprep.mubr.msk.f32.mxu0 %vm1252_vm12, %v2035_v28  ;;  %3222 = vmatpush3.bf16.msra.mxu1 %v3216_v26 }
 0xc73   : > { %v3321_v31 = vpop.eup %3320  ;;  %3111 = vmatmul.mubr.msk.f32.vlgmr.msra.gmra.mrb[10].mxu0 %vm1252_vm12, %v2037_v29  ;;  %3224 = vmatprep.subr.bf16.mxu1 %v3676_v36 }
 0xc74   : > { %3206 = vmatpush3.bf16.msra.mxu0 %v3636_v51  ;;  %2434 = vrot.lane.b32.xlu1 %v2429_v30, %s3364_s26  ;;  %v1894_v33 = vmul.f32 %v3321_v31, %v3313_v10  ;;  %v3323_v34 = vpop.eup %3322  ;;  %v2296_v51 = vrot.slane %v2210_v14, %v3584_v1 }
 0xc75   : > { %3215 = vmatprep.subr.bf16.mxu0 %v3358_v52  ;;  %v1896_v37 = vmul.f32 %v3323_v34, %v3315_v11 }
 0xc76   : > { %3117 = vmatprep.mubr.msk.f32.mxu0 %vm1252_vm12, %v1894_v33  ;;  %v2297_v40 = vmul.f32 %v2296_v51, %v3672_v35  ;;  %v2298_v50 = vmul.f32 %v3670_v32, %v2296_v51 }
 0xc78   : > { %v2299_v42 = vsel %vm1164_vm10, %v2297_v40, 0.0  ;;  %v2302_v43 = vsel %vm1164_vm10, %v2298_v50, 0.0 }
 0xc7b   : > { %3118 = vmatmul.mubr.msk.f32.vlgmr.msra.gmra.mrb[10].mxu0 %vm1252_vm12, %v1896_v37 }
 0xc7c   : > { %3138 = vmatprep.mubr.msk.f32.mxu0 %vm3359_vm11, %v3360_v53 }
 0xc7d   : > { %3218 = vmatpush3.bf16.xpose.msk.msra.mxu0 %vm3632_vm2, %v3216_v26 }
 0xc84   : > { %3139 = vmatmul.mubr.msk.f32.vlgmr.msra.gmra.mrb[12].mxu0 %vm1164_vm10, %v2444_v38 }
 0xce2   : > { %v2433_v39 = vpop.permute.xlu1 %2432 }
 0xce3   : > { %v2438_v52 = vsel %vm1164_vm10, %v2433_v39, 0.0 }
 0xce4   : > { %2439 = vadd.xlane.f32.xlu0 %v2438_v52 }
 0xce6   : > { %v2435_v41 = vpop.permute.xlu1 %2434 }
 0xce7   : > { %v2441_v53 = vsel %vm1164_vm10, %v2435_v41, 0.0 }
 0xce8   : > { %2300 = vadd.xlane.f32.xlu0 %v2299_v42  ;;  %2442 = vadd.xlane.f32.xlu1 %v2441_v53 }
 0xcec   : > { %2303 = vadd.xlane.f32.xlu0 %v2302_v43 }
 0xd4e   : > { %v3119_v46 = vpop.f32.mrb[10].mxu0 }
 0xd4f   : > { %v3728_v47 = vmul.f32 0.5, %v3119_v46  ;;  %v2193_v35 = vpop.f32.mrb[11].mxu0 }
 0xd50   : > { %v3730_v48 = vmul.f32 0.5, %v2193_v35 }
 0xd51   : > { %2740 = vst.msk [vmem:[%s3491_s1 + $0x8] sm:$0xff] %vm1164_vm10, %v3728_v47 }
 0xd52   : > { %2739 = vst.msk [vmem:[%s3491_s1] sm:$0xff] %vm1164_vm10, %v3730_v48 }
 0xd57   : > { %v2521_v32 = vpop.f32.mrb[12].mxu0 }
 0xd58   : > { %v3140_v49 = vpop.f32.mrb[13].mxu0  ;;  %v2528_v54 = vrot.slane %v2521_v32, %v3584_v1 }
 0xd71   : > { %v2440_v55 = vpop.xlane.xlu0 %2439 }
 0xd72   : > { %v2529_v56 = vadd.f32 %v2528_v54, %v2440_v55 }
 0xd74   : > { %v2533_v59 = vmul.f32 0.2, %v2529_v56  ;;  %vm2531_vm7 = vcmp.gt.f32.partialorder %v2529_v56, 0.0 }
 0xd75   : > { %v2301_v60 = vpop.xlane.xlu0 %2300  ;;  %v2443_v61 = vpop.xlane.xlu1 %2442 }
 0xd76   : > { %v2388_v62 = vadd.f32 %v2387_v58, %v2301_v60  ;;  %v2530_v63 = vadd.f32 %v2528_v54, %v2443_v61  ;;  %v2535_v0 = vsel %vm2531_vm7, %v2529_v56, %v2533_v59  ;;  %v2728_v59 = vld [vmem:[%s3486_s29 + $0x8] sm:$0xff]  ;;  %v2727_v60 = vld [vmem:[%s3486_s29] sm:$0xff] }
 0xd77   : > { %v2537_v2 = vadd.f32 %v2535_v0, %v3474_v3 }
 0xd78   : > { %v2392_v5 = vmul.f32 0.2, %v2388_v62  ;;  %v2534_v6 = vmul.f32 0.2, %v2530_v63  ;;  %vm2390_vm8 = vcmp.gt.f32.partialorder %v2388_v62, 0.0  ;;  %vm2532_vm9 = vcmp.gt.f32.partialorder %v2530_v63, 0.0 }
 0xd79   : > { %v2304_v7 = vpop.xlane.xlu0 %2303  ;;  %v2539_v8 = vsel %vm1252_vm12, %v2537_v2, -inf }
 0xd7a   : > { %v2389_v9 = vadd.f32 %v2387_v58, %v2304_v7  ;;  %2540 = vmax.xlane.f32.xlu1 %v2539_v8  ;;  %v2394_v10 = vsel %vm2390_vm8, %v2388_v62, %v2392_v5  ;;  %v2536_v1 = vsel %vm2532_vm9, %v2530_v63, %v2534_v6 }
 0xd7b   : > { %v2396_v11 = vadd.f32 %v2394_v10, %v3474_v3  ;;  %v2538_v12 = vadd.f32 %v2536_v1, %v3476_v4 }
 0xd7c   : > { %v2393_v13 = vmul.f32 0.2, %v2389_v9  ;;  %vm2391_vm11 = vcmp.gt.f32.partialorder %v2389_v9, 0.0 }
 0xd7d   : > { %v2398_v14 = vsel %vm1252_vm12, %v2396_v11, -inf  ;;  %v2542_v15 = vsel %vm1252_vm12, %v2538_v12, -inf }
 0xd7e   : > { %2399 = vmax.xlane.f32.xlu1 %v2398_v14  ;;  %2543 = vmax.xlane.f32.xlu0 %v2542_v15  ;;  %v2395_v16 = vsel %vm2391_vm11, %v2389_v9, %v2393_v13 }
 0xd7f   : > { %v2397_v17 = vadd.f32 %v2395_v16, %v3476_v4 }
 0xd81   : > { %v2401_v18 = vsel %vm1252_vm12, %v2397_v17, -inf }
 0xd82   : > { %2402 = vmax.xlane.f32.xlu0 %v2401_v18 }
 0xe07   : > { %v2541_v19 = vpop.xlane.xlu1 %2540 }
 0xe08   : > { %v2545_v20 = vsub.f32 %v2537_v2, %v2541_v19 }
 0xe0a   : > { %v2547_v21 = vmul.f32 1.442695, %v2545_v20 }
 0xe0b   : > { %v2544_v3 = vpop.xlane.xlu0 %2543  ;;  %v2400_v22 = vpop.xlane.xlu1 %2399 }
 0xe0c   : > { %3324 = vpow2.f32 %v2547_v21  ;;  %v2546_v23 = vsub.f32 %v2538_v12, %v2544_v3  ;;  %v2404_v57 = vsub.f32 %v2396_v11, %v2400_v22 }
 0xe0e   : > { %v2549_v24 = vmul.f32 1.442695, %v2546_v23  ;;  %v2406_v25 = vmul.f32 1.442695, %v2404_v57 }
 0xe0f   : > { %v2403_v26 = vpop.xlane.xlu0 %2402 }
 0xe10   : > { %3326 = vpow2.f32 %v2549_v24  ;;  %v2405_v27 = vsub.f32 %v2397_v17, %v2403_v26 }
 0xe11   : > { %3328 = vpow2.f32 %v2406_v25 }
 0xe12   : > { %v2408_v28 = vmul.f32 1.442695, %v2405_v27 }
 0xe14   : > { %3330 = vpow2.f32 %v2408_v28 }
 0xe16   : > { %v3325_v4 = vpop.eup %3324 }
 0xe17   : > { %v2551_v29 = vsel %vm1252_vm12, %v3325_v4, 0.0 }
 0xe18   : > { %2552 = vadd.xlane.f32.xlu1 %v2551_v29 }
 0xe1a   : > { %v3327_v30 = vpop.eup %3326 }
 0xe1b   : > { %v3329_v31 = vpop.eup %3328  ;;  %v2554_v33 = vsel %vm1252_vm12, %v3327_v30, 0.0 }
 0xe1c   : > { %2555 = vadd.xlane.f32.xlu0 %v2554_v33  ;;  %v2410_v34 = vsel %vm1252_vm12, %v3329_v31, 0.0 }
 0xe1d   : > { %2411 = vadd.xlane.f32.xlu1 %v2410_v34 }
 0xe1e   : > { %v3331_v37 = vpop.eup %3330 }
 0xe1f   : > { %v2413_v38 = vsel %vm1252_vm12, %v3331_v37, 0.0 }
 0xe20   : > { %2414 = vadd.xlane.f32.xlu0 %v2413_v38 }
 0xea5   : > { %v2553_v51 = vpop.xlane.xlu1 %2552 }
 0xea6   : > { %3332 = vrcp.f32 %v2553_v51 }
 0xea9   : > { %v2556_v39 = vpop.xlane.xlu0 %2555 }
 0xeaa   : > { %3334 = vrcp.f32 %v2556_v39  ;;  %v2412_v52 = vpop.xlane.xlu1 %2411 }
 0xeab   : > { %3336 = vrcp.f32 %v2412_v52 }
 0xead   : > { %v2415_v40 = vpop.xlane.xlu0 %2414 }
 0xeae   : > { %3338 = vrcp.f32 %v2415_v40 }
 0xeb0   : > { %v3333_v41 = vpop.eup %3332 }
 0xeb1   : > { %v2558_v42 = vmul.f32 %v3333_v41, %v3325_v4 }
 0xeb3   : > { %3145 = vmatprep.mubr.msk.f32.mxu1 %vm1252_vm12, %v2558_v42 }
 0xeb4   : > { %v3335_v53 = vpop.eup %3334 }
 0xeb5   : > { %v3337_v50 = vpop.eup %3336  ;;  %v2560_v43 = vmul.f32 %v3335_v53, %v3327_v30 }
 0xeb6   : > { %v2417_v44 = vmul.f32 %v3337_v50, %v3329_v31 }
 0xeb7   : > { %3146 = vmatmul.mubr.msk.f32.vlgmr.msra.gmra.mrb[10].mxu1 %vm1252_vm12, %v2560_v43 }
 0xeb8   : > { %3226 = vmatpush3.bf16.msra.mxu1 %v3676_v36  ;;  %3152 = vmatprep.mubr.msk.f32.mxu1 %vm1252_vm12, %v2417_v44  ;;  %v3339_v45 = vpop.eup %3338 }
 0xeb9   : > { %v2419_v46 = vmul.f32 %v3339_v45, %v3331_v37 }
 0xebf   : > { %3153 = vmatmul.mubr.msk.f32.vlgmr.msra.gmra.mrb[10].mxu1 %vm1252_vm12, %v2419_v46 }
 0xf92   : > { %v3154_v35 = vpop.f32.mrb[10].mxu1 }
 0xf93   : > { %v2726_v32 = vmul.f32 0.5, %v3154_v35  ;;  %v2716_v49 = vpop.f32.mrb[11].mxu1 }
 0xf94   : > { %v2725_v54 = vmul.f32 0.5, %v2716_v49 }
 0xf95   : > { %v2730_v55 = vmul.f32 0.5, %v2726_v32  ;;  %2742 = vst.msk [vmem:[%s3496_s15 + $0x8] sm:$0xff] %vm1164_vm10, %v2726_v32 }
 0xf96   : > { %v2729_v56 = vmul.f32 0.5, %v2725_v54  ;;  %2741 = vst.msk [vmem:[%s3496_s15] sm:$0xff] %vm1164_vm10, %v2725_v54 }
 0xf97   : > { %v2733_v36 = vmul.f32 1.442695, %v2730_v55 }
 0xf98   : > { %v2731_v58 = vmul.f32 1.442695, %v2729_v56 }
 0xf99   : > { %3340 = vpow2.f32 %v2733_v36 }
 0xf9a   : > { %3342 = vpow2.f32 %v2731_v58 }
 0xfa3   : > { %v3341_v61 = vpop.eup %3340 }
 0xfa4   : > { %v3343_v62 = vpop.eup %3342  ;;  %v2736_v63 = vmul.f32 %v3341_v61, %v2728_v59 }
 0xfa5   : > { %v2735_v0 = vmul.f32 %v3343_v62, %v2727_v60 }
 0xfa6   : > { %v2738_v2 = vadd.f32 %v2736_v63, %v3728_v47 }
 0xfa7   : > { %v2737_v5 = vadd.f32 %v2735_v0, %v3730_v48 }
 0xfa8   : > { %2744 = vst.msk [vmem:[%s3501_s22 + $0x8] sm:$0xff] %vm1164_vm10, %v2738_v2 }
 0xfa9   : > { %2743 = vst.msk [vmem:[%s3501_s22] sm:$0xff] %vm1164_vm10, %v2737_v5 }
 0xfaa PF: > { %s3812_s15 = sld [smem:[#allocation3_spill]] }
 0xfb0   : > { %s29_s27 = sadd.s32 1, %s3812_s15  }
 0xfb1   : > { %p26_p5 = scmp.ge.s32.totalorder %s29_s27, 4  }
 0xfb3   :  { %28 = sbr.rel (!%p26_p5) target bundleno = 6 (0x6), region = 145 }

</bundles_post_ra>
